<compile_context>
chip_gen: v6e
topology: v6e:2x2x1
jax: 0.10.0
libtpu: 0.0.40
codegen_flags: <defaults>
</compile_context>

<pallas_src>
import jax
import jax.numpy as jnp
import numpy as np
from jax.experimental import pallas as pl
from jax.experimental.pallas import tpu as pltpu

EMBED = 768
NUM_HEADS = 3
HEAD_DIM = EMBED // NUM_HEADS          # 256
SA_CLASSES = 4
SI_CLASSES = 4
NUM_CLS = SA_CLASSES + SI_CLASSES      # packed [sa | si]
CLS_PAD = 128                          # lane-dense padded width for scores/logits


# --------------------------------------------------------------------------- #
# Kernel
# --------------------------------------------------------------------------- #
def _sa_si_kernel(s_ref, x_ref, wvs_ref, s0_ref, v0v_ref, wfold_ref, bfold_ref,
                  out_ref):
    """One batch tile per grid step.

    s_ref    : (1,)            i32  SMEM   real (unpadded) sequence length
    x_ref    : (TB, Sp, E)     f32/bf16    raw paragraph embeddings (seq zero-padded)
    wvs_ref  : (E, E+128)      bf16        packed [Wv | Ws]  (Ws = query/key/scale fold)
    s0_ref   : (1, 128)        f32         v0's constant per-head key scores
    v0v_ref  : (1, E)          f32         v0's constant value row (v0 @ Wv)
    wfold_ref: (E, 128)        bf16        Wo @ [sa|si] classifier fold (lane padded)
    bfold_ref: (1, 128)        f32         folded bias (bv, bo, bcls)
    out_ref  : (TB, 128)       f32         lane-padded packed logits
    """
    tb, sp, e = x_ref.shape
    sw = wvs_ref.shape[1]
    hd = HEAD_DIM

    # --- single projection GEMM: value rows and head scores together (MXU) ---
    xf = x_ref[...].astype(jnp.bfloat16).reshape(tb * sp, e)        # copy-free (sp%16==0)
    vs = jnp.dot(xf, wvs_ref[...], preferred_element_type=jnp.float32)
    vs3 = vs.reshape(tb, sp, sw)
    v3 = vs3[:, :, :e]                       # (TB, Sp, E)   value rows (bias folded out)
    sx = vs3[:, :, e:]                       # (TB, Sp, 128) cols 0..2 = head scores

    # --- mask zero-padded sequence positions ---------------------------------
    s_real = s_ref[0]
    pos = jax.lax.broadcasted_iota(jnp.int32, (1, sp, 1), 1)
    sx = jnp.where(pos < s_real, sx, jnp.float32(-1e30))

    # --- softmax over {v0} U sequence, per head column ------------------------
    s0 = s0_ref[...].reshape(1, 1, CLS_PAD)                          # constant v0 scores
    m = jnp.maximum(jnp.max(sx, axis=1, keepdims=True), s0)         # (TB, 1, 128)
    ex = jnp.exp(sx - m)                                             # (TB, Sp, 128)
    e0 = jnp.exp(s0 - m)                                             # (TB, 1, 128)
    rden = pl.reciprocal(jnp.sum(ex, axis=1, keepdims=True) + e0, approx=True)
    p = ex * rden                                                    # (TB, Sp, 128)
    p0 = e0 * rden                                                   # (TB, 1, 128)

    # --- merged 3-head epilogue: broadcast probs across 256-lane value blocks -
    p_b = jnp.concatenate(
        [jnp.broadcast_to(p[:, :, h:h + 1], (tb, sp, hd)) for h in range(NUM_HEADS)],
        axis=-1)                                                     # (TB, Sp, E)
    p0_b = jnp.concatenate(
        [jnp.broadcast_to(p0[:, :, h:h + 1], (tb, 1, hd)) for h in range(NUM_HEADS)],
        axis=-1).reshape(tb, e)                                      # (TB, E)

    attn = jnp.sum(p_b * v3, axis=1) + p0_b * v0v_ref[...]          # (TB, E) f32

    # --- folded out-projection + classifiers (single small GEMM) -------------
    out_ref[...] = (jnp.dot(attn.astype(jnp.bfloat16), wfold_ref[...],
                            preferred_element_type=jnp.float32) + bfold_ref[...])


# --------------------------------------------------------------------------- #
# pallas_call wrapper
# --------------------------------------------------------------------------- #
def _call_kernel(s_real, x, wvs, s0, v0v, wfold, bfold, *, tb, vmem_limit):
    b_pad, sp, e = x.shape
    sw = wvs.shape[1]
    c = wfold.shape[1]

    grid_spec = pltpu.PrefetchScalarGridSpec(
        num_scalar_prefetch=1,                    # s_real lands in SMEM
        grid=(b_pad // tb,),
        in_specs=[
            pl.BlockSpec((tb, sp, e), lambda i, s: (i, 0, 0)),   # batch tile of x
            pl.BlockSpec((e, sw), lambda i, s: (0, 0)),          # [Wv | Ws]
            pl.BlockSpec((1, c), lambda i, s: (0, 0)),           # s0
            pl.BlockSpec((1, e), lambda i, s: (0, 0)),           # v0 value row
            pl.BlockSpec((e, c), lambda i, s: (0, 0)),           # Wfold
            pl.BlockSpec((1, c), lambda i, s: (0, 0)),           # bfold
        ],
        out_specs=pl.BlockSpec((tb, c), lambda i, s: (i, 0)),
    )
    return pl.pallas_call(
        _sa_si_kernel,
        out_shape=jax.ShapeDtypeStruct((b_pad, c), jnp.float32),
        grid_spec=grid_spec,
        compiler_params=pltpu.CompilerParams(
            dimension_semantics=("parallel",),
            vmem_limit_bytes=vmem_limit),
    )(s_real, x, wvs, s0, v0v, wfold, bfold)


def _plan(batch, sp):
    """Pick the batch tile / VMEM budget per TPU generation."""
    b8 = 8 * ((batch + 7) // 8)
    kind = ""
    try:
        kind = jax.devices()[0].device_kind.lower()
    except Exception:
        pass
    if ("v5" in kind) or ("v6" in kind):
        cap, multi_tc, vmem = 128, False, 64 * 1024 * 1024   # 128 MiB VMEM parts
    else:                                                    # v7x-like: 64 MiB / TC, 2 TCs
        cap, multi_tc, vmem = 64, True, 32 * 1024 * 1024
    # Keep the (TB, Sp, E) tile + f32 intermediates inside the VMEM budget.
    # TODO(synk): very long sequences would need an inner sequence pipeline.
    cap = min(cap, max(8, ((2048 // max(sp, 1)) // 8) * 8))
    tb = min(cap, b8)
    if multi_tc and b8 >= 16 and b8 // tb < 2:
        tb = 8 * (((b8 // 2) + 7) // 8)        # >=2 grid steps so both TCs work
    b_pad = tb * ((batch + tb - 1) // tb)
    return tb, b_pad, vmem


# --------------------------------------------------------------------------- #
# Parameters
# --------------------------------------------------------------------------- #
def init_params(key):
    """Deterministic parameter init matching the PyTorch module's shapes."""
    ks = jax.random.split(key, 8)
    in_proj_w = jax.random.normal(ks[0], (3 * EMBED, EMBED), jnp.float32) * 0.02
    in_proj_b = jax.random.normal(ks[1], (3 * EMBED,), jnp.float32) * 0.02
    out_proj_w = jax.random.normal(ks[2], (EMBED, EMBED), jnp.float32) * 0.02
    out_proj_b = jax.random.normal(ks[3], (EMBED,), jnp.float32) * 0.02
    sa_w = jax.random.normal(ks[4], (SA_CLASSES, EMBED), jnp.float32) * 0.02
    sa_b = jax.random.normal(ks[5], (SA_CLASSES,), jnp.float32) * 0.02
    si_w = jax.random.normal(ks[6], (SI_CLASSES, EMBED), jnp.float32) * 0.02
    si_b = jax.random.normal(ks[7], (SI_CLASSES,), jnp.float32) * 0.02
    v0 = jax.random.normal(jax.random.fold_in(key, 99), (1, 1, EMBED), jnp.float32)
    return dict(in_proj_w=in_proj_w, in_proj_b=in_proj_b,
                out_proj_w=out_proj_w, out_proj_b=out_proj_b,
                sa_w=sa_w, sa_b=sa_b, si_w=si_w, si_b=si_b, v0=v0)


def prepare_params(params):
    """One-time algebraic folds (all in f32, then cast to bf16 where useful)."""
    E = EMBED
    f32 = jnp.float32
    ipw = params["in_proj_w"].astype(f32)        # (3E, E) rows = [Wq; Wk; Wv] (out,in)
    ipb = params["in_proj_b"].astype(f32)
    wq, wk = ipw[:E], ipw[E:2 * E]
    wv_t = ipw[2 * E:].T                         # (E, E) (in, out)
    bq, bv = ipb[:E], ipb[2 * E:]

    v0_row = params["v0"].reshape(1, E).astype(f32)

    # Constant query of token 0 (the only query the module ever consumes).
    q0 = v0_row @ wq.T + bq                      # (1, E)

    # Query/key/scale fold: score_h(x) = x @ (Wk_h^T q0_h) / sqrt(hd).
    # bk adds the same constant to every key position and cancels under softmax.
    scale = 1.0 / np.sqrt(HEAD_DIM)
    ws = jnp.stack(
        [wk[h * HEAD_DIM:(h + 1) * HEAD_DIM].T @ q0[0, h * HEAD_DIM:(h + 1) * HEAD_DIM]
         for h in range(NUM_HEADS)], axis=1) * scale                    # (E, 3)
    ws_pad = jnp.pad(ws, ((0, 0), (0, CLS_PAD - NUM_HEADS)))            # (E, 128)

    # Packed projection weight (bv folded into bfold below).
    wvs = jnp.concatenate([wv_t, ws_pad], axis=1).astype(jnp.bfloat16)  # (E, E+128)

    # v0's constant key score and value row (v0 never enters the kernel).
    s0 = jnp.pad(v0_row @ ws, ((0, 0), (0, CLS_PAD - NUM_HEADS))).astype(f32)  # (1,128)
    v0v = (v0_row @ wv_t).astype(f32)                                          # (1, E)

    # Fold out-projection + both classifiers: logits = attn @ Wfold + bfold.
    wo_t = params["out_proj_w"].astype(f32).T                                   # (E, E)
    wcls_t = jnp.concatenate([params["sa_w"], params["si_w"]], 0).astype(f32).T  # (E, 8)
    bcls = jnp.concatenate([params["sa_b"], params["si_b"]]).astype(f32)         # (8,)
    wfold = wo_t @ wcls_t                                                        # (E, 8)
    bfold = bv @ wfold + params["out_proj_b"].astype(f32) @ wcls_t + bcls        # (8,)
    wfold_pad = jnp.pad(wfold, ((0, 0), (0, CLS_PAD - NUM_CLS))).astype(jnp.bfloat16)
    bfold_pad = jnp.pad(bfold, (0, CLS_PAD - NUM_CLS)).reshape(1, CLS_PAD).astype(f32)

    return dict(wvs=wvs, s0=s0, v0v=v0v, wfold=wfold_pad, bfold=bfold_pad)


# --------------------------------------------------------------------------- #
# Forward pass
# --------------------------------------------------------------------------- #
@jax.jit
def sa_si_forward(paragraph_embeddings, prepared):
    """Mirrors SA_SI_PredictionModule.forward. Returns (sa_logits, si_logits)."""
    x = paragraph_embeddings
    if x.ndim == 4 and x.shape[2] == 1:
        x = jnp.squeeze(x, axis=2)
    if x.dtype not in (jnp.float32, jnp.bfloat16):
        x = x.astype(jnp.float32)
    B, S, E = x.shape
    assert E == EMBED

    Sp = 16 * ((S + 15) // 16)                 # bf16 sublane-pair aligned sequence
    tb, b_pad, vmem_limit = _plan(B, Sp)
    if (b_pad, Sp) != (B, S):                  # pad only when actually needed
        x = jnp.pad(x, ((0, b_pad - B), (0, Sp - S), (0, 0)))
    s_real = jnp.full((1,), S, jnp.int32)

    logits = _call_kernel(s_real, x, prepared["wvs"], prepared["s0"],
                          prepared["v0v"], prepared["wfold"], prepared["bfold"],
                          tb=tb, vmem_limit=vmem_limit)
    logits = logits[:B, :NUM_CLS]
    return logits[:, :SA_CLASSES], logits[:, SA_CLASSES:]


# --------------------------------------------------------------------------- #
# Pure-JAX f32 reference (full MultiheadAttention semantics)
# --------------------------------------------------------------------------- #
def _reference_forward(paragraph_embeddings, params):
    x = paragraph_embeddings
    if x.ndim == 4 and x.shape[2] == 1:
        x = jnp.squeeze(x, axis=2)
    B, S, E = x.shape
    emb = jnp.concatenate([jnp.broadcast_to(params["v0"], (B, 1, E)), x], axis=1)
    S1 = S + 1

    def proj(w, b):
        return jnp.einsum("bse,oe->bso", emb, w) + b

    q = proj(params["in_proj_w"][:E], params["in_proj_b"][:E])
    k = proj(params["in_proj_w"][E:2 * E], params["in_proj_b"][E:2 * E])
    v = proj(params["in_proj_w"][2 * E:], params["in_proj_b"][2 * E:])

    def split_heads(t):
        return t.reshape(B, S1, NUM_HEADS, HEAD_DIM).transpose(0, 2, 1, 3)

    qh, kh, vh = split_heads(q), split_heads(k), split_heads(v)
    scores = jnp.einsum("bhqd,bhkd->bhqk", qh, kh) / np.sqrt(HEAD_DIM)
    p = jax.nn.softmax(scores, axis=-1)
    oh = jnp.einsum("bhqk,bhkd->bhqd", p, vh)
    attn = oh.transpose(0, 2, 1, 3).reshape(B, S1, E)
    attn = jnp.einsum("bse,oe->bso", attn, params["out_proj_w"]) + params["out_proj_b"]
    h0 = attn[:, 0, :]
    sa = h0 @ params["sa_w"].T + params["sa_b"]
    si = h0 @ params["si_w"].T + params["si_b"]
    return sa, si


if __name__ == "__main__":
    key = jax.random.PRNGKey(0)
    k_x, k_p = jax.random.split(key)

    batch, seq = 2, 8
    x = jax.random.normal(k_x, (batch, seq, EMBED), jnp.float32)
    params = init_params(k_p)
    prepared = prepare_params(params)          # one-time weight folds

    sa_logits, si_logits = sa_si_forward(x, prepared)
    jax.block_until_ready((sa_logits, si_logits))

    sa_ref, si_ref = _reference_forward(x, params)
    np.testing.assert_allclose(np.asarray(sa_logits), np.asarray(sa_ref),
                               rtol=2e-2, atol=2e-2)
    np.testing.assert_allclose(np.asarray(si_logits), np.asarray(si_ref),
                               rtol=2e-2, atol=2e-2)

    assert sa_logits.shape == (batch, SA_CLASSES)
    assert si_logits.shape == (batch, SI_CLASSES)
    print("KERNEL_OK")
</pallas_src>

<mosaic_0001>
module attributes {stable_mosaic.version = 11 : i64} {
  func.func @_sa_si_kernel(%arg0: i32, %arg1: memref<1xi32, #tpu.memory_space<smem>>, %arg2: memref<8x16x768xf32, #tpu.memory_space<vmem>>, %arg3: memref<768x896xbf16, #tpu.memory_space<vmem>>, %arg4: memref<1x128xf32, #tpu.memory_space<vmem>>, %arg5: memref<1x768xf32, #tpu.memory_space<vmem>>, %arg6: memref<768x128xbf16, #tpu.memory_space<vmem>>, %arg7: memref<1x128xf32, #tpu.memory_space<vmem>>, %arg8: memref<8x128xf32, #tpu.memory_space<vmem>>) attributes {dimension_semantics = [#tpu.dimension_semantics<parallel>], iteration_bounds = array<i64: 1>, scalar_prefetch = 1 : i64, scratch_operands = 0 : i64, tpu.core_type = #tpu.core_type<tc>, window_params = [{transform_indices = @transform_0, window_bounds = array<i64: 8, 16, 768>}, {pipeline_mode = #tpu.pipeline_mode<synchronous>, transform_indices = @transform_1, window_bounds = array<i64: 768, 896>}, {pipeline_mode = #tpu.pipeline_mode<synchronous>, transform_indices = @transform_2, window_bounds = array<i64: 1, 128>}, {pipeline_mode = #tpu.pipeline_mode<synchronous>, transform_indices = @transform_3, window_bounds = array<i64: 1, 768>}, {pipeline_mode = #tpu.pipeline_mode<synchronous>, transform_indices = @transform_4, window_bounds = array<i64: 768, 128>}, {pipeline_mode = #tpu.pipeline_mode<synchronous>, transform_indices = @transform_5, window_bounds = array<i64: 1, 128>}, {transform_indices = @transform_6, window_bounds = array<i64: 8, 128>}]} {
    %c0 = arith.constant 0 : index
    %c0_0 = arith.constant 0 : index
    %c0_1 = arith.constant 0 : index
    %0 = vector.load %arg2[%c0, %c0_0, %c0_1] : memref<8x16x768xf32, #tpu.memory_space<vmem>>, vector<8x16x768xf32>
    %1 = arith.truncf %0 : vector<8x16x768xf32> to vector<8x16x768xbf16>
    %2 = vector.shape_cast %1 : vector<8x16x768xbf16> to vector<128x768xbf16>
    %c0_2 = arith.constant 0 : index
    %c0_3 = arith.constant 0 : index
    %3 = vector.load %arg3[%c0_2, %c0_3] : memref<768x896xbf16, #tpu.memory_space<vmem>>, vector<768x896xbf16>
    %cst = arith.constant dense<0.000000e+00> : vector<128x896xf32>
    %4 = tpu.matmul %2, %3, %cst {dimension_numbers = #tpu.dot_dimension_numbers<[1], [0], [0], [1], [0, 0, 1, 1], [], []>} : vector<128x768xbf16>, vector<768x896xbf16>, vector<128x896xf32> -> vector<128x896xf32>
    %5 = vector.shape_cast %4 : vector<128x896xf32> to vector<8x16x896xf32>
    %6 = vector.extract_strided_slice %5 {offsets = [0, 0, 0], sizes = [8, 16, 768], strides = [1, 1, 1]} : vector<8x16x896xf32> to vector<8x16x768xf32>
    %7 = vector.extract_strided_slice %5 {offsets = [0, 0, 768], sizes = [8, 16, 128], strides = [1, 1, 1]} : vector<8x16x896xf32> to vector<8x16x128xf32>
    %c0_4 = arith.constant 0 : index
    %8 = memref.load %arg1[%c0_4] : memref<1xi32, #tpu.memory_space<smem>>
    %9 = tpu.iota {dimensions = array<i32: 1>} : vector<1x16x1xi32>
    %10 = vector.broadcast %8 : i32 to vector<1x16x1xi32>
    %11 = arith.cmpi slt, %9, %10 : vector<1x16x1xi32>
    %cst_5 = arith.constant -1.000000e+30 : f32
    %12 = vector.shape_cast %11 : vector<1x16x1xi1> to vector<1x16x1xi1>
    %13 = vector.broadcast %12 : vector<1x16x1xi1> to vector<8x16x128xi1>
    %14 = vector.broadcast %cst_5 : f32 to vector<8x16x128xf32>
    %15 = arith.select %13, %7, %14 : vector<8x16x128xi1>, vector<8x16x128xf32>
    %c0_6 = arith.constant 0 : index
    %c0_7 = arith.constant 0 : index
    %16 = vector.load %arg4[%c0_6, %c0_7] : memref<1x128xf32, #tpu.memory_space<vmem>>, vector<1x128xf32>
    %17 = vector.shape_cast %16 : vector<1x128xf32> to vector<1x1x128xf32>
    %cst_8 = arith.constant dense<0xFF800000> : vector<8x128xf32>
    %18 = vector.multi_reduction <maximumf>, %15, %cst_8 [1] : vector<8x16x128xf32> to vector<8x128xf32>
    %19 = vector.shape_cast %18 : vector<8x128xf32> to vector<8x1x128xf32>
    %20 = vector.broadcast %17 : vector<1x1x128xf32> to vector<8x1x128xf32>
    %21 = arith.maximumf %19, %20 : vector<8x1x128xf32>
    %22 = vector.broadcast %21 : vector<8x1x128xf32> to vector<8x16x128xf32>
    %23 = arith.subf %15, %22 : vector<8x16x128xf32>
    %24 = math.exp %23 : vector<8x16x128xf32>
    %25 = vector.broadcast %17 : vector<1x1x128xf32> to vector<8x1x128xf32>
    %26 = arith.subf %25, %21 : vector<8x1x128xf32>
    %27 = math.exp %26 : vector<8x1x128xf32>
    %cst_9 = arith.constant dense<0.000000e+00> : vector<8x128xf32>
    %28 = vector.multi_reduction <add>, %24, %cst_9 [1] : vector<8x16x128xf32> to vector<8x128xf32>
    %29 = vector.shape_cast %28 : vector<8x128xf32> to vector<8x1x128xf32>
    %30 = arith.addf %29, %27 : vector<8x1x128xf32>
    %31 = tpu.reciprocal %30 {approx = true} : vector<8x1x128xf32> -> vector<8x1x128xf32>
    %32 = vector.broadcast %31 : vector<8x1x128xf32> to vector<8x16x128xf32>
    %33 = arith.mulf %24, %32 : vector<8x16x128xf32>
    %34 = arith.mulf %27, %31 : vector<8x1x128xf32>
    %35 = vector.extract_strided_slice %33 {offsets = [0, 0, 0], sizes = [8, 16, 1], strides = [1, 1, 1]} : vector<8x16x128xf32> to vector<8x16x1xf32>
    %36 = vector.shape_cast %35 : vector<8x16x1xf32> to vector<8x16x1xf32>
    %37 = vector.broadcast %36 : vector<8x16x1xf32> to vector<8x16x256xf32>
    %38 = vector.extract_strided_slice %33 {offsets = [0, 0, 1], sizes = [8, 16, 1], strides = [1, 1, 1]} : vector<8x16x128xf32> to vector<8x16x1xf32>
    %39 = vector.shape_cast %38 : vector<8x16x1xf32> to vector<8x16x1xf32>
    %40 = vector.broadcast %39 : vector<8x16x1xf32> to vector<8x16x256xf32>
    %41 = vector.extract_strided_slice %33 {offsets = [0, 0, 2], sizes = [8, 16, 1], strides = [1, 1, 1]} : vector<8x16x128xf32> to vector<8x16x1xf32>
    %42 = vector.shape_cast %41 : vector<8x16x1xf32> to vector<8x16x1xf32>
    %43 = vector.broadcast %42 : vector<8x16x1xf32> to vector<8x16x256xf32>
    %44 = tpu.concatenate %37, %40, %43 in 2 : vector<8x16x256xf32>, vector<8x16x256xf32>, vector<8x16x256xf32> -> vector<8x16x768xf32>
    %45 = vector.extract_strided_slice %34 {offsets = [0, 0, 0], sizes = [8, 1, 1], strides = [1, 1, 1]} : vector<8x1x128xf32> to vector<8x1x1xf32>
    %46 = vector.shape_cast %45 : vector<8x1x1xf32> to vector<8x1x1xf32>
    %47 = vector.broadcast %46 : vector<8x1x1xf32> to vector<8x1x256xf32>
    %48 = vector.extract_strided_slice %34 {offsets = [0, 0, 1], sizes = [8, 1, 1], strides = [1, 1, 1]} : vector<8x1x128xf32> to vector<8x1x1xf32>
    %49 = vector.shape_cast %48 : vector<8x1x1xf32> to vector<8x1x1xf32>
    %50 = vector.broadcast %49 : vector<8x1x1xf32> to vector<8x1x256xf32>
    %51 = vector.extract_strided_slice %34 {offsets = [0, 0, 2], sizes = [8, 1, 1], strides = [1, 1, 1]} : vector<8x1x128xf32> to vector<8x1x1xf32>
    %52 = vector.shape_cast %51 : vector<8x1x1xf32> to vector<8x1x1xf32>
    %53 = vector.broadcast %52 : vector<8x1x1xf32> to vector<8x1x256xf32>
    %54 = tpu.concatenate %47, %50, %53 in 2 : vector<8x1x256xf32>, vector<8x1x256xf32>, vector<8x1x256xf32> -> vector<8x1x768xf32>
    %55 = vector.shape_cast %54 : vector<8x1x768xf32> to vector<8x768xf32>
    %56 = arith.mulf %44, %6 : vector<8x16x768xf32>
    %cst_10 = arith.constant dense<0.000000e+00> : vector<8x768xf32>
    %57 = vector.multi_reduction <add>, %56, %cst_10 [1] : vector<8x16x768xf32> to vector<8x768xf32>
    %c0_11 = arith.constant 0 : index
    %c0_12 = arith.constant 0 : index
    %58 = vector.load %arg5[%c0_11, %c0_12] : memref<1x768xf32, #tpu.memory_space<vmem>>, vector<1x768xf32>
    %59 = vector.broadcast %58 : vector<1x768xf32> to vector<8x768xf32>
    %60 = arith.mulf %55, %59 : vector<8x768xf32>
    %61 = arith.addf %57, %60 : vector<8x768xf32>
    %62 = arith.truncf %61 : vector<8x768xf32> to vector<8x768xbf16>
    %c0_13 = arith.constant 0 : index
    %c0_14 = arith.constant 0 : index
    %63 = vector.load %arg6[%c0_13, %c0_14] : memref<768x128xbf16, #tpu.memory_space<vmem>>, vector<768x128xbf16>
    %cst_15 = arith.constant dense<0.000000e+00> : vector<8x128xf32>
    %64 = tpu.matmul %62, %63, %cst_15 {dimension_numbers = #tpu.dot_dimension_numbers<[1], [0], [0], [1], [0, 0, 1, 1], [], []>} : vector<8x768xbf16>, vector<768x128xbf16>, vector<8x128xf32> -> vector<8x128xf32>
    %c0_16 = arith.constant 0 : index
    %c0_17 = arith.constant 0 : index
    %65 = vector.load %arg7[%c0_16, %c0_17] : memref<1x128xf32, #tpu.memory_space<vmem>>, vector<1x128xf32>
    %66 = vector.broadcast %65 : vector<1x128xf32> to vector<8x128xf32>
    %67 = arith.addf %64, %66 : vector<8x128xf32>
    %c0_18 = arith.constant 0 : index
    %c0_19 = arith.constant 0 : index
    %68 = vector.load %arg8[%c0_18, %c0_19] : memref<8x128xf32, #tpu.memory_space<vmem>>, vector<8x128xf32>
    tpu.vector_store %arg8[%c0_18, %c0_19], %67 {strides = array<i32>} : memref<8x128xf32, #tpu.memory_space<vmem>>, vector<8x128xf32>,
    return
  }
  func.func @transform_0(%arg0: i32, %arg1: memref<1xi32, #tpu.memory_space<smem>>) -> (i32, i32, i32) {
    %c0_i32 = arith.constant 0 : i32
    %c0_i32_0 = arith.constant 0 : i32
    %c0_i32_1 = arith.constant 0 : i32
    return %arg0, %c0_i32, %c0_i32_0 : i32, i32, i32
  }
  func.func @transform_1(%arg0: i32, %arg1: memref<1xi32, #tpu.memory_space<smem>>) -> (i32, i32) {
    %c0_i32 = arith.constant 0 : i32
    %c0_i32_0 = arith.constant 0 : i32
    %c0_i32_1 = arith.constant 0 : i32
    return %c0_i32, %c0_i32_0 : i32, i32
  }
  func.func @transform_2(%arg0: i32, %arg1: memref<1xi32, #tpu.memory_space<smem>>) -> (i32, i32) {
    %c0_i32 = arith.constant 0 : i32
    %c0_i32_0 = arith.constant 0 : i32
    %c0_i32_1 = arith.constant 0 : i32
    return %c0_i32, %c0_i32_0 : i32, i32
  }
  func.func @transform_3(%arg0: i32, %arg1: memref<1xi32, #tpu.memory_space<smem>>) -> (i32, i32) {
    %c0_i32 = arith.constant 0 : i32
    %c0_i32_0 = arith.constant 0 : i32
    %c0_i32_1 = arith.constant 0 : i32
    return %c0_i32, %c0_i32_0 : i32, i32
  }
  func.func @transform_4(%arg0: i32, %arg1: memref<1xi32, #tpu.memory_space<smem>>) -> (i32, i32) {
    %c0_i32 = arith.constant 0 : i32
    %c0_i32_0 = arith.constant 0 : i32
    %c0_i32_1 = arith.constant 0 : i32
    return %c0_i32, %c0_i32_0 : i32, i32
  }
  func.func @transform_5(%arg0: i32, %arg1: memref<1xi32, #tpu.memory_space<smem>>) -> (i32, i32) {
    %c0_i32 = arith.constant 0 : i32
    %c0_i32_0 = arith.constant 0 : i32
    %c0_i32_1 = arith.constant 0 : i32
    return %c0_i32, %c0_i32_0 : i32, i32
  }
  func.func @transform_6(%arg0: i32, %arg1: memref<1xi32, #tpu.memory_space<smem>>) -> (i32, i32) {
    %c0_i32 = arith.constant 0 : i32
    %c0_i32_0 = arith.constant 0 : i32
    return %arg0, %c0_i32 : i32, i32
  }
}

</mosaic_0001>

<bundles_post_ra>
// kernel: sa_si_forward.1
= control target key start
LH: loop header
LB: loop body
LE: loop exit
PB: predicated region body
PF: predicated region fallthrough
CT: control target
= control target key end

     0   :  { %13 = vsyncpa [#allocation5], 0  ;;  %s9309_s0 = inlined_call_operand.<no memory space> [shape: s32[1], index: 0, kind: input, shape index: {}]   ;;  %s9310_s1 = inlined_call_operand.vmem [shape: f32[8,16,768], index: 1, kind: input, shape index: {}]   ;;  %s9311_s2 = inlined_call_operand.hbm [shape: bf16[768,896], index: 2, kind: input, shape index: {}]   ;;  %s9312_s3 = inlined_call_operand.hbm [shape: f32[1,128], index: 3, kind: input, shape index: {}]   ;;  %s9313_s4 = inlined_call_operand.hbm [shape: f32[1,768], index: 4, kind: input, shape index: {}]   ;;  %s9314_s5 = inlined_call_operand.hbm [shape: bf16[768,128], index: 5, kind: input, shape index: {}]   ;;  %s9315_s6 = inlined_call_operand.hbm [shape: f32[1,128], index: 6, kind: input, shape index: {}]   ;;  %s9316_s7 = inlined_call_operand.vmem [shape: f32[8,128], index: 7, kind: output, shape index: {}]  }
   0x1   :  { %14 = vsyncpa [#allocation7], 0 }
   0x2   :  { %15 = vsyncpa [#allocation10], 0  ;;  %s7107_s24 = smov [#allocation6]   ;;  %s7108_s26 = smov [#allocation9]  }
   0x3   :  { %s36_s25 = sshll.u32 %s7107_s24, 4  ;;  %s55_s27 = sshll.u32 %s7108_s26, 4  ;;  %s37_s25 = int_to_ptr.vmem [resolvable:$true] %s36_s25  ;;  %s56_s27 = int_to_ptr.vmem [resolvable:$true] %s55_s27 }
   0x4   :  { %s7009_s28 = scalar_lea.vmem %s37_s25, 16  ;;  %s7013_s29 = scalar_lea.vmem %s37_s25, 32 }
   0x5   :  { %p7010_p0 = scmp.ne.s32.totalorder %s37_s25, %s7009_s28  ;;  %p7014_p1 = scmp.lt.s32.totalorder %s37_s25, %s37_s25 }
   0x6   :  { %p7015_p2 = scmp.lt.s32.totalorder %s7013_s29, %s7009_s28 }
   0x8   :  { %p7016_p3 = por %p7015_p2, %p7014_p1 }
   0xa   :  { %p7017_p4 = pnand %p7016_p3, %p7010_p0 }
   0xc   :  { %7020 = shalt.err (!%p7017_p4)
}
   0xd   :  { %39 = dma.hbm_to_vmem [thread:$0]  %s9312_s3, 16, %s37_s25, [#allocation7]  }
   0xe   :  { %s7029_s9 = scalar_lea.vmem %s56_s27, 6144  ;;  %p7034_p6 = scmp.lt.s32.totalorder %s56_s27, %s56_s27 }
   0xf   :  { %p7030_p5 = scmp.ne.s32.totalorder %s56_s27, %s7029_s9  ;;  %p7035_p7 = scmp.lt.s32.totalorder %s7029_s9, %s7029_s9 }
  0x11   :  { %p7036_p8 = por %p7035_p7, %p7034_p6 }
  0x13   :  { %p7037_p9 = pnand %p7036_p8, %p7030_p5 }
  0x15   :  { %7040 = shalt.err (!%p7037_p9)
}
  0x16   :  { %s7109_s10 = smov 64   ;;  %s7110_s11 = smov 4  }
  0x17   :  { %61 = dma.hbm_to_vmem [thread:$0]  %s9314_s5, 6144, %s56_s27, [#allocation10], %s7109_s10, %s7109_s10, %s7110_s11  }
  0x18   :  { %s7111_s14 = smov [#allocation4]  }
  0x19   :  { %s23_s15 = sshll.u32 %s7111_s14, 4  ;;  %s24_s15 = int_to_ptr.vmem [resolvable:$true] %s23_s15 }
  0x1a   :  { %s7049_s16 = scalar_lea.vmem %s24_s15, 43008  ;;  %p7054_p11 = scmp.lt.s32.totalorder %s24_s15, %s24_s15 }
  0x1b   :  { %p7050_p10 = scmp.ne.s32.totalorder %s24_s15, %s7049_s16  ;;  %p7055_p12 = scmp.lt.s32.totalorder %s7049_s16, %s7049_s16 }
  0x1d   :  { %p7056_p13 = por %p7055_p12, %p7054_p11 }
  0x1f   :  { %p7057_p0 = pnand %p7056_p13, %p7050_p10 }
  0x21   :  { %7060 = shalt.err (!%p7057_p0)
}
  0x22   :  { %s7112_s3 = smov 448   ;;  %s7113_s17 = smov 28  }
  0x23   :  { %29 = dma.hbm_to_vmem [thread:$0]  %s9311_s2, 43008, %s24_s15, [#allocation5], %s7112_s3, %s7112_s3, %s7113_s17  }
  0x24   :  { %s7114_s20 = smov [#allocation8]   ;;  %s7115_s5 = smov [#allocation11]  }
  0x25   :  { %s46_s21 = sshll.u32 %s7114_s20, 4  ;;  %s68_s22 = sshll.u32 %s7115_s5, 4  ;;  %s47_s21 = int_to_ptr.vmem [resolvable:$true] %s46_s21  ;;  %s69_s22 = int_to_ptr.vmem [resolvable:$true] %s68_s22 }
  0x26   :  { %s7069_s23 = scalar_lea.vmem %s47_s21, 96  ;;  %p7074_p2 = scmp.lt.s32.totalorder %s47_s21, %s47_s21 }
  0x27   :  { %p7070_p1 = scmp.ne.s32.totalorder %s47_s21, %s7069_s23  ;;  %p7075_p3 = scmp.lt.s32.totalorder %s7069_s23, %s7069_s23 }
  0x29   :  { %p7076_p4 = por %p7075_p3, %p7074_p2 }
  0x2b   :  { %p7077_p5 = pnand %p7076_p4, %p7070_p1 }
  0x2d   :  { %7080 = shalt.err (!%p7077_p5)
}
  0x2e   :  { %49 = dma.hbm_to_vmem [thread:$0]  %s9313_s4, 96, %s47_s21, [#allocation7]  }
  0x2f   :  { %s7089_s26 = scalar_lea.vmem %s69_s22, 16  ;;  %s7093_s2 = scalar_lea.vmem %s69_s22, 32 }
  0x30   :  { %p7090_p6 = scmp.ne.s32.totalorder %s69_s22, %s7089_s26  ;;  %p7094_p7 = scmp.lt.s32.totalorder %s69_s22, %s69_s22 }
  0x31   :  { %p7095_p8 = scmp.lt.s32.totalorder %s7093_s2, %s7089_s26 }
  0x33   :  { %p7096_p9 = por %p7095_p8, %p7094_p7 }
  0x35   :  { %p7097_p10 = pnand %p7096_p9, %p7090_p6 }
  0x37   :  { %7100 = shalt.err (!%p7097_p10)
}
  0x38   :  { %71 = dma.hbm_to_vmem [thread:$0]  %s9315_s6, 16, %s69_s22, [#allocation10]  }
  0x39   :  { %7101 = dma.done.wait [#allocation5], 43008  }
  0x3a   :  { %7102 = vsyncadd [#allocation5], 4294924288 }
  0x3b   :  { %7103 = dma.done.wait [#allocation7], 112  }
  0x3c   :  { %7104 = vsyncadd [#allocation7], 4294967184 }
  0x3d   :  { %7105 = dma.done.wait [#allocation10], 6160  }
  0x3e   :  { %7106 = vsyncadd [#allocation10], 4294961136  ;;  %v6409_v0 = vld [vmem:[#allocation4 + $0x18c] ss:$28 sps:$4 sm:$0xff]   ;;  %v6415_v4 = vld [vmem:[#allocation4 + $0x154] ss:$28 sps:$4 sm:$0xff]  }
  0x3f   :  { %v6411_v1 = vld [vmem:[#allocation4 + $0x50c] ss:$28 sps:$4 sm:$0xff]   ;;  %2344 = vmatprep.subr.bf16.mxu0 %v6409_v0  ;;  %v6417_v5 = vld [vmem:[#allocation4 + $0x4d4] ss:$28 sps:$4 sm:$0xff]   ;;  %v6421_v8 = vld [vmem:[#allocation4 + $0x11c] ss:$28 sps:$4 sm:$0xff]  }
  0x40   :  { %v6413_v2 = vld [vmem:[#allocation4 + $0x188] ss:$28 sps:$4 sm:$0xff]   ;;  %2457 = vmatprep.subr.bf16.mxu1 %v6411_v1  ;;  %v6419_v6 = vld [vmem:[#allocation4 + $0x150] ss:$28 sps:$4 sm:$0xff]   ;;  %v6423_v9 = vld [vmem:[#allocation4 + $0x49c] ss:$28 sps:$4 sm:$0xff]  }
  0x41   :  { %v6414_v3 = vld [vmem:[#allocation4 + $0x508] ss:$28 sps:$4 sm:$0xff]   ;;  %2345 = vmatpush1.bf16.msra.mxu0 %v6413_v2  ;;  %v6420_v7 = vld [vmem:[#allocation4 + $0x4d0] ss:$28 sps:$4 sm:$0xff]   ;;  %v6425_v10 = vld [vmem:[#allocation4 + $0x118] ss:$28 sps:$4 sm:$0xff]  }
  0x42   :  { %2458 = vmatpush1.bf16.msra.mxu1 %v6414_v3  ;;  %2346 = vmatprep.subr.bf16.mxu0 %v6415_v4  ;;  %v6426_v11 = vld [vmem:[#allocation4 + $0x498] ss:$28 sps:$4 sm:$0xff]   ;;  %v6427_v12 = vld [vmem:[#allocation4 + $0xe4] ss:$28 sps:$4 sm:$0xff]   ;;  %v6433_v16 = vld [vmem:[#allocation4 + $0xac] ss:$28 sps:$4 sm:$0xff]  }
  0x43   :  { %2459 = vmatprep.subr.bf16.mxu1 %v6417_v5  ;;  %v6429_v13 = vld [vmem:[#allocation4 + $0x464] ss:$28 sps:$4 sm:$0xff]   ;;  %v6435_v17 = vld [vmem:[#allocation4 + $0x42c] ss:$28 sps:$4 sm:$0xff]   ;;  %v6439_v20 = vld [vmem:[#allocation4 + $0x74] ss:$28 sps:$4 sm:$0xff]  }
  0x44   :  { %v6431_v14 = vld [vmem:[#allocation4 + $0xe0] ss:$28 sps:$4 sm:$0xff]   ;;  %v6437_v18 = vld [vmem:[#allocation4 + $0xa8] ss:$28 sps:$4 sm:$0xff]   ;;  %v6441_v21 = vld [vmem:[#allocation4 + $0x3f4] ss:$28 sps:$4 sm:$0xff]  }
  0x45   :  { %2347 = vmatpush1.bf16.msra.mxu0 %v6419_v6  ;;  %v6432_v15 = vld [vmem:[#allocation4 + $0x460] ss:$28 sps:$4 sm:$0xff]   ;;  %v6438_v19 = vld [vmem:[#allocation4 + $0x428] ss:$28 sps:$4 sm:$0xff]   ;;  %v6443_v22 = vld [vmem:[#allocation4 + $0x70] ss:$28 sps:$4 sm:$0xff]  }
  0x46   :  { %2460 = vmatpush1.bf16.msra.mxu1 %v6420_v7  ;;  %2348 = vmatprep.subr.bf16.mxu0 %v6421_v8  ;;  %v6444_v23 = vld [vmem:[#allocation4 + $0x3f0] ss:$28 sps:$4 sm:$0xff]   ;;  %v6445_v24 = vld [vmem:[#allocation4 + $0x3c] ss:$28 sps:$4 sm:$0xff]   ;;  %v6451_v28 = vld [vmem:[#allocation4 + $0x4] ss:$28 sps:$4 sm:$0xff]  }
  0x47   :  { %2461 = vmatprep.subr.bf16.mxu1 %v6423_v9  ;;  %v6447_v25 = vld [vmem:[#allocation4 + $0x3bc] ss:$28 sps:$4 sm:$0xff]   ;;  %v6453_v29 = vld [vmem:[#allocation4 + $0x384] ss:$28 sps:$4 sm:$0xff]   ;;  %v6457_v32 = vld [vmem:[#allocation4 + $0x34c] ss:$28 sps:$4 sm:$0xff]  }
  0x48   :  { %v6449_v26 = vld [vmem:[#allocation4 + $0x38] ss:$28 sps:$4 sm:$0xff]   ;;  %v6455_v30 = vld [vmem:[#allocation4] ss:$28 sps:$4 sm:$0xff]   ;;  %v6459_v33 = vld [vmem:[#allocation4 + $0x6cc] ss:$28 sps:$4 sm:$0xff]  }
  0x49   :  { %2349 = vmatpush1.bf16.msra.mxu0 %v6425_v10  ;;  %v6450_v27 = vld [vmem:[#allocation4 + $0x3b8] ss:$28 sps:$4 sm:$0xff]   ;;  %v6456_v31 = vld [vmem:[#allocation4 + $0x380] ss:$28 sps:$4 sm:$0xff]   ;;  %v6461_v34 = vld [vmem:[#allocation4 + $0x348] ss:$28 sps:$4 sm:$0xff]  }
  0x4a   :  { %2462 = vmatpush1.bf16.msra.mxu1 %v6426_v11  ;;  %2350 = vmatprep.subr.bf16.mxu0 %v6427_v12  ;;  %v6462_v35 = vld [vmem:[#allocation4 + $0x6c8] ss:$28 sps:$4 sm:$0xff]   ;;  %v6463_v36 = vld [vmem:[#allocation4 + $0x314] ss:$28 sps:$4 sm:$0xff]   ;;  %v6469_v40 = vld [vmem:[#allocation4 + $0x2dc] ss:$28 sps:$4 sm:$0xff]  }
  0x4b   :  { %2463 = vmatprep.subr.bf16.mxu1 %v6429_v13  ;;  %v6465_v37 = vld [vmem:[#allocation4 + $0x694] ss:$28 sps:$4 sm:$0xff]   ;;  %v6471_v41 = vld [vmem:[#allocation4 + $0x65c] ss:$28 sps:$4 sm:$0xff]   ;;  %v6475_v44 = vld [vmem:[#allocation4 + $0x2a4] ss:$28 sps:$4 sm:$0xff]  }
  0x4c   :  { %v6467_v38 = vld [vmem:[#allocation4 + $0x310] ss:$28 sps:$4 sm:$0xff]   ;;  %v6473_v42 = vld [vmem:[#allocation4 + $0x2d8] ss:$28 sps:$4 sm:$0xff]   ;;  %v6477_v45 = vld [vmem:[#allocation4 + $0x624] ss:$28 sps:$4 sm:$0xff]  }
  0x4d   :  { %2351 = vmatpush1.bf16.msra.mxu0 %v6431_v14  ;;  %v6468_v39 = vld [vmem:[#allocation4 + $0x690] ss:$28 sps:$4 sm:$0xff]   ;;  %v6474_v43 = vld [vmem:[#allocation4 + $0x658] ss:$28 sps:$4 sm:$0xff]   ;;  %v6479_v50 = vld [vmem:[#allocation4 + $0x2a0] ss:$28 sps:$4 sm:$0xff]  }
  0x4e   :  { %2464 = vmatpush1.bf16.msra.mxu1 %v6432_v15  ;;  %2352 = vmatprep.subr.bf16.mxu0 %v6433_v16  ;;  %v89_v46 = vld [vmem:[%s9310_s1 + $0x8] sm:$0xff]  ;;  %v95_v47 = vld [vmem:[%s9310_s1 + $0x38] sm:$0xff]  ;;  %v6487_v58 = vld [vmem:[#allocation4 + $0x234] ss:$28 sps:$4 sm:$0xff]   ;;  %vm5192_vm2 = vcmask 1041409   ;;  %vm5195_vm3 = vcmask 1042434  }
  0x4f   :  { %2465 = vmatprep.subr.bf16.mxu1 %v6435_v17  ;;  %v91_v48 = vld [vmem:[%s9310_s1 + $0x18] sm:$0xff]  ;;  %v97_v49 = vld [vmem:[%s9310_s1 + $0x48] sm:$0xff]  ;;  %v7186_v53 = vpack.c.bf16 %v95_v47, %v89_v46  ;;  %v6489_v59 = vld [vmem:[#allocation4 + $0x5b4] ss:$28 sps:$4 sm:$0xff]   ;;  %vm5198_vm4 = vcmask 1043459   ;;  %vm5201_vm5 = vcmask 1044484  }
  0x50   :  { %v6480_v51 = vld [vmem:[#allocation4 + $0x620] ss:$28 sps:$4 sm:$0xff]   ;;  %v6481_v52 = vld [vmem:[#allocation4 + $0x26c] ss:$28 sps:$4 sm:$0xff]   ;;  %v7188_v54 = vpack.c.bf16 %v97_v49, %v91_v48  ;;  %v6497_v0 = vld [vmem:[#allocation4 + $0x1f8] ss:$28 sps:$4 sm:$0xff]  }
  0x51   :  { %2353 = vmatpush1.bf16.msra.mxu0 %v6437_v18  ;;  %v6483_v55 = vld [vmem:[#allocation4 + $0x5ec] ss:$28 sps:$4 sm:$0xff]   ;;  %2376 = vmatprep.mubr.bf16.mxu0 %v7186_v53  ;;  %v6493_v62 = vld [vmem:[#allocation4 + $0x1fc] ss:$28 sps:$4 sm:$0xff]   ;;  %v6499_v2 = vld [vmem:[#allocation4 + $0x1c4] ss:$28 sps:$4 sm:$0xff]  }
  0x52   :  { %2466 = vmatpush1.bf16.msra.mxu1 %v6438_v19  ;;  %2354 = vmatprep.subr.bf16.mxu0 %v6439_v20  ;;  %9361 = vst [vmem:[#allocation15_spill] sm:$0xff] %v7188_v54  ;;  %v6485_v56 = vld [vmem:[#allocation4 + $0x268] ss:$28 sps:$4 sm:$0xff]   ;;  %v6491_v60 = vld [vmem:[#allocation4 + $0x230] ss:$28 sps:$4 sm:$0xff]   ;;  %v107_v15 = vld [vmem:[%s9310_s1 + $0x98] sm:$0xff] }
  0x53   :  { %2467 = vmatprep.subr.bf16.mxu1 %v6441_v21  ;;  %2489 = vmatprep.mubr.bf16.mxu1 %v7188_v54  ;;  %v6486_v57 = vld [vmem:[#allocation4 + $0x5e8] ss:$28 sps:$4 sm:$0xff]   ;;  %v6492_v61 = vld [vmem:[#allocation4 + $0x5b0] ss:$28 sps:$4 sm:$0xff]   ;;  %v6495_v63 = vld [vmem:[#allocation4 + $0x57c] ss:$28 sps:$4 sm:$0xff]  }
  0x54   :  { %v6498_v1 = vld [vmem:[#allocation4 + $0x578] ss:$28 sps:$4 sm:$0xff]   ;;  %v6501_v3 = vld [vmem:[#allocation4 + $0x544] ss:$28 sps:$4 sm:$0xff]   ;;  %v6507_v10 = vld [vmem:[#allocation4 + $0x88c] ss:$28 sps:$4 sm:$0xff]  }
  0x55   :  { %2355 = vmatpush1.bf16.msra.mxu0 %v6443_v22  ;;  %v6503_v4 = vld [vmem:[#allocation4 + $0x1c0] ss:$28 sps:$4 sm:$0xff]   ;;  %v94_v7 = vld [vmem:[%s9310_s1 + $0x30] sm:$0xff]  ;;  %v6505_v12 = vld [vmem:[#allocation4 + $0x888] ss:$28 sps:$4 sm:$0xff]   ;;  %vm5204_vm6 = vcmask 1045509  }
  0x56   :  { %2468 = vmatpush1.bf16.msra.mxu1 %v6444_v23  ;;  %2356 = vmatprep.subr.bf16.mxu0 %v6445_v24  ;;  %v6504_v5 = vld [vmem:[#allocation4 + $0x540] ss:$28 sps:$4 sm:$0xff]   ;;  %v90_v8 = vld [vmem:[%s9310_s1 + $0x10] sm:$0xff]  ;;  %v101_v14 = vld [vmem:[%s9310_s1 + $0x68] sm:$0xff]  ;;  %vm5207_vm7 = vcmask 1046534   ;;  %vm5210_vm8 = vcmask 1047559  }
  0x57   :  { %2469 = vmatprep.subr.bf16.mxu1 %v6447_v25  ;;  %v88_v6 = vld [vmem:[%s9310_s1] sm:$0xff]  ;;  %v6510_v11 = vld [vmem:[#allocation4 + $0x194] ss:$28 sps:$4 sm:$0xff]   ;;  %v103_v18 = vld [vmem:[%s9310_s1 + $0x78] sm:$0xff]  ;;  %v7220_v23 = vpack.c.bf16 %v107_v15, %v101_v14 }
  0x58   :  { %v96_v9 = vld [vmem:[%s9310_s1 + $0x40] sm:$0xff]  ;;  %v6508_v13 = vld [vmem:[#allocation4 + $0x190] ss:$28 sps:$4 sm:$0xff]   ;;  %v7210_v16 = vpack.c.bf16 %v94_v7, %v88_v6  ;;  %v6516_v21 = vld [vmem:[#allocation4 + $0x15c] ss:$28 sps:$4 sm:$0xff]  }
  0x59   :  { %2357 = vmatpush1.bf16.msra.mxu0 %v6449_v26  ;;  %v7212_v17 = vpack.c.bf16 %v96_v9, %v90_v8  ;;  %v109_v19 = vld [vmem:[%s9310_s1 + $0xa8] sm:$0xff]  ;;  %v6513_v20 = vld [vmem:[#allocation4 + $0x854] ss:$28 sps:$4 sm:$0xff]   ;;  %v100_v26 = vld [vmem:[%s9310_s1 + $0x60] sm:$0xff] }
  0x5a   :  { %2470 = vmatpush1.bf16.msra.mxu1 %v6450_v27  ;;  %2358 = vmatprep.subr.bf16.mxu0 %v6451_v28  ;;  %v6511_v22 = vld [vmem:[#allocation4 + $0x850] ss:$28 sps:$4 sm:$0xff]   ;;  %v7222_v24 = vpack.c.bf16 %v109_v19, %v103_v18  ;;  %v6514_v25 = vld [vmem:[#allocation4 + $0x158] ss:$28 sps:$4 sm:$0xff]   ;;  %v112_v46 = vld [vmem:[%s9310_s1 + $0xc0] sm:$0xff] }
  0x5b   :  { %2471 = vmatprep.subr.bf16.mxu1 %v6453_v29  ;;  %9362 = vst [vmem:[#allocation16_spill] sm:$0xff] %v7212_v17  ;;  %v106_v27 = vld [vmem:[%s9310_s1 + $0x90] sm:$0xff]  ;;  %v108_v29 = vld [vmem:[%s9310_s1 + $0xa0] sm:$0xff]  ;;  %v6543_v8 = vld [vmem:[#allocation4 + $0x73c] ss:$28 sps:$4 sm:$0xff]  }
  0x5c   :  { %9363 = vst [vmem:[#allocation17_spill] sm:$0xff] %v7222_v24  ;;  %v102_v28 = vld [vmem:[%s9310_s1 + $0x70] sm:$0xff]  ;;  %v120_v49 = vld [vmem:[%s9310_s1 + $0x100] sm:$0xff]  ;;  %v139_v18 = vld [vmem:[%s9310_s1 + $0x198] sm:$0xff] }
  0x5d   :  { %2359 = vmatpush1.bf16.msra.mxu0 %v6455_v30  ;;  %v6519_v30 = vld [vmem:[#allocation4 + $0x81c] ss:$28 sps:$4 sm:$0xff]   ;;  %v118_v47 = vld [vmem:[%s9310_s1 + $0xf0] sm:$0xff]  ;;  %v132_v7 = vld [vmem:[%s9310_s1 + $0x160] sm:$0xff] }
  0x5e   :  { %2472 = vmatpush1.bf16.msra.mxu1 %v6456_v31  ;;  %2360 = vmatprep.subr.bf16.mxu0 %v6457_v32  ;;  %v6522_v31 = vld [vmem:[#allocation4 + $0x124] ss:$28 sps:$4 sm:$0xff]   ;;  %v6517_v32 = vld [vmem:[#allocation4 + $0x818] ss:$28 sps:$4 sm:$0xff]   ;;  %v145_v19 = vld [vmem:[%s9310_s1 + $0x1c8] sm:$0xff] }
  0x5f   :  { %2473 = vmatprep.subr.bf16.mxu1 %v6459_v33  ;;  %v6520_v33 = vld [vmem:[#allocation4 + $0x120] ss:$28 sps:$4 sm:$0xff]   ;;  %v114_v48 = vld [vmem:[%s9310_s1 + $0xd0] sm:$0xff] }
  0x60   :  { %v126_v6 = vld [vmem:[%s9310_s1 + $0x130] sm:$0xff]  ;;  %v6546_v9 = vld [vmem:[#allocation4 + $0x44] ss:$28 sps:$4 sm:$0xff]  }
  0x61   :  { %2361 = vmatpush2.bf16.msra.mxu0 %v6461_v34  ;;  %v113_v34 = vld [vmem:[%s9310_s1 + $0xc8] sm:$0xff]  ;;  %v7320_v15 = vpack.c.bf16 %v132_v7, %v126_v6  ;;  %v163_v6 = vld [vmem:[%s9310_s1 + $0x258] sm:$0xff] }
  0x62   :  { %2474 = vmatpush2.bf16.msra.mxu1 %v6462_v35  ;;  %2362 = vmatprep.subr.bf16.mxu0 %v6463_v36  ;;  %v119_v35 = vld [vmem:[%s9310_s1 + $0xf8] sm:$0xff]  ;;  %v7246_v36 = vpack.c.bf16 %v106_v27, %v100_v26  ;;  %v7330_v26 = vpack.c.bf16 %v145_v19, %v139_v18  ;;  %v6550_v27 = vld [vmem:[#allocation4 + $0x8] ss:$28 sps:$4 sm:$0xff]   ;;  %v166_v19 = vld [vmem:[%s9310_s1 + $0x270] sm:$0xff] }
  0x63   :  { %2475 = vmatprep.subr.bf16.mxu1 %v6465_v37  ;;  %v7248_v37 = vpack.c.bf16 %v108_v29, %v102_v28  ;;  %9368 = vst [vmem:[#allocation22_spill] sm:$0xff] %v7320_v15  ;;  %v136_v28 = vld [vmem:[%s9310_s1 + $0x180] sm:$0xff]  ;;  %v142_v29 = vld [vmem:[%s9310_s1 + $0x1b0] sm:$0xff]  ;;  %v169_v7 = vld [vmem:[%s9310_s1 + $0x288] sm:$0xff] }
  0x64   :  { %9370 = vst [vmem:[#allocation24_spill] sm:$0xff] %v7330_v26  ;;  %v160_v18 = vld [vmem:[%s9310_s1 + $0x240] sm:$0xff] }
  0x65   :  { %2363 = vmatpush2.bf16.msra.mxu0 %v6467_v38  ;;  %9364 = vst [vmem:[#allocation18_spill] sm:$0xff] %v7248_v37  ;;  %v115_v38 = vld [vmem:[%s9310_s1 + $0xd8] sm:$0xff] }
  0x66   :  { %2476 = vmatpush2.bf16.msra.mxu1 %v6468_v39  ;;  %2364 = vmatprep.subr.bf16.mxu0 %v6469_v40  ;;  %v121_v39 = vld [vmem:[%s9310_s1 + $0x108] sm:$0xff]  ;;  %v6525_v40 = vld [vmem:[#allocation4 + $0x7e4] ss:$28 sps:$4 sm:$0xff]  }
  0x67   :  { %2477 = vmatprep.subr.bf16.mxu1 %v6471_v41  ;;  %v6528_v41 = vld [vmem:[#allocation4 + $0xec] ss:$28 sps:$4 sm:$0xff]  }
  0x69   :  { %2365 = vmatpush2.bf16.msra.mxu0 %v6473_v42  ;;  %v6523_v42 = vld [vmem:[#allocation4 + $0x7e0] ss:$28 sps:$4 sm:$0xff]  }
  0x6a   :  { %2478 = vmatpush2.bf16.msra.mxu1 %v6474_v43  ;;  %2366 = vmatprep.subr.bf16.mxu0 %v6475_v44  ;;  %v7256_v43 = vpack.c.bf16 %v119_v35, %v113_v34  ;;  %v7258_v44 = vpack.c.bf16 %v121_v39, %v115_v38  ;;  %v6553_v34 = vld [vmem:[#allocation4 + $0xa48] ss:$28 sps:$4 sm:$0xff]   ;;  %v6556_v35 = vld [vmem:[#allocation4 + $0x350] ss:$28 sps:$4 sm:$0xff]   ;;  %v155_v39 = vld [vmem:[%s9310_s1 + $0x218] sm:$0xff] }
  0x6b   :  { %2479 = vmatprep.subr.bf16.mxu1 %v6477_v45  ;;  %v6526_v45 = vld [vmem:[#allocation4 + $0xe8] ss:$28 sps:$4 sm:$0xff]  }
  0x6c   :  { %9365 = vst [vmem:[#allocation19_spill] sm:$0xff] %v7258_v44  ;;  %v149_v38 = vld [vmem:[%s9310_s1 + $0x1e8] sm:$0xff] }
  0x6d   :  { %2367 = vmatpush2.bf16.msra.mxu0 %v6479_v50  ;;  %v6531_v50 = vld [vmem:[#allocation4 + $0x7ac] ss:$28 sps:$4 sm:$0xff]  }
  0x6e   :  { %2480 = vmatpush2.bf16.msra.mxu1 %v6480_v51  ;;  %2368 = vmatprep.subr.bf16.mxu0 %v6481_v52  ;;  %v6534_v51 = vld [vmem:[#allocation4 + $0xb4] ss:$28 sps:$4 sm:$0xff]   ;;  %v6529_v52 = vld [vmem:[#allocation4 + $0x7a8] ss:$28 sps:$4 sm:$0xff]  }
  0x6f   :  { %2481 = vmatprep.subr.bf16.mxu1 %v6483_v55  ;;  %v6532_v55 = vld [vmem:[#allocation4 + $0xb0] ss:$28 sps:$4 sm:$0xff]  }
  0x71   :  { %2369 = vmatpush2.bf16.msra.mxu0 %v6485_v56  ;;  %v125_v56 = vld [vmem:[%s9310_s1 + $0x128] sm:$0xff] }
  0x72   :  { %2482 = vmatpush2.bf16.msra.mxu1 %v6486_v57  ;;  %2370 = vmatprep.subr.bf16.mxu0 %v6487_v58  ;;  %v131_v57 = vld [vmem:[%s9310_s1 + $0x158] sm:$0xff]  ;;  %v7282_v58 = vpack.c.bf16 %v118_v47, %v112_v46  ;;  %v6561_v46 = vld [vmem:[#allocation4 + $0xa14] ss:$28 sps:$4 sm:$0xff]  }
  0x73   :  { %2483 = vmatprep.subr.bf16.mxu1 %v6489_v59  ;;  %v7284_v59 = vpack.c.bf16 %v120_v49, %v114_v48  ;;  %v6564_v47 = vld [vmem:[#allocation4 + $0x31c] ss:$28 sps:$4 sm:$0xff]   ;;  %v6559_v48 = vld [vmem:[#allocation4 + $0xa10] ss:$28 sps:$4 sm:$0xff]   ;;  %v7364_v49 = vpack.c.bf16 %v155_v39, %v149_v38 }
  0x74   :  { %v6585_v38 = vld [vmem:[#allocation4 + $0x934] ss:$28 sps:$4 sm:$0xff]   ;;  %v6588_v39 = vld [vmem:[#allocation4 + $0x23c] ss:$28 sps:$4 sm:$0xff]  }
  0x75   :  { %2371 = vmatpush2.bf16.msra.mxu0 %v6491_v60  ;;  %9366 = vst [vmem:[#allocation20_spill] sm:$0xff] %v7284_v59  ;;  %v127_v60 = vld [vmem:[%s9310_s1 + $0x138] sm:$0xff]  ;;  %9372 = vst [vmem:[#allocation26_spill] sm:$0xff] %v7364_v49 }
  0x76   :  { %2484 = vmatpush2.bf16.msra.mxu1 %v6492_v61  ;;  %2372 = vmatprep.subr.bf16.mxu0 %v6493_v62  ;;  %v133_v61 = vld [vmem:[%s9310_s1 + $0x168] sm:$0xff]  ;;  %v6537_v62 = vld [vmem:[#allocation4 + $0x774] ss:$28 sps:$4 sm:$0xff]  }
  0x77   :  { %2485 = vmatprep.subr.bf16.mxu1 %v6495_v63  ;;  %v6540_v63 = vld [vmem:[#allocation4 + $0x7c] ss:$28 sps:$4 sm:$0xff]  }
  0x79   :  { %2373 = vmatpush2.bf16.msra.mxu0 %v6497_v0  ;;  %v6535_v0 = vld [vmem:[#allocation4 + $0x770] ss:$28 sps:$4 sm:$0xff]  }
  0x7a   :  { %2486 = vmatpush2.bf16.msra.mxu1 %v6498_v1  ;;  %2374 = vmatprep.subr.bf16.mxu0 %v6499_v2  ;;  %v7292_v1 = vpack.c.bf16 %v131_v57, %v125_v56  ;;  %v7294_v2 = vpack.c.bf16 %v133_v61, %v127_v60  ;;  %v150_v56 = vld [vmem:[%s9310_s1 + $0x1f0] sm:$0xff]  ;;  %v156_v57 = vld [vmem:[%s9310_s1 + $0x220] sm:$0xff]  ;;  %v6567_v60 = vld [vmem:[#allocation4 + $0x9dc] ss:$28 sps:$4 sm:$0xff]  }
  0x7b   :  { %2487 = vmatprep.subr.bf16.mxu1 %v6501_v3  ;;  %v6538_v3 = vld [vmem:[#allocation4 + $0x78] ss:$28 sps:$4 sm:$0xff]   ;;  %v6570_v61 = vld [vmem:[#allocation4 + $0x2e4] ss:$28 sps:$4 sm:$0xff]  }
  0x7c   :  { %9367 = vst [vmem:[#allocation21_spill] sm:$0xff] %v7294_v2 }
  0x7d   :  { %2375 = vmatpush2.bf16.msra.mxu0 %v6503_v4  ;;  %v124_v4 = vld [vmem:[%s9310_s1 + $0x120] sm:$0xff] }
  0x7e   :  { %2488 = vmatpush2.bf16.msra.mxu1 %v6504_v5  ;;  %2570 = vmatprep.subr.bf16.mxu0 %v6507_v10  ;;  %v130_v5 = vld [vmem:[%s9310_s1 + $0x150] sm:$0xff] }
  0x7f   :  { %2683 = vmatprep.subr.bf16.mxu1 %v6510_v11  ;;  %v6541_v10 = vld [vmem:[#allocation4 + $0x738] ss:$28 sps:$4 sm:$0xff]   ;;  %v6544_v11 = vld [vmem:[#allocation4 + $0x40] ss:$28 sps:$4 sm:$0xff]   ;;  %v7318_v14 = vpack.c.bf16 %v130_v5, %v124_v4  ;;  %v7392_v5 = vpack.c.bf16 %v156_v57, %v150_v56 }
  0x80   :  { %2377 = vmatmul.mubr.bf16.vlgmr.msra.gmra.mxu0 %v7210_v16  ;;  %v6591_v56 = vld [vmem:[#allocation4 + $0x8fc] ss:$28 sps:$4 sm:$0xff]   ;;  %v6594_v57 = vld [vmem:[#allocation4 + $0x204] ss:$28 sps:$4 sm:$0xff]  }
  0x81   :  { %2490 = vmatmul.mubr.bf16.vlgmr.msra.gmra.mxu1 %v7212_v17  ;;  %2571 = vmatpush1.bf16.msra.mxu0 %v6505_v12  ;;  %v137_v12 = vld [vmem:[%s9310_s1 + $0x188] sm:$0xff]  ;;  %9374 = vst [vmem:[#allocation28_spill] sm:$0xff] %v7392_v5 }
  0x82   :  { %2684 = vmatpush1.bf16.msra.mxu1 %v6508_v13  ;;  %2572 = vmatprep.subr.bf16.mxu0 %v6513_v20  ;;  %v143_v13 = vld [vmem:[%s9310_s1 + $0x1b8] sm:$0xff]  ;;  %v6549_v20 = vld [vmem:[#allocation4 + $0x704] ss:$28 sps:$4 sm:$0xff]  }
  0x83   :  { %2685 = vmatprep.subr.bf16.mxu1 %v6516_v21  ;;  %2386 = vmatprep.mubr.bf16.mxu0 %v7220_v23  ;;  %v6552_v21 = vld [vmem:[#allocation4 + $0xc] ss:$28 sps:$4 sm:$0xff]  }
  0x84   :  { %2499 = vmatprep.mubr.bf16.mxu1 %v7222_v24 }
  0x85   :  { %2573 = vmatpush1.bf16.msra.mxu0 %v6511_v22  ;;  %v6547_v22 = vld [vmem:[#allocation4 + $0x700] ss:$28 sps:$4 sm:$0xff]  }
  0x86   :  { %2686 = vmatpush1.bf16.msra.mxu1 %v6514_v25  ;;  %2574 = vmatprep.subr.bf16.mxu0 %v6519_v30  ;;  %v7328_v25 = vpack.c.bf16 %v143_v13, %v137_v12  ;;  %v138_v30 = vld [vmem:[%s9310_s1 + $0x190] sm:$0xff]  ;;  %v7402_v13 = vpack.c.bf16 %v169_v7, %v163_v6  ;;  %v6597_v6 = vld [vmem:[#allocation4 + $0x8c4] ss:$28 sps:$4 sm:$0xff]   ;;  %v6600_v7 = vld [vmem:[#allocation4 + $0x1cc] ss:$28 sps:$4 sm:$0xff]  }
  0x87   :  { %2687 = vmatprep.subr.bf16.mxu1 %v6522_v31  ;;  %v144_v31 = vld [vmem:[%s9310_s1 + $0x1c0] sm:$0xff] }
  0x88   :  { %2387 = vmatmul.mubr.bf16.gmra.mxu0 %v7246_v36  ;;  %9369 = vst [vmem:[#allocation23_spill] sm:$0xff] %v7328_v25  ;;  %9375 = vst [vmem:[#allocation29_spill] sm:$0xff] %v7402_v13 }
  0x89   :  { %2500 = vmatmul.mubr.bf16.gmra.mxu1 %v7248_v37  ;;  %2575 = vmatpush1.bf16.msra.mxu0 %v6517_v32  ;;  %v6555_v32 = vld [vmem:[#allocation4 + $0xa4c] ss:$28 sps:$4 sm:$0xff]  }
  0x8a   :  { %2688 = vmatpush1.bf16.msra.mxu1 %v6520_v33  ;;  %2576 = vmatprep.subr.bf16.mxu0 %v6525_v40  ;;  %v6558_v33 = vld [vmem:[#allocation4 + $0x354] ss:$28 sps:$4 sm:$0xff]   ;;  %v7354_v40 = vpack.c.bf16 %v142_v29, %v136_v28  ;;  %v6577_v28 = vld [vmem:[#allocation4 + $0x968] ss:$28 sps:$4 sm:$0xff]  }
  0x8b   :  { %2689 = vmatprep.subr.bf16.mxu1 %v6528_v41  ;;  %2396 = vmatprep.mubr.bf16.mxu0 %v7256_v43  ;;  %v7356_v41 = vpack.c.bf16 %v144_v31, %v138_v30  ;;  %v173_v29 = vld [vmem:[%s9310_s1 + $0x2a8] sm:$0xff]  ;;  %v179_v30 = vld [vmem:[%s9310_s1 + $0x2d8] sm:$0xff]  ;;  %v7426_v31 = vpack.c.bf16 %v166_v19, %v160_v18  ;;  %v98_v18 = vld [vmem:[%s9310_s1 + $0x50] sm:$0xff] }
  0x8c   :  { %2509 = vmatprep.mubr.bf16.mxu1 %v7258_v44  ;;  %v6603_v19 = vld [vmem:[#allocation4 + $0x514] ss:$28 sps:$4 sm:$0xff]  }
  0x8d   :  { %2577 = vmatpush1.bf16.msra.mxu0 %v6523_v42  ;;  %9371 = vst [vmem:[#allocation25_spill] sm:$0xff] %v7356_v41  ;;  %v151_v42 = vld [vmem:[%s9310_s1 + $0x1f8] sm:$0xff] }
  0x8e   :  { %2690 = vmatpush1.bf16.msra.mxu1 %v6526_v45  ;;  %2578 = vmatprep.subr.bf16.mxu0 %v6531_v50  ;;  %v157_v45 = vld [vmem:[%s9310_s1 + $0x228] sm:$0xff] }
  0x8f   :  { %2691 = vmatprep.subr.bf16.mxu1 %v6534_v51  ;;  %v7366_v50 = vpack.c.bf16 %v157_v45, %v151_v42  ;;  %v6562_v51 = vld [vmem:[#allocation4 + $0x318] ss:$28 sps:$4 sm:$0xff]   ;;  %v6583_v42 = vld [vmem:[#allocation4 + $0x930] ss:$28 sps:$4 sm:$0xff]  }
  0x90   :  { %2397 = vmatmul.mubr.bf16.gmra.mxu0 %v7282_v58  ;;  %v6586_v45 = vld [vmem:[#allocation4 + $0x238] ss:$28 sps:$4 sm:$0xff]  }
  0x91   :  { %2510 = vmatmul.mubr.bf16.gmra.mxu1 %v7284_v59  ;;  %2579 = vmatpush1.bf16.msra.mxu0 %v6529_v52  ;;  %9373 = vst [vmem:[#allocation27_spill] sm:$0xff] %v7366_v50  ;;  %v148_v52 = vld [vmem:[%s9310_s1 + $0x1e0] sm:$0xff] }
  0x92   :  { %2692 = vmatpush1.bf16.msra.mxu1 %v6532_v55  ;;  %2580 = vmatprep.subr.bf16.mxu0 %v6537_v62  ;;  %v154_v55 = vld [vmem:[%s9310_s1 + $0x210] sm:$0xff] }
  0x93   :  { %2693 = vmatprep.subr.bf16.mxu1 %v6540_v63  ;;  %2406 = vmatprep.mubr.bf16.mxu0 %v7292_v1  ;;  %v6565_v62 = vld [vmem:[#allocation4 + $0x9d8] ss:$28 sps:$4 sm:$0xff]   ;;  %v6568_v63 = vld [vmem:[#allocation4 + $0x2e0] ss:$28 sps:$4 sm:$0xff]   ;;  %v7390_v4 = vpack.c.bf16 %v154_v55, %v148_v52 }
  0x94   :  { %2519 = vmatprep.mubr.bf16.mxu1 %v7294_v2  ;;  %v174_v52 = vld [vmem:[%s9310_s1 + $0x2b0] sm:$0xff]  ;;  %v180_v55 = vld [vmem:[%s9310_s1 + $0x2e0] sm:$0xff] }
  0x95   :  { %2581 = vmatpush1.bf16.msra.mxu0 %v6535_v0  ;;  %v161_v0 = vld [vmem:[%s9310_s1 + $0x248] sm:$0xff] }
  0x96   :  { %2694 = vmatpush1.bf16.msra.mxu1 %v6538_v3  ;;  %2582 = vmatprep.subr.bf16.mxu0 %v6543_v8  ;;  %v167_v3 = vld [vmem:[%s9310_s1 + $0x278] sm:$0xff]  ;;  %v6573_v8 = vld [vmem:[#allocation4 + $0x9a4] ss:$28 sps:$4 sm:$0xff]  }
  0x97   :  { %2695 = vmatprep.subr.bf16.mxu1 %v6546_v9  ;;  %v6576_v9 = vld [vmem:[#allocation4 + $0x2ac] ss:$28 sps:$4 sm:$0xff]   ;;  %v7400_v12 = vpack.c.bf16 %v167_v3, %v161_v0  ;;  %v6589_v0 = vld [vmem:[#allocation4 + $0x8f8] ss:$28 sps:$4 sm:$0xff]   ;;  %v6592_v3 = vld [vmem:[#allocation4 + $0x200] ss:$28 sps:$4 sm:$0xff]  }
  0x98   :  { %2407 = vmatmul.mubr.bf16.gmra.mxu0 %v7318_v14 }
  0x99   :  { %2520 = vmatmul.mubr.bf16.gmra.mxu1 %v7320_v15  ;;  %2583 = vmatpush1.bf16.msra.mxu0 %v6541_v10  ;;  %v6571_v10 = vld [vmem:[#allocation4 + $0x9a0] ss:$28 sps:$4 sm:$0xff]  }
  0x9a   :  { %2696 = vmatpush1.bf16.msra.mxu1 %v6544_v11  ;;  %2584 = vmatprep.subr.bf16.mxu0 %v6549_v20  ;;  %v6574_v11 = vld [vmem:[#allocation4 + $0x2a8] ss:$28 sps:$4 sm:$0xff]   ;;  %v162_v20 = vld [vmem:[%s9310_s1 + $0x250] sm:$0xff] }
  0x9b   :  { %2697 = vmatprep.subr.bf16.mxu1 %v6552_v21  ;;  %2416 = vmatprep.mubr.bf16.mxu0 %v7328_v25  ;;  %v168_v21 = vld [vmem:[%s9310_s1 + $0x280] sm:$0xff] }
  0x9c   :  { %2529 = vmatprep.mubr.bf16.mxu1 %v7330_v26 }
  0x9d   :  { %2585 = vmatpush1.bf16.msra.mxu0 %v6547_v22  ;;  %v6579_v22 = vld [vmem:[#allocation4 + $0x96c] ss:$28 sps:$4 sm:$0xff]  }
  0x9e   :  { %2698 = vmatpush1.bf16.msra.mxu1 %v6550_v27  ;;  %2586 = vmatprep.subr.bf16.mxu0 %v6555_v32  ;;  %v6582_v27 = vld [vmem:[#allocation4 + $0x274] ss:$28 sps:$4 sm:$0xff]   ;;  %v7428_v32 = vpack.c.bf16 %v168_v21, %v162_v20 }
  0x9f   :  { %2699 = vmatprep.subr.bf16.mxu1 %v6558_v33  ;;  %v175_v33 = vld [vmem:[%s9310_s1 + $0x2b8] sm:$0xff]  ;;  %v6606_v20 = vld [vmem:[#allocation4 + $0x894] ss:$28 sps:$4 sm:$0xff]  }
  0xa0   :  { %2417 = vmatmul.mubr.bf16.gmra.mxu0 %v7354_v40  ;;  %9376 = vst [vmem:[#allocation30_spill] sm:$0xff] %v7428_v32  ;;  %v6601_v21 = vld [vmem:[#allocation4 + $0x510] ss:$28 sps:$4 sm:$0xff]  }
  0xa1   :  { %2530 = vmatmul.mubr.bf16.gmra.mxu1 %v7356_v41  ;;  %2587 = vmatpush2.bf16.msra.mxu0 %v6553_v34  ;;  %v181_v34 = vld [vmem:[%s9310_s1 + $0x2e8] sm:$0xff] }
  0xa2   :  { %2700 = vmatpush2.bf16.msra.mxu1 %v6556_v35  ;;  %2588 = vmatprep.subr.bf16.mxu0 %v6561_v46  ;;  %v6580_v35 = vld [vmem:[#allocation4 + $0x270] ss:$28 sps:$4 sm:$0xff]   ;;  %v7436_v46 = vpack.c.bf16 %v179_v30, %v173_v29  ;;  %v111_v29 = vld [vmem:[%s9310_s1 + $0xb8] sm:$0xff] }
  0xa3   :  { %2701 = vmatprep.subr.bf16.mxu1 %v6564_v47  ;;  %2426 = vmatprep.mubr.bf16.mxu0 %v7364_v49  ;;  %v7438_v47 = vpack.c.bf16 %v181_v34, %v175_v33  ;;  %v6609_v30 = vld [vmem:[#allocation4 + $0x4dc] ss:$28 sps:$4 sm:$0xff]  }
  0xa4   :  { %2539 = vmatprep.mubr.bf16.mxu1 %v7366_v50  ;;  %9377 = vst [vmem:[#allocation31_spill] sm:$0xff] %v7436_v46  ;;  %v6612_v33 = vld [vmem:[#allocation4 + $0x85c] ss:$28 sps:$4 sm:$0xff]  }
  0xa5   :  { %2589 = vmatpush2.bf16.msra.mxu0 %v6559_v48  ;;  %9378 = vst [vmem:[#allocation32_spill] sm:$0xff] %v7438_v47  ;;  %v172_v48 = vld [vmem:[%s9310_s1 + $0x2a0] sm:$0xff]  ;;  %v6607_v34 = vld [vmem:[#allocation4 + $0x4d8] ss:$28 sps:$4 sm:$0xff]  }
  0xa6   :  { %2702 = vmatpush2.bf16.msra.mxu1 %v6562_v51  ;;  %2590 = vmatprep.subr.bf16.mxu0 %v6567_v60  ;;  %v178_v51 = vld [vmem:[%s9310_s1 + $0x2d0] sm:$0xff] }
  0xa7   :  { %2703 = vmatprep.subr.bf16.mxu1 %v6570_v61  ;;  %v7456_v60 = vpack.c.bf16 %v178_v51, %v172_v48  ;;  %v7458_v61 = vpack.c.bf16 %v180_v55, %v174_v52  ;;  %v6618_v48 = vld [vmem:[#allocation4 + $0x824] ss:$28 sps:$4 sm:$0xff]  }
  0xa8   :  { %2427 = vmatmul.mubr.bf16.gmra.mxu0 %v7390_v4  ;;  %v6613_v51 = vld [vmem:[#allocation4 + $0x4a0] ss:$28 sps:$4 sm:$0xff]  }
  0xa9   :  { %2540 = vmatmul.mubr.bf16.gmra.mxu1 %v7392_v5  ;;  %2591 = vmatpush2.bf16.msra.mxu0 %v6565_v62  ;;  %9379 = vst [vmem:[#allocation33_spill] sm:$0xff] %v7456_v60  ;;  %9380 = vst [vmem:[#allocation34_spill] sm:$0xff] %v7458_v61  ;;  %v93_v62 = vld [vmem:[%s9310_s1 + $0x28] sm:$0xff]  ;;  %v6616_v52 = vld [vmem:[#allocation4 + $0x820] ss:$28 sps:$4 sm:$0xff]  }
  0xaa   :  { %2704 = vmatpush2.bf16.msra.mxu1 %v6568_v63  ;;  %2592 = vmatprep.subr.bf16.mxu0 %v6573_v8  ;;  %v99_v63 = vld [vmem:[%s9310_s1 + $0x58] sm:$0xff] }
  0xab   :  { %2705 = vmatprep.subr.bf16.mxu1 %v6576_v9  ;;  %2436 = vmatprep.mubr.bf16.mxu0 %v7400_v12  ;;  %v6595_v8 = vld [vmem:[#allocation4 + $0x8c0] ss:$28 sps:$4 sm:$0xff]   ;;  %v6598_v9 = vld [vmem:[#allocation4 + $0x1c8] ss:$28 sps:$4 sm:$0xff]  }
  0xac   :  { %2549 = vmatprep.mubr.bf16.mxu1 %v7402_v13 }
  0xad   :  { %2593 = vmatpush2.bf16.msra.mxu0 %v6571_v10  ;;  %v7466_v10 = vpack.c.bf16 %v99_v63, %v93_v62  ;;  %v6621_v62 = vld [vmem:[#allocation4 + $0x46c] ss:$28 sps:$4 sm:$0xff]  }
  0xae   :  { %2706 = vmatpush2.bf16.msra.mxu1 %v6574_v11  ;;  %2594 = vmatprep.subr.bf16.mxu0 %v6579_v22  ;;  %v92_v11 = vld [vmem:[%s9310_s1 + $0x20] sm:$0xff]  ;;  %v6624_v63 = vld [vmem:[#allocation4 + $0x7ec] ss:$28 sps:$4 sm:$0xff]  }
  0xaf   :  { %2707 = vmatprep.subr.bf16.mxu1 %v6582_v27  ;;  %9381 = vst [vmem:[#allocation35_spill] sm:$0xff] %v7466_v10  ;;  %v7478_v22 = vpack.c.bf16 %v98_v18, %v92_v11  ;;  %v6604_v27 = vld [vmem:[#allocation4 + $0x890] ss:$28 sps:$4 sm:$0xff]  }
  0xb0   :  { %2437 = vmatmul.mubr.bf16.gmra.mxu0 %v7426_v31  ;;  %v6630_v11 = vld [vmem:[#allocation4 + $0x7b4] ss:$28 sps:$4 sm:$0xff]  }
  0xb1   :  { %2550 = vmatmul.mubr.bf16.gmra.mxu1 %v7428_v32  ;;  %2595 = vmatpush2.bf16.msra.mxu0 %v6577_v28  ;;  %v105_v28 = vld [vmem:[%s9310_s1 + $0x88] sm:$0xff] }
  0xb2   :  { %2708 = vmatpush2.bf16.msra.mxu1 %v6580_v35  ;;  %2596 = vmatprep.subr.bf16.mxu0 %v6585_v38  ;;  %v7486_v35 = vpack.c.bf16 %v111_v29, %v105_v28  ;;  %v6610_v38 = vld [vmem:[#allocation4 + $0x858] ss:$28 sps:$4 sm:$0xff]   ;;  %v6625_v18 = vld [vmem:[#allocation4 + $0x430] ss:$28 sps:$4 sm:$0xff]  }
  0xb3   :  { %2709 = vmatprep.subr.bf16.mxu1 %v6588_v39  ;;  %2446 = vmatprep.mubr.bf16.mxu0 %v7436_v46  ;;  %v104_v39 = vld [vmem:[%s9310_s1 + $0x80] sm:$0xff]  ;;  %v6633_v28 = vld [vmem:[#allocation4 + $0x3fc] ss:$28 sps:$4 sm:$0xff]  }
  0xb4   :  { %2559 = vmatprep.mubr.bf16.mxu1 %v7438_v47  ;;  %v6636_v29 = vld [vmem:[#allocation4 + $0x77c] ss:$28 sps:$4 sm:$0xff]  }
  0xb5   :  { %2597 = vmatpush2.bf16.msra.mxu0 %v6583_v42  ;;  %v110_v42 = vld [vmem:[%s9310_s1 + $0xb0] sm:$0xff] }
  0xb6   :  { %2710 = vmatpush2.bf16.msra.mxu1 %v6586_v45  ;;  %2598 = vmatprep.subr.bf16.mxu0 %v6591_v56  ;;  %v6615_v45 = vld [vmem:[#allocation4 + $0x4a4] ss:$28 sps:$4 sm:$0xff]   ;;  %v7498_v55 = vpack.c.bf16 %v110_v42, %v104_v39  ;;  %v117_v56 = vld [vmem:[%s9310_s1 + $0xe8] sm:$0xff]  ;;  %v134_v39 = vld [vmem:[%s9310_s1 + $0x170] sm:$0xff] }
  0xb7   :  { %2711 = vmatprep.subr.bf16.mxu1 %v6594_v57  ;;  %v123_v57 = vld [vmem:[%s9310_s1 + $0x118] sm:$0xff]  ;;  %v6639_v42 = vld [vmem:[#allocation4 + $0x3c4] ss:$28 sps:$4 sm:$0xff]  }
  0xb8   :  { %2447 = vmatmul.mubr.bf16.gmra.mxu0 %v7456_v60 }
  0xb9   :  { %2560 = vmatmul.mubr.bf16.gmra.mxu1 %v7458_v61  ;;  %2599 = vmatpush2.bf16.msra.mxu0 %v6589_v0  ;;  %v7506_v0 = vpack.c.bf16 %v123_v57, %v117_v56  ;;  %v147_v56 = vld [vmem:[%s9310_s1 + $0x1d8] sm:$0xff] }
  0xba   :  { %2712 = vmatpush2.bf16.msra.mxu1 %v6592_v3  ;;  %2600 = vmatprep.subr.bf16.mxu0 %v6597_v6  ;;  %v6619_v3 = vld [vmem:[#allocation4 + $0x468] ss:$28 sps:$4 sm:$0xff]   ;;  %v6640_v57 = vld [vmem:[#allocation4 + $0x740] ss:$28 sps:$4 sm:$0xff]  }
  0xbb   :  { %2713 = vmatprep.subr.bf16.mxu1 %v6600_v7  ;;  %2602 = vmatprep.mubr.bf16.mxu0 %v7466_v10  ;;  %v6622_v6 = vld [vmem:[#allocation4 + $0x7e8] ss:$28 sps:$4 sm:$0xff]  }
  0xbc   :  { %2715 = vmatprep.mubr.bf16.mxu1 %v7186_v53  ;;  %v116_v7 = vld [vmem:[%s9310_s1 + $0xe0] sm:$0xff] }
  0xbd   :  { %2601 = vmatpush2.bf16.msra.mxu0 %v6595_v8  ;;  %v122_v8 = vld [vmem:[%s9310_s1 + $0x110] sm:$0xff] }
  0xbe   :  { %2714 = vmatpush2.bf16.msra.mxu1 %v6598_v9  ;;  %2796 = vmatprep.subr.bf16.mxu0 %v6603_v19  ;;  %v6627_v9 = vld [vmem:[#allocation4 + $0x434] ss:$28 sps:$4 sm:$0xff]  }
  0xbf   :  { %2909 = vmatprep.subr.bf16.mxu1 %v6606_v20  ;;  %v6628_v19 = vld [vmem:[#allocation4 + $0x7b0] ss:$28 sps:$4 sm:$0xff]   ;;  %v7518_v20 = vpack.c.bf16 %v122_v8, %v116_v7  ;;  %v140_v8 = vld [vmem:[%s9310_s1 + $0x1a0] sm:$0xff] }
  0xc0   :  { %2603 = vmatmul.mubr.bf16.vlgmr.msra.gmra.mxu0 %v7478_v22 }
  0xc1   :  { %2716 = vmatmul.mubr.bf16.vlgmr.msra.gmra.mxu1 %v7210_v16  ;;  %2797 = vmatpush1.bf16.msra.mxu0 %v6601_v21  ;;  %v129_v21 = vld [vmem:[%s9310_s1 + $0x148] sm:$0xff] }
  0xc2   :  { %2910 = vmatpush1.bf16.msra.mxu1 %v6604_v27  ;;  %2798 = vmatprep.subr.bf16.mxu0 %v6609_v30  ;;  %v135_v27 = vld [vmem:[%s9310_s1 + $0x178] sm:$0xff] }
  0xc3   :  { %2911 = vmatprep.subr.bf16.mxu1 %v6612_v33  ;;  %2612 = vmatprep.mubr.bf16.mxu0 %v7486_v35  ;;  %v6631_v30 = vld [vmem:[#allocation4 + $0x3f8] ss:$28 sps:$4 sm:$0xff]   ;;  %v7526_v33 = vpack.c.bf16 %v135_v27, %v129_v21  ;;  %v6652_v21 = vld [vmem:[#allocation4 + $0xa50] ss:$28 sps:$4 sm:$0xff]  }
  0xc4   :  { %2725 = vmatprep.mubr.bf16.mxu1 %v7220_v23 }
  0xc5   :  { %2799 = vmatpush1.bf16.msra.mxu0 %v6607_v34  ;;  %v6634_v34 = vld [vmem:[#allocation4 + $0x778] ss:$28 sps:$4 sm:$0xff]  }
  0xc6   :  { %2912 = vmatpush1.bf16.msra.mxu1 %v6610_v38  ;;  %2800 = vmatprep.subr.bf16.mxu0 %v6615_v45  ;;  %v128_v38 = vld [vmem:[%s9310_s1 + $0x140] sm:$0xff] }
  0xc7   :  { %2913 = vmatprep.subr.bf16.mxu1 %v6618_v48  ;;  %v6642_v45 = vld [vmem:[#allocation4 + $0x744] ss:$28 sps:$4 sm:$0xff]  }
  0xc8   :  { %2613 = vmatmul.mubr.bf16.gmra.mxu0 %v7498_v55  ;;  %v6637_v48 = vld [vmem:[#allocation4 + $0x3c0] ss:$28 sps:$4 sm:$0xff]  }
  0xc9   :  { %2726 = vmatmul.mubr.bf16.gmra.mxu1 %v7246_v36  ;;  %2801 = vmatpush1.bf16.msra.mxu0 %v6613_v51  ;;  %v7538_v51 = vpack.c.bf16 %v134_v39, %v128_v38  ;;  %v6655_v38 = vld [vmem:[#allocation4 + $0x698] ss:$28 sps:$4 sm:$0xff]  }
  0xca   :  { %2914 = vmatpush1.bf16.msra.mxu1 %v6616_v52  ;;  %2802 = vmatprep.subr.bf16.mxu0 %v6621_v62  ;;  %v141_v52 = vld [vmem:[%s9310_s1 + $0x1a8] sm:$0xff]  ;;  %v6658_v39 = vld [vmem:[#allocation4 + $0xa18] ss:$28 sps:$4 sm:$0xff]  }
  0xcb   :  { %2915 = vmatprep.subr.bf16.mxu1 %v6624_v63  ;;  %2622 = vmatprep.mubr.bf16.mxu0 %v7506_v0  ;;  %v6645_v62 = vld [vmem:[#allocation4 + $0x38c] ss:$28 sps:$4 sm:$0xff]   ;;  %v7546_v7 = vpack.c.bf16 %v147_v56, %v141_v52  ;;  %v6663_v52 = vld [vmem:[#allocation4 + $0x664] ss:$28 sps:$4 sm:$0xff]  }
  0xcc   :  { %2735 = vmatprep.mubr.bf16.mxu1 %v7256_v43  ;;  %v6648_v63 = vld [vmem:[#allocation4 + $0x70c] ss:$28 sps:$4 sm:$0xff]   ;;  %v6666_v56 = vld [vmem:[#allocation4 + $0x9e4] ss:$28 sps:$4 sm:$0xff]  }
  0xcd   :  { %2803 = vmatpush1.bf16.msra.mxu0 %v6619_v3  ;;  %v6643_v3 = vld [vmem:[#allocation4 + $0x388] ss:$28 sps:$4 sm:$0xff]  }
  0xce   :  { %2916 = vmatpush1.bf16.msra.mxu1 %v6622_v6  ;;  %2804 = vmatprep.subr.bf16.mxu0 %v6627_v9  ;;  %v6646_v6 = vld [vmem:[#allocation4 + $0x708] ss:$28 sps:$4 sm:$0xff]   ;;  %v146_v9 = vld [vmem:[%s9310_s1 + $0x1d0] sm:$0xff] }
  0xcf   :  { %2917 = vmatprep.subr.bf16.mxu1 %v6630_v11  ;;  %v6651_v11 = vld [vmem:[#allocation4 + $0x6d4] ss:$28 sps:$4 sm:$0xff]   ;;  %v7558_v27 = vpack.c.bf16 %v146_v9, %v140_v8  ;;  %v6669_v8 = vld [vmem:[#allocation4 + $0x62c] ss:$28 sps:$4 sm:$0xff]  }
  0xd0   :  { %2623 = vmatmul.mubr.bf16.gmra.mxu0 %v7518_v20  ;;  %v6672_v9 = vld [vmem:[#allocation4 + $0x9ac] ss:$28 sps:$4 sm:$0xff]  }
  0xd1   :  { %2736 = vmatmul.mubr.bf16.gmra.mxu1 %v7282_v58  ;;  %2805 = vmatpush1.bf16.msra.mxu0 %v6625_v18  ;;  %v6654_v18 = vld [vmem:[#allocation4 + $0xa54] ss:$28 sps:$4 sm:$0xff]   ;;  %9382 = vst [vmem:[#allocation36_spill] sm:$0xff] %v7558_v27 }
  0xd2   :  { %2918 = vmatpush1.bf16.msra.mxu1 %v6628_v19  ;;  %2806 = vmatprep.subr.bf16.mxu0 %v6633_v28  ;;  %v6649_v19 = vld [vmem:[#allocation4 + $0x6d0] ss:$28 sps:$4 sm:$0xff]  }
  0xd3   :  { %2919 = vmatprep.subr.bf16.mxu1 %v6636_v29  ;;  %2632 = vmatprep.mubr.bf16.mxu0 %v7526_v33  ;;  %v153_v28 = vld [vmem:[%s9310_s1 + $0x208] sm:$0xff]  ;;  %v159_v29 = vld [vmem:[%s9310_s1 + $0x238] sm:$0xff] }
  0xd4   :  { %2745 = vmatprep.mubr.bf16.mxu1 %v7292_v1 }
  0xd5   :  { %2807 = vmatpush1.bf16.msra.mxu0 %v6631_v30  ;;  %v6657_v30 = vld [vmem:[#allocation4 + $0x69c] ss:$28 sps:$4 sm:$0xff]  }
  0xd6   :  { %2920 = vmatpush1.bf16.msra.mxu1 %v6634_v34  ;;  %2808 = vmatprep.subr.bf16.mxu0 %v6639_v42  ;;  %v6660_v34 = vld [vmem:[#allocation4 + $0xa1c] ss:$28 sps:$4 sm:$0xff]   ;;  %v7566_v42 = vpack.c.bf16 %v159_v29, %v153_v28  ;;  %v170_v28 = vld [vmem:[%s9310_s1 + $0x290] sm:$0xff] }
  0xd7   :  { %2921 = vmatprep.subr.bf16.mxu1 %v6642_v45  ;;  %v152_v45 = vld [vmem:[%s9310_s1 + $0x200] sm:$0xff]  ;;  %v6675_v29 = vld [vmem:[#allocation4 + $0x5f4] ss:$28 sps:$4 sm:$0xff]  }
  0xd8   :  { %2633 = vmatmul.mubr.bf16.gmra.mxu0 %v7538_v51  ;;  %9383 = vst [vmem:[#allocation37_spill] sm:$0xff] %v7566_v42 }
  0xd9   :  { %2746 = vmatmul.mubr.bf16.gmra.mxu1 %v7318_v14  ;;  %2809 = vmatpush1.bf16.msra.mxu0 %v6637_v48  ;;  %v158_v48 = vld [vmem:[%s9310_s1 + $0x230] sm:$0xff] }
  0xda   :  { %2922 = vmatpush1.bf16.msra.mxu1 %v6640_v57  ;;  %2810 = vmatprep.subr.bf16.mxu0 %v6645_v62  ;;  %v6661_v57 = vld [vmem:[#allocation4 + $0x660] ss:$28 sps:$4 sm:$0xff]  }
  0xdb   :  { %2923 = vmatprep.subr.bf16.mxu1 %v6648_v63  ;;  %2642 = vmatprep.mubr.bf16.mxu0 %v7546_v7  ;;  %v6664_v62 = vld [vmem:[#allocation4 + $0x9e0] ss:$28 sps:$4 sm:$0xff]   ;;  %v7578_v63 = vpack.c.bf16 %v158_v48, %v152_v45  ;;  %v177_v45 = vld [vmem:[%s9310_s1 + $0x2c8] sm:$0xff] }
  0xdc   :  { %2755 = vmatprep.mubr.bf16.mxu1 %v7328_v25  ;;  %v183_v48 = vld [vmem:[%s9310_s1 + $0x2f8] sm:$0xff] }
  0xdd   :  { %2811 = vmatpush1.bf16.msra.mxu0 %v6643_v3  ;;  %9384 = vst [vmem:[#allocation38_spill] sm:$0xff] %v7578_v63  ;;  %v165_v3 = vld [vmem:[%s9310_s1 + $0x268] sm:$0xff] }
  0xde   :  { %2924 = vmatpush1.bf16.msra.mxu1 %v6646_v6  ;;  %2812 = vmatprep.subr.bf16.mxu0 %v6651_v11  ;;  %v171_v6 = vld [vmem:[%s9310_s1 + $0x298] sm:$0xff]  ;;  %v6667_v11 = vld [vmem:[#allocation4 + $0x628] ss:$28 sps:$4 sm:$0xff]  }
  0xdf   :  { %2925 = vmatprep.subr.bf16.mxu1 %v6654_v18  ;;  %v6670_v18 = vld [vmem:[#allocation4 + $0x9a8] ss:$28 sps:$4 sm:$0xff]  }
  0xe0   :  { %2643 = vmatmul.mubr.bf16.gmra.mxu0 %v7558_v27 }
  0xe1   :  { %2756 = vmatmul.mubr.bf16.gmra.mxu1 %v7354_v40  ;;  %2813 = vmatpush2.bf16.msra.mxu0 %v6649_v19  ;;  %v7586_v19 = vpack.c.bf16 %v171_v6, %v165_v3  ;;  %v7606_v3 = vpack.c.bf16 %v183_v48, %v177_v45  ;;  %v176_v6 = vld [vmem:[%s9310_s1 + $0x2c0] sm:$0xff]  ;;  %v6699_v45 = vld [vmem:[#allocation4 + $0x19c] ss:$28 sps:$4 sm:$0xff]  }
  0xe2   :  { %2926 = vmatpush2.bf16.msra.mxu1 %v6652_v21  ;;  %2814 = vmatprep.subr.bf16.mxu0 %v6657_v30  ;;  %v164_v21 = vld [vmem:[%s9310_s1 + $0x260] sm:$0xff]  ;;  %v6678_v30 = vld [vmem:[#allocation4 + $0x974] ss:$28 sps:$4 sm:$0xff]   ;;  %v6702_v48 = vld [vmem:[#allocation4 + $0x51c] ss:$28 sps:$4 sm:$0xff]  }
  0xe3   :  { %2927 = vmatprep.subr.bf16.mxu1 %v6660_v34  ;;  %2652 = vmatprep.mubr.bf16.mxu0 %v7566_v42  ;;  %9385 = vst [vmem:[#allocation39_spill] sm:$0xff] %v7586_v19  ;;  %v6673_v34 = vld [vmem:[#allocation4 + $0x5f0] ss:$28 sps:$4 sm:$0xff]   ;;  %9387 = vst [vmem:[#allocation41_spill] sm:$0xff] %v7606_v3 }
  0xe4   :  { %2765 = vmatprep.mubr.bf16.mxu1 %v7364_v49 }
  0xe5   :  { %2815 = vmatpush2.bf16.msra.mxu0 %v6655_v38  ;;  %v6676_v38 = vld [vmem:[#allocation4 + $0x970] ss:$28 sps:$4 sm:$0xff]  }
  0xe6   :  { %2928 = vmatpush2.bf16.msra.mxu1 %v6658_v39  ;;  %2816 = vmatprep.subr.bf16.mxu0 %v6663_v52  ;;  %v7598_v39 = vpack.c.bf16 %v170_v28, %v164_v21  ;;  %v6681_v52 = vld [vmem:[#allocation4 + $0x5bc] ss:$28 sps:$4 sm:$0xff]  }
  0xe7   :  { %2929 = vmatprep.subr.bf16.mxu1 %v6666_v56  ;;  %v6684_v56 = vld [vmem:[#allocation4 + $0x93c] ss:$28 sps:$4 sm:$0xff]  }
  0xe8   :  { %2653 = vmatmul.mubr.bf16.gmra.mxu0 %v7578_v63  ;;  %9386 = vst [vmem:[#allocation40_spill] sm:$0xff] %v7598_v39  ;;  %v6685_v21 = vld [vmem:[#allocation4 + $0x580] ss:$28 sps:$4 sm:$0xff]  }
  0xe9   :  { %2766 = vmatmul.mubr.bf16.gmra.mxu1 %v7390_v4  ;;  %2817 = vmatpush2.bf16.msra.mxu0 %v6661_v57  ;;  %v6679_v57 = vld [vmem:[#allocation4 + $0x5b8] ss:$28 sps:$4 sm:$0xff]   ;;  %v6688_v28 = vld [vmem:[#allocation4 + $0x900] ss:$28 sps:$4 sm:$0xff]  }
  0xea   :  { %2930 = vmatpush2.bf16.msra.mxu1 %v6664_v62  ;;  %2818 = vmatprep.subr.bf16.mxu0 %v6669_v8  ;;  %v6682_v62 = vld [vmem:[#allocation4 + $0x938] ss:$28 sps:$4 sm:$0xff]  }
  0xeb   :  { %2931 = vmatprep.subr.bf16.mxu1 %v6672_v9  ;;  %2662 = vmatprep.mubr.bf16.mxu0 %v7586_v19  ;;  %v182_v8 = vld [vmem:[%s9310_s1 + $0x2f0] sm:$0xff]  ;;  %v6687_v9 = vld [vmem:[#allocation4 + $0x584] ss:$28 sps:$4 sm:$0xff]  }
  0xec   :  { %2775 = vmatprep.mubr.bf16.mxu1 %v7400_v12 }
  0xed   :  { %2819 = vmatpush2.bf16.msra.mxu0 %v6667_v11  ;;  %v6690_v11 = vld [vmem:[#allocation4 + $0x904] ss:$28 sps:$4 sm:$0xff]  }
  0xee   :  { %2932 = vmatpush2.bf16.msra.mxu1 %v6670_v18  ;;  %2820 = vmatprep.subr.bf16.mxu0 %v6675_v29  ;;  %v7618_v18 = vpack.c.bf16 %v182_v8, %v176_v6  ;;  %v6693_v29 = vld [vmem:[#allocation4 + $0x54c] ss:$28 sps:$4 sm:$0xff]   ;;  %v6703_v6 = vld [vmem:[#allocation4 + $0x160] ss:$28 sps:$4 sm:$0xff]  }
  0xef   :  { %2933 = vmatprep.subr.bf16.mxu1 %v6678_v30  ;;  %v6696_v30 = vld [vmem:[#allocation4 + $0x8cc] ss:$28 sps:$4 sm:$0xff]   ;;  %v6706_v8 = vld [vmem:[#allocation4 + $0x4e0] ss:$28 sps:$4 sm:$0xff]  }
  0xf0   :  { %2663 = vmatmul.mubr.bf16.gmra.mxu0 %v7598_v39  ;;  %9388 = vst [vmem:[#allocation42_spill] sm:$0xff] %v7618_v18 }
  0xf1   :  { %2776 = vmatmul.mubr.bf16.gmra.mxu1 %v7426_v31  ;;  %2821 = vmatpush2.bf16.msra.mxu0 %v6673_v34  ;;  %v6691_v34 = vld [vmem:[#allocation4 + $0x548] ss:$28 sps:$4 sm:$0xff]  }
  0xf2   :  { %2934 = vmatpush2.bf16.msra.mxu1 %v6676_v38  ;;  %2822 = vmatprep.subr.bf16.mxu0 %v6681_v52  ;;  %v6694_v38 = vld [vmem:[#allocation4 + $0x8c8] ss:$28 sps:$4 sm:$0xff]   ;;  %v6697_v52 = vld [vmem:[#allocation4 + $0x198] ss:$28 sps:$4 sm:$0xff]  }
  0xf3   :  { %2935 = vmatprep.subr.bf16.mxu1 %v6684_v56  ;;  %2672 = vmatprep.mubr.bf16.mxu0 %v7606_v3  ;;  %v6700_v56 = vld [vmem:[#allocation4 + $0x518] ss:$28 sps:$4 sm:$0xff]  }
  0xf4   :  { %2785 = vmatprep.mubr.bf16.mxu1 %v7436_v46 }
  0xf5   :  { %2823 = vmatpush2.bf16.msra.mxu0 %v6679_v57  ;;  %v6705_v57 = vld [vmem:[#allocation4 + $0x164] ss:$28 sps:$4 sm:$0xff]  }
  0xf6   :  { %2936 = vmatpush2.bf16.msra.mxu1 %v6682_v62  ;;  %2824 = vmatprep.subr.bf16.mxu0 %v6687_v9  ;;  %v6708_v62 = vld [vmem:[#allocation4 + $0x4e4] ss:$28 sps:$4 sm:$0xff]   ;;  %v6711_v9 = vld [vmem:[#allocation4 + $0x12c] ss:$28 sps:$4 sm:$0xff]  }
  0xf7   :  { %2937 = vmatprep.subr.bf16.mxu1 %v6690_v11  ;;  %v6714_v11 = vld [vmem:[#allocation4 + $0x4ac] ss:$28 sps:$4 sm:$0xff]  }
  0xf8   :  { %2673 = vmatmul.mubr.bf16.gmra.mxu0 %v7618_v18 }
  0xf9   :  { %2786 = vmatmul.mubr.bf16.gmra.mxu1 %v7456_v60  ;;  %2825 = vmatpush2.bf16.msra.mxu0 %v6685_v21  ;;  %v6709_v21 = vld [vmem:[#allocation4 + $0x128] ss:$28 sps:$4 sm:$0xff]  }
  0xfa   :  { %2938 = vmatpush2.bf16.msra.mxu1 %v6688_v28  ;;  %2826 = vmatprep.subr.bf16.mxu0 %v6693_v29  ;;  %v6712_v28 = vld [vmem:[#allocation4 + $0x4a8] ss:$28 sps:$4 sm:$0xff]   ;;  %v6717_v29 = vld [vmem:[#allocation4 + $0xf4] ss:$28 sps:$4 sm:$0xff]  }
  0xfb   :  { %2939 = vmatprep.subr.bf16.mxu1 %v6696_v30  ;;  %2828 = vmatprep.mubr.bf16.mxu0 %v7188_v54  ;;  %v6720_v30 = vld [vmem:[#allocation4 + $0x474] ss:$28 sps:$4 sm:$0xff]  }
  0xfc   :  { %2941 = vmatprep.mubr.bf16.mxu1 %v7466_v10 }
  0xfd   :  { %2827 = vmatpush2.bf16.msra.mxu0 %v6691_v34  ;;  %v6715_v34 = vld [vmem:[#allocation4 + $0xf0] ss:$28 sps:$4 sm:$0xff]  }
  0xfe   :  { %2940 = vmatpush2.bf16.msra.mxu1 %v6694_v38  ;;  %3022 = vmatprep.subr.bf16.mxu0 %v6699_v45  ;;  %v6718_v38 = vld [vmem:[#allocation4 + $0x470] ss:$28 sps:$4 sm:$0xff]   ;;  %v6723_v45 = vld [vmem:[#allocation4 + $0xbc] ss:$28 sps:$4 sm:$0xff]  }
  0xff   :  { %3135 = vmatprep.subr.bf16.mxu1 %v6702_v48  ;;  %v6726_v48 = vld [vmem:[#allocation4 + $0x43c] ss:$28 sps:$4 sm:$0xff]  }
 0x100   :  { %2829 = vmatmul.mubr.bf16.vlgmr.msra.gmra.mxu0 %v7212_v17 }
 0x101   :  { %2942 = vmatmul.mubr.bf16.vlgmr.msra.gmra.mxu1 %v7478_v22  ;;  %3023 = vmatpush1.bf16.msra.mxu0 %v6697_v52  ;;  %v6721_v52 = vld [vmem:[#allocation4 + $0xb8] ss:$28 sps:$4 sm:$0xff]  }
 0x102   :  { %3136 = vmatpush1.bf16.msra.mxu1 %v6700_v56  ;;  %3024 = vmatprep.subr.bf16.mxu0 %v6705_v57  ;;  %v6724_v56 = vld [vmem:[#allocation4 + $0x438] ss:$28 sps:$4 sm:$0xff]   ;;  %v6729_v57 = vld [vmem:[#allocation4 + $0x84] ss:$28 sps:$4 sm:$0xff]  }
 0x103   :  { %3137 = vmatprep.subr.bf16.mxu1 %v6708_v62  ;;  %2838 = vmatprep.mubr.bf16.mxu0 %v7222_v24  ;;  %v6732_v62 = vld [vmem:[#allocation4 + $0x404] ss:$28 sps:$4 sm:$0xff]  }
 0x104   :  { %2951 = vmatprep.mubr.bf16.mxu1 %v7486_v35 }
 0x105   :  { %3025 = vmatpush1.bf16.msra.mxu0 %v6703_v6  ;;  %v6727_v6 = vld [vmem:[#allocation4 + $0x80] ss:$28 sps:$4 sm:$0xff]  }
 0x106   :  { %3138 = vmatpush1.bf16.msra.mxu1 %v6706_v8  ;;  %3026 = vmatprep.subr.bf16.mxu0 %v6711_v9  ;;  %v6730_v8 = vld [vmem:[#allocation4 + $0x400] ss:$28 sps:$4 sm:$0xff]   ;;  %v6735_v9 = vld [vmem:[#allocation4 + $0x4c] ss:$28 sps:$4 sm:$0xff]  }
 0x107   :  { %3139 = vmatprep.subr.bf16.mxu1 %v6714_v11  ;;  %v6738_v11 = vld [vmem:[#allocation4 + $0x3cc] ss:$28 sps:$4 sm:$0xff]  }
 0x108   :  { %2839 = vmatmul.mubr.bf16.gmra.mxu0 %v7248_v37 }
 0x109   :  { %2952 = vmatmul.mubr.bf16.gmra.mxu1 %v7498_v55  ;;  %3027 = vmatpush1.bf16.msra.mxu0 %v6709_v21  ;;  %v6733_v21 = vld [vmem:[#allocation4 + $0x48] ss:$28 sps:$4 sm:$0xff]  }
 0x10a   :  { %3140 = vmatpush1.bf16.msra.mxu1 %v6712_v28  ;;  %3028 = vmatprep.subr.bf16.mxu0 %v6717_v29  ;;  %v6736_v28 = vld [vmem:[#allocation4 + $0x3c8] ss:$28 sps:$4 sm:$0xff]   ;;  %v6741_v29 = vld [vmem:[#allocation4 + $0x14] ss:$28 sps:$4 sm:$0xff]  }
 0x10b   :  { %3141 = vmatprep.subr.bf16.mxu1 %v6720_v30  ;;  %2848 = vmatprep.mubr.bf16.mxu0 %v7258_v44  ;;  %v6744_v30 = vld [vmem:[#allocation4 + $0x394] ss:$28 sps:$4 sm:$0xff]  }
 0x10c   :  { %2961 = vmatprep.mubr.bf16.mxu1 %v7506_v0 }
 0x10d   :  { %3029 = vmatpush1.bf16.msra.mxu0 %v6715_v34  ;;  %v6739_v34 = vld [vmem:[#allocation4 + $0x10] ss:$28 sps:$4 sm:$0xff]  }
 0x10e   :  { %3142 = vmatpush1.bf16.msra.mxu1 %v6718_v38  ;;  %3030 = vmatprep.subr.bf16.mxu0 %v6723_v45  ;;  %v6742_v38 = vld [vmem:[#allocation4 + $0x390] ss:$28 sps:$4 sm:$0xff]   ;;  %v6747_v45 = vld [vmem:[#allocation4 + $0x35c] ss:$28 sps:$4 sm:$0xff]  }
 0x10f   :  { %3143 = vmatprep.subr.bf16.mxu1 %v6726_v48  ;;  %v6750_v48 = vld [vmem:[#allocation4 + $0x6dc] ss:$28 sps:$4 sm:$0xff]  }
 0x110   :  { %2849 = vmatmul.mubr.bf16.gmra.mxu0 %v7284_v59 }
 0x111   :  { %2962 = vmatmul.mubr.bf16.gmra.mxu1 %v7518_v20  ;;  %3031 = vmatpush1.bf16.msra.mxu0 %v6721_v52  ;;  %v6745_v52 = vld [vmem:[#allocation4 + $0x358] ss:$28 sps:$4 sm:$0xff]  }
 0x112   :  { %3144 = vmatpush1.bf16.msra.mxu1 %v6724_v56  ;;  %3032 = vmatprep.subr.bf16.mxu0 %v6729_v57  ;;  %v6748_v56 = vld [vmem:[#allocation4 + $0x6d8] ss:$28 sps:$4 sm:$0xff]   ;;  %v6753_v57 = vld [vmem:[#allocation4 + $0x324] ss:$28 sps:$4 sm:$0xff]  }
 0x113   :  { %3145 = vmatprep.subr.bf16.mxu1 %v6732_v62  ;;  %2858 = vmatprep.mubr.bf16.mxu0 %v7294_v2  ;;  %v6756_v62 = vld [vmem:[#allocation4 + $0x6a4] ss:$28 sps:$4 sm:$0xff]  }
 0x114   :  { %2971 = vmatprep.mubr.bf16.mxu1 %v7526_v33 }
 0x115   :  { %3033 = vmatpush1.bf16.msra.mxu0 %v6727_v6  ;;  %v6751_v6 = vld [vmem:[#allocation4 + $0x320] ss:$28 sps:$4 sm:$0xff]  }
 0x116   :  { %3146 = vmatpush1.bf16.msra.mxu1 %v6730_v8  ;;  %3034 = vmatprep.subr.bf16.mxu0 %v6735_v9  ;;  %v6754_v8 = vld [vmem:[#allocation4 + $0x6a0] ss:$28 sps:$4 sm:$0xff]   ;;  %v6759_v9 = vld [vmem:[#allocation4 + $0x2ec] ss:$28 sps:$4 sm:$0xff]  }
 0x117   :  { %3147 = vmatprep.subr.bf16.mxu1 %v6738_v11  ;;  %v6762_v11 = vld [vmem:[#allocation4 + $0x66c] ss:$28 sps:$4 sm:$0xff]  }
 0x118   :  { %2859 = vmatmul.mubr.bf16.gmra.mxu0 %v7320_v15 }
 0x119   :  { %2972 = vmatmul.mubr.bf16.gmra.mxu1 %v7538_v51  ;;  %3035 = vmatpush1.bf16.msra.mxu0 %v6733_v21  ;;  %v6757_v21 = vld [vmem:[#allocation4 + $0x2e8] ss:$28 sps:$4 sm:$0xff]  }
 0x11a   :  { %3148 = vmatpush1.bf16.msra.mxu1 %v6736_v28  ;;  %3036 = vmatprep.subr.bf16.mxu0 %v6741_v29  ;;  %v6760_v28 = vld [vmem:[#allocation4 + $0x668] ss:$28 sps:$4 sm:$0xff]   ;;  %v6765_v29 = vld [vmem:[#allocation4 + $0x2b4] ss:$28 sps:$4 sm:$0xff]  }
 0x11b   :  { %3149 = vmatprep.subr.bf16.mxu1 %v6744_v30  ;;  %2868 = vmatprep.mubr.bf16.mxu0 %v7330_v26  ;;  %v6768_v30 = vld [vmem:[#allocation4 + $0x634] ss:$28 sps:$4 sm:$0xff]  }
 0x11c   :  { %2981 = vmatprep.mubr.bf16.mxu1 %v7546_v7 }
 0x11d   :  { %3037 = vmatpush1.bf16.msra.mxu0 %v6739_v34  ;;  %v6763_v34 = vld [vmem:[#allocation4 + $0x2b0] ss:$28 sps:$4 sm:$0xff]  }
 0x11e   :  { %3150 = vmatpush1.bf16.msra.mxu1 %v6742_v38  ;;  %3038 = vmatprep.subr.bf16.mxu0 %v6747_v45  ;;  %v6766_v38 = vld [vmem:[#allocation4 + $0x630] ss:$28 sps:$4 sm:$0xff]   ;;  %v6771_v45 = vld [vmem:[#allocation4 + $0x27c] ss:$28 sps:$4 sm:$0xff]  }
 0x11f   :  { %3151 = vmatprep.subr.bf16.mxu1 %v6750_v48  ;;  %v6774_v48 = vld [vmem:[#allocation4 + $0x5fc] ss:$28 sps:$4 sm:$0xff]  }
 0x120   :  { %2869 = vmatmul.mubr.bf16.gmra.mxu0 %v7356_v41 }
 0x121   :  { %2982 = vmatmul.mubr.bf16.gmra.mxu1 %v7558_v27  ;;  %3039 = vmatpush2.bf16.msra.mxu0 %v6745_v52  ;;  %v6769_v52 = vld [vmem:[#allocation4 + $0x278] ss:$28 sps:$4 sm:$0xff]  }
 0x122   :  { %3152 = vmatpush2.bf16.msra.mxu1 %v6748_v56  ;;  %3040 = vmatprep.subr.bf16.mxu0 %v6753_v57  ;;  %v6772_v56 = vld [vmem:[#allocation4 + $0x5f8] ss:$28 sps:$4 sm:$0xff]   ;;  %v6777_v57 = vld [vmem:[#allocation4 + $0x244] ss:$28 sps:$4 sm:$0xff]  }
 0x123   :  { %3153 = vmatprep.subr.bf16.mxu1 %v6756_v62  ;;  %2878 = vmatprep.mubr.bf16.mxu0 %v7366_v50  ;;  %v6780_v62 = vld [vmem:[#allocation4 + $0x5c4] ss:$28 sps:$4 sm:$0xff]   ;;  %v6853_v27 = vld [vmem:[#allocation4 + $0x18] ss:$28 sps:$4 sm:$0xff]  }
 0x124   :  { %2991 = vmatprep.mubr.bf16.mxu1 %v7566_v42  ;;  %v6832_v42 = vld [vmem:[#allocation4 + $0xa24] ss:$28 sps:$4 sm:$0xff]  }
 0x125   :  { %3041 = vmatpush2.bf16.msra.mxu0 %v6751_v6  ;;  %v6775_v6 = vld [vmem:[#allocation4 + $0x240] ss:$28 sps:$4 sm:$0xff]  }
 0x126   :  { %3154 = vmatpush2.bf16.msra.mxu1 %v6754_v8  ;;  %3042 = vmatprep.subr.bf16.mxu0 %v6759_v9  ;;  %v6778_v8 = vld [vmem:[#allocation4 + $0x5c0] ss:$28 sps:$4 sm:$0xff]   ;;  %v6783_v9 = vld [vmem:[#allocation4 + $0x20c] ss:$28 sps:$4 sm:$0xff]  }
 0x127   :  { %3155 = vmatprep.subr.bf16.mxu1 %v6762_v11  ;;  %v6786_v11 = vld [vmem:[#allocation4 + $0x58c] ss:$28 sps:$4 sm:$0xff]  }
 0x128   :  { %2879 = vmatmul.mubr.bf16.gmra.mxu0 %v7392_v5 }
 0x129   :  { %2992 = vmatmul.mubr.bf16.gmra.mxu1 %v7578_v63  ;;  %3043 = vmatpush2.bf16.msra.mxu0 %v6757_v21  ;;  %v6781_v21 = vld [vmem:[#allocation4 + $0x208] ss:$28 sps:$4 sm:$0xff]   ;;  %v6844_v63 = vld [vmem:[#allocation4 + $0x210] ss:$28 sps:$4 sm:$0xff]  }
 0x12a   :  { %3156 = vmatpush2.bf16.msra.mxu1 %v6760_v28  ;;  %3044 = vmatprep.subr.bf16.mxu0 %v6765_v29  ;;  %v6784_v28 = vld [vmem:[#allocation4 + $0x588] ss:$28 sps:$4 sm:$0xff]   ;;  %v6789_v29 = vld [vmem:[#allocation4 + $0x1d4] ss:$28 sps:$4 sm:$0xff]  }
 0x12b   :  { %3157 = vmatprep.subr.bf16.mxu1 %v6768_v30  ;;  %2888 = vmatprep.mubr.bf16.mxu0 %v7402_v13  ;;  %v6792_v30 = vld [vmem:[#allocation4 + $0x554] ss:$28 sps:$4 sm:$0xff]  }
 0x12c   :  { %3001 = vmatprep.mubr.bf16.mxu1 %v7586_v19  ;;  %v6824_v19 = vld [vmem:[#allocation4 + $0x714] ss:$28 sps:$4 sm:$0xff]  }
 0x12d   :  { %3045 = vmatpush2.bf16.msra.mxu0 %v6763_v34  ;;  %v6787_v34 = vld [vmem:[#allocation4 + $0x1d0] ss:$28 sps:$4 sm:$0xff]  }
 0x12e   :  { %3158 = vmatpush2.bf16.msra.mxu1 %v6766_v38  ;;  %3046 = vmatprep.subr.bf16.mxu0 %v6771_v45  ;;  %v6790_v38 = vld [vmem:[#allocation4 + $0x550] ss:$28 sps:$4 sm:$0xff]   ;;  %v6795_v45 = vld [vmem:[#allocation4 + $0x89c] ss:$28 sps:$4 sm:$0xff]  }
 0x12f   :  { %3159 = vmatprep.subr.bf16.mxu1 %v6774_v48  ;;  %v6796_v48 = vld [vmem:[#allocation4 + $0x360] ss:$28 sps:$4 sm:$0xff]  }
 0x130   :  { %2889 = vmatmul.mubr.bf16.gmra.mxu0 %v7428_v32 }
 0x131   :  { %3002 = vmatmul.mubr.bf16.gmra.mxu1 %v7598_v39  ;;  %3047 = vmatpush2.bf16.msra.mxu0 %v6769_v52  ;;  %v6793_v52 = vld [vmem:[#allocation4 + $0x898] ss:$28 sps:$4 sm:$0xff]  }
 0x132   :  { %3160 = vmatpush2.bf16.msra.mxu1 %v6772_v56  ;;  %3048 = vmatprep.subr.bf16.mxu0 %v6777_v57  ;;  %v6797_v56 = vld [vmem:[#allocation4 + $0x1a0] ss:$28 sps:$4 sm:$0xff]  }
 0x133   :  { %3161 = vmatprep.subr.bf16.mxu1 %v6780_v62  ;;  %2898 = vmatprep.mubr.bf16.mxu0 %v7438_v47  ;;  %v6800_v57 = vld [vmem:[#allocation4 + $0x864] ss:$28 sps:$4 sm:$0xff]  }
 0x134   :  { %3011 = vmatprep.mubr.bf16.mxu1 %v7606_v3  ;;  %v6798_v62 = vld [vmem:[#allocation4 + $0x860] ss:$28 sps:$4 sm:$0xff]  }
 0x135   :  { %3049 = vmatpush2.bf16.msra.mxu0 %v6775_v6  ;;  %v6804_v6 = vld [vmem:[#allocation4 + $0x328] ss:$28 sps:$4 sm:$0xff]  }
 0x136   :  { %3162 = vmatpush2.bf16.msra.mxu1 %v6778_v8  ;;  %3050 = vmatprep.subr.bf16.mxu0 %v6783_v9 }
 0x137   :  { %3163 = vmatprep.subr.bf16.mxu1 %v6786_v11  ;;  %v6803_v11 = vld [vmem:[#allocation4 + $0x82c] ss:$28 sps:$4 sm:$0xff]  }
 0x138   :  { %2899 = vmatmul.mubr.bf16.gmra.mxu0 %v7458_v61 }
 0x139   :  { %3012 = vmatmul.mubr.bf16.gmra.mxu1 %v7618_v18  ;;  %3051 = vmatpush2.bf16.msra.mxu0 %v6781_v21  ;;  %v6816_v18 = vld [vmem:[#allocation4 + $0x784] ss:$28 sps:$4 sm:$0xff]  }
 0x13a   :  { %3164 = vmatpush2.bf16.msra.mxu1 %v6784_v28  ;;  %3052 = vmatprep.subr.bf16.mxu0 %v6789_v29  ;;  %v6805_v28 = vld [vmem:[#allocation4 + $0x168] ss:$28 sps:$4 sm:$0xff]  }
 0x13b   :  { %3165 = vmatprep.subr.bf16.mxu1 %v6792_v30  ;;  %3054 = vmatprep.mubr.bf16.mxu0 %v7186_v53 }
 0x13c   :  { %3167 = vmatprep.mubr.bf16.mxu1 %v7188_v54  ;;  %v6813_v54 = vld [vmem:[#allocation4 + $0x130] ss:$28 sps:$4 sm:$0xff]  }
 0x13d   :  { %3053 = vmatpush2.bf16.msra.mxu0 %v6787_v34  ;;  %v6812_v34 = vld [vmem:[#allocation4 + $0x2f0] ss:$28 sps:$4 sm:$0xff]  }
 0x13e   :  { %3166 = vmatpush2.bf16.msra.mxu1 %v6790_v38  ;;  %3248 = vmatprep.subr.bf16.mxu0 %v6795_v45 }
 0x13f   :  { %6095 = vmatprep.subr.bf16.mxu1 %v6796_v48 }
 0x140   :  { %v2378_v8 = vpop.f32.mrf.mxu0  ;;  %3055 = vmatmul.mubr.bf16.vlgmr.msra.gmra.mxu0 %v7210_v16 }
 0x141   :  { %v2491_v9 = vpop.f32.mrf.mxu1  ;;  %3168 = vmatmul.mubr.bf16.vlgmr.msra.gmra.mxu1 %v7212_v17  ;;  %3249 = vmatpush1.bf16.msra.mxu0 %v6793_v52 }
 0x142   :  { %v7658_v21 = vadd.f32 %v2491_v9, %v2378_v8  ;;  %6096 = vmatpush3.bf16.msra.mxu1 %v6797_v56  ;;  %v2380_v29 = vpop.f32.mrf.mxu0  ;;  %3250 = vmatprep.subr.bf16.mxu0 %v6800_v57  ;;  %v6801_v8 = vld [vmem:[#allocation4 + $0x828] ss:$28 sps:$4 sm:$0xff]   ;;  %v6808_v9 = vld [vmem:[#allocation4 + $0x7f4] ss:$28 sps:$4 sm:$0xff]  }
 0x143   :  { %v2493_v30 = vpop.f32.mrf.mxu1  ;;  %3064 = vmatprep.mubr.bf16.mxu0 %v7220_v23  ;;  %3177 = vmatprep.mubr.bf16.mxu1 %v7222_v24 }
 0x144   :  { %v7661_v38 = vadd.f32 %v2493_v30, %v2380_v29  ;;  %6097 = vmatprep.subr.bf16.mxu1 %v6804_v6  ;;  %v2382_v45 = vpop.f32.mrf.mxu0  ;;  %v6820_v6 = vld [vmem:[#allocation4 + $0x2b8] ss:$28 sps:$4 sm:$0xff]  }
 0x145   :  { %v2495_v48 = vpop.f32.mrf.mxu1  ;;  %3251 = vmatpush1.bf16.msra.mxu0 %v6798_v62  ;;  %v6806_v62 = vld [vmem:[#allocation4 + $0x7f0] ss:$28 sps:$4 sm:$0xff]  }
 0x146   :  { %v7664_v17 = vadd.f32 %v2495_v48, %v2382_v45  ;;  %6098 = vmatpush3.bf16.msra.mxu1 %v6805_v28  ;;  %v2384_v52 = vpop.f32.mrf.mxu0  ;;  %3252 = vmatprep.subr.bf16.mxu0 %v6803_v11 }
 0x147   :  { %v2497_v56 = vpop.f32.mrf.mxu1  ;;  %6099 = vmatprep.subr.bf16.mxu1 %v6812_v34  ;;  %v6811_v34 = vld [vmem:[#allocation4 + $0x7bc] ss:$28 sps:$4 sm:$0xff]  }
 0x148   :  { %v7666_v57 = vadd.f32 %v2497_v56, %v2384_v52  ;;  %v2388_v29 = vpop.f32.mrf.mxu0  ;;  %3065 = vmatmul.mubr.bf16.gmra.mxu0 %v7246_v36  ;;  %v6809_v52 = vld [vmem:[#allocation4 + $0x7b8] ss:$28 sps:$4 sm:$0xff]  }
 0x149   :  { %v2501_v30 = vpop.f32.mrf.mxu1  ;;  %3178 = vmatmul.mubr.bf16.gmra.mxu1 %v7248_v37  ;;  %3253 = vmatpush1.bf16.msra.mxu0 %v6801_v8  ;;  %v6821_v56 = vld [vmem:[#allocation4 + $0xf8] ss:$28 sps:$4 sm:$0xff]   ;;  %v6828_v8 = vld [vmem:[#allocation4 + $0x280] ss:$28 sps:$4 sm:$0xff]  }
 0x14a   :  { %v7670_v45 = vadd.f32 %v2501_v30, %v2388_v29  ;;  %3074 = vmatprep.mubr.bf16.mxu0 %v7256_v43  ;;  %v2390_v28 = vpop.f32.mrf.mxu0  ;;  %3254 = vmatprep.subr.bf16.mxu0 %v6808_v9  ;;  %v6829_v9 = vld [vmem:[#allocation4 + $0xc0] ss:$28 sps:$4 sm:$0xff]  }
 0x14b   :  { %v2503_v11 = vpop.f32.mrf.mxu1  ;;  %3187 = vmatprep.mubr.bf16.mxu1 %v7258_v44  ;;  %6100 = vmatpush3.bf16.msra.mxu1 %v6813_v54  ;;  %v6814_v44 = vld [vmem:[#allocation4 + $0x780] ss:$28 sps:$4 sm:$0xff]  }
 0x14c   :  { %v7674_v48 = vadd.f32 %v2503_v11, %v2390_v28  ;;  %v2392_v24 = vpop.f32.mrf.mxu0  ;;  %6101 = vmatprep.subr.bf16.mxu1 %v6820_v6  ;;  %v6836_v28 = vld [vmem:[#allocation4 + $0x248] ss:$28 sps:$4 sm:$0xff]  }
 0x14d   :  { %v2505_v37 = vpop.f32.mrf.mxu1  ;;  %3255 = vmatpush1.bf16.msra.mxu0 %v6806_v62  ;;  %v6819_v6 = vld [vmem:[#allocation4 + $0x74c] ss:$28 sps:$4 sm:$0xff]  }
 0x14e   :  { %v7676_v29 = vadd.f32 %v2505_v37, %v2392_v24  ;;  %v2394_v30 = vpop.f32.mrf.mxu0  ;;  %3256 = vmatprep.subr.bf16.mxu0 %v6811_v34  ;;  %v6817_v34 = vld [vmem:[#allocation4 + $0x748] ss:$28 sps:$4 sm:$0xff]  }
 0x14f   :  { %v2507_v3 = vpop.f32.mrf.mxu1  ;;  %6102 = vmatpush3.bf16.msra.mxu1 %v6821_v56 }
 0x150   :  { %v7678_v39 = vadd.f32 %v2507_v3, %v2394_v30  ;;  %v2398_v11 = vpop.f32.mrf.mxu0  ;;  %3075 = vmatmul.mubr.bf16.gmra.mxu0 %v7282_v58  ;;  %6103 = vmatprep.subr.bf16.mxu1 %v6828_v8  ;;  %v6827_v8 = vld [vmem:[#allocation4 + $0xa5c] ss:$28 sps:$4 sm:$0xff]  }
 0x151   :  { %v2511_v54 = vpop.f32.mrf.mxu1  ;;  %3188 = vmatmul.mubr.bf16.gmra.mxu1 %v7284_v59  ;;  %3257 = vmatpush1.bf16.msra.mxu0 %v6809_v52  ;;  %v6837_v52 = vld [vmem:[#allocation4 + $0x88] ss:$28 sps:$4 sm:$0xff]  }
 0x152   :  { %v7682_v24 = vadd.f32 %v2511_v54, %v2398_v11  ;;  %3084 = vmatprep.mubr.bf16.mxu0 %v7292_v1  ;;  %v2400_v37 = vpop.f32.mrf.mxu0  ;;  %3258 = vmatprep.subr.bf16.mxu0 %v6816_v18 }
 0x153   :  { %v2513_v62 = vpop.f32.mrf.mxu1  ;;  %3197 = vmatprep.mubr.bf16.mxu1 %v7294_v2  ;;  %6104 = vmatpush3.bf16.msra.mxu1 %v6829_v9  ;;  %v6822_v2 = vld [vmem:[#allocation4 + $0x710] ss:$28 sps:$4 sm:$0xff]  }
 0x154   :  { %v7686_v3 = vadd.f32 %v2513_v62, %v2400_v37  ;;  %v2402_v56 = vpop.f32.mrf.mxu0  ;;  %6105 = vmatprep.subr.bf16.mxu1 %v6836_v28 }
 0x155   :  { %v2515_v30 = vpop.f32.mrf.mxu1  ;;  %3259 = vmatpush1.bf16.msra.mxu0 %v6814_v44  ;;  %v6845_v44 = vld [vmem:[#allocation4 + $0x50] ss:$28 sps:$4 sm:$0xff]  }
 0x156   :  { %v7688_v59 = vadd.f32 %v2515_v30, %v2402_v56  ;;  %v2404_v11 = vpop.f32.mrf.mxu0  ;;  %3260 = vmatprep.subr.bf16.mxu0 %v6819_v6  ;;  %v6825_v30 = vld [vmem:[#allocation4 + $0xa58] ss:$28 sps:$4 sm:$0xff]  }
 0x157   :  { %v2517_v54 = vpop.f32.mrf.mxu1  ;;  %6106 = vmatpush3.bf16.msra.mxu1 %v6837_v52 }
 0x158   :  { %v7690_v18 = vadd.f32 %v2517_v54, %v2404_v11  ;;  %v2408_v37 = vpop.f32.mrf.mxu0  ;;  %3085 = vmatmul.mubr.bf16.gmra.mxu0 %v7318_v14  ;;  %6107 = vmatprep.subr.bf16.mxu1 %v6844_v63  ;;  %v6835_v63 = vld [vmem:[#allocation4 + $0x9ec] ss:$28 sps:$4 sm:$0xff]  }
 0x159   :  { %v2521_v62 = vpop.f32.mrf.mxu1  ;;  %3198 = vmatmul.mubr.bf16.gmra.mxu1 %v7320_v15  ;;  %3261 = vmatpush1.bf16.msra.mxu0 %v6817_v34  ;;  %v6852_v34 = vld [vmem:[#allocation4 + $0x1d8] ss:$28 sps:$4 sm:$0xff]  }
 0x15a   :  { %v7694_v9 = vadd.f32 %v2521_v62, %v2408_v37  ;;  %3094 = vmatprep.mubr.bf16.mxu0 %v7328_v25  ;;  %v2410_v28 = vpop.f32.mrf.mxu0  ;;  %3262 = vmatprep.subr.bf16.mxu0 %v6824_v19  ;;  %v6830_v19 = vld [vmem:[#allocation4 + $0xa20] ss:$28 sps:$4 sm:$0xff]  }
 0x15b   :  { %v2523_v56 = vpop.f32.mrf.mxu1  ;;  %3207 = vmatprep.mubr.bf16.mxu1 %v7330_v26  ;;  %6108 = vmatpush3.bf16.msra.mxu1 %v6845_v44  ;;  %v6833_v44 = vld [vmem:[#allocation4 + $0x9e8] ss:$28 sps:$4 sm:$0xff]  }
 0x15c   :  { %v7698_v6 = vadd.f32 %v2523_v56, %v2410_v28  ;;  %v2412_v11 = vpop.f32.mrf.mxu0  ;;  %v6859_v28 = vld [vmem:[#allocation4 + $0xa60] ss:$28 sps:$4 sm:$0xff]   ;;  %6109 = vmatprep.subr.bf16.mxu1 %v6852_v34 }
 0x15d   :  { %v2525_v54 = vpop.f32.mrf.mxu1  ;;  %3263 = vmatpush1.bf16.msra.mxu0 %v6822_v2  ;;  %v6843_v34 = vld [vmem:[#allocation4 + $0x97c] ss:$28 sps:$4 sm:$0xff]  }
 0x15e   :  { %v7700_v15 = vadd.f32 %v2525_v54, %v2412_v11  ;;  %v2414_v37 = vpop.f32.mrf.mxu0  ;;  %3264 = vmatprep.subr.bf16.mxu0 %v6827_v8 }
 0x15f   :  { %v2527_v62 = vpop.f32.mrf.mxu1  ;;  %6110 = vmatpush3.bf16.msra.mxu1 %v6853_v27 }
 0x160   :  { %v7702_v25 = vadd.f32 %v2527_v62, %v2414_v37  ;;  %v2418_v56 = vpop.f32.mrf.mxu0  ;;  %3095 = vmatmul.mubr.bf16.gmra.mxu0 %v7354_v40  ;;  %v6840_v62 = vld [vmem:[#allocation4 + $0x9b4] ss:$28 sps:$4 sm:$0xff]   ;;  %6223 = vmatprep.subr.bf16.mxu1 %v6859_v28 }
 0x161   :  { %v2531_v26 = vpop.f32.mrf.mxu1  ;;  %3208 = vmatmul.mubr.bf16.gmra.mxu1 %v7356_v41  ;;  %3265 = vmatpush2.bf16.msra.mxu0 %v6825_v30 }
 0x162   :  { %v7706_v52 = vadd.f32 %v2531_v26, %v2418_v56  ;;  %3104 = vmatprep.mubr.bf16.mxu0 %v7364_v49  ;;  %v2420_v2 = vpop.f32.mrf.mxu0  ;;  %3266 = vmatprep.subr.bf16.mxu0 %v6832_v42  ;;  %v6838_v42 = vld [vmem:[#allocation4 + $0x9b0] ss:$28 sps:$4 sm:$0xff]  }
 0x163   :  { %v2533_v8 = vpop.f32.mrf.mxu1  ;;  %3217 = vmatprep.mubr.bf16.mxu1 %v7366_v50 }
 0x164   :  { %v7710_v11 = vadd.f32 %v2533_v8, %v2420_v2  ;;  %v2422_v54 = vpop.f32.mrf.mxu0 }
 0x165   :  { %v2535_v37 = vpop.f32.mrf.mxu1  ;;  %3267 = vmatpush2.bf16.msra.mxu0 %v6830_v19 }
 0x166   :  { %v7712_v41 = vadd.f32 %v2535_v37, %v2422_v54  ;;  %v2424_v26 = vpop.f32.mrf.mxu0  ;;  %3268 = vmatprep.subr.bf16.mxu0 %v6835_v63  ;;  %v6841_v37 = vld [vmem:[#allocation4 + $0x978] ss:$28 sps:$4 sm:$0xff]  }
 0x167   :  { %v2537_v30 = vpop.f32.mrf.mxu1 }
 0x168   :  { %v7714_v56 = vadd.f32 %v2537_v30, %v2424_v26  ;;  %v2428_v49 = vpop.f32.mrf.mxu0  ;;  %3105 = vmatmul.mubr.bf16.gmra.mxu0 %v7390_v4 }
 0x169   :  { %v2541_v50 = vpop.f32.mrf.mxu1  ;;  %3218 = vmatmul.mubr.bf16.gmra.mxu1 %v7392_v5  ;;  %3269 = vmatpush2.bf16.msra.mxu0 %v6833_v44 }
 0x16a   :  { %v7718_v2 = vadd.f32 %v2541_v50, %v2428_v49  ;;  %3114 = vmatprep.mubr.bf16.mxu0 %v7400_v12  ;;  %v2430_v27 = vpop.f32.mrf.mxu0  ;;  %3270 = vmatprep.subr.bf16.mxu0 %v6840_v62  ;;  %v6848_v49 = vld [vmem:[#allocation4 + $0x944] ss:$28 sps:$4 sm:$0xff]  }
 0x16b   :  { %v2543_v19 = vpop.f32.mrf.mxu1  ;;  %3227 = vmatprep.mubr.bf16.mxu1 %v7402_v13 }
 0x16c   :  { %v7722_v28 = vadd.f32 %v2543_v19, %v2430_v27  ;;  %v2432_v63 = vpop.f32.mrf.mxu0  ;;  %v6846_v27 = vld [vmem:[#allocation4 + $0x940] ss:$28 sps:$4 sm:$0xff]  }
 0x16d   :  { %v2545_v8 = vpop.f32.mrf.mxu1  ;;  %3271 = vmatpush2.bf16.msra.mxu0 %v6838_v42 }
 0x16e   :  { %v7724_v54 = vadd.f32 %v2545_v8, %v2432_v63  ;;  %v2434_v26 = vpop.f32.mrf.mxu0  ;;  %3272 = vmatprep.subr.bf16.mxu0 %v6843_v34  ;;  %v6851_v34 = vld [vmem:[#allocation4 + $0x90c] ss:$28 sps:$4 sm:$0xff]  }
 0x16f   :  { %v2547_v30 = vpop.f32.mrf.mxu1 }
 0x170   :  { %v7726_v50 = vadd.f32 %v2547_v30, %v2434_v26  ;;  %v2438_v44 = vpop.f32.mrf.mxu0  ;;  %3115 = vmatmul.mubr.bf16.gmra.mxu0 %v7426_v31 }
 0x171   :  { %v2551_v5 = vpop.f32.mrf.mxu1  ;;  %3228 = vmatmul.mubr.bf16.gmra.mxu1 %v7428_v32  ;;  %3273 = vmatpush2.bf16.msra.mxu0 %v6841_v37  ;;  %v6849_v32 = vld [vmem:[#allocation4 + $0x908] ss:$28 sps:$4 sm:$0xff]   ;;  %v6856_v37 = vld [vmem:[#allocation4 + $0x8d4] ss:$28 sps:$4 sm:$0xff]  }
 0x172   :  { %v7730_v62 = vadd.f32 %v2551_v5, %v2438_v44  ;;  %3124 = vmatprep.mubr.bf16.mxu0 %v7436_v46  ;;  %v2440_v42 = vpop.f32.mrf.mxu0  ;;  %3274 = vmatprep.subr.bf16.mxu0 %v6848_v49 }
 0x173   :  { %v2553_v19 = vpop.f32.mrf.mxu1  ;;  %3237 = vmatprep.mubr.bf16.mxu1 %v7438_v47 }
 0x174   :  { %9389 = vst [vmem:[#allocation43_spill] sm:$0xff] %v7730_v62  ;;  %v7734_v63 = vadd.f32 %v2553_v19, %v2440_v42  ;;  %v2442_v8 = vpop.f32.mrf.mxu0  ;;  %v6854_v42 = vld [vmem:[#allocation4 + $0x8d0] ss:$28 sps:$4 sm:$0xff]  }
 0x175   :  { %v2555_v26 = vpop.f32.mrf.mxu1  ;;  %3275 = vmatpush2.bf16.msra.mxu0 %v6846_v27 }
 0x176   :  { %v7736_v30 = vadd.f32 %v2555_v26, %v2442_v8  ;;  %v2444_v5 = vpop.f32.mrf.mxu0  ;;  %3276 = vmatprep.subr.bf16.mxu0 %v6851_v34  ;;  %v6857_v34 = vld [vmem:[#allocation4 + $0x6e0] ss:$28 sps:$4 sm:$0xff]  }
 0x177   :  { %v2557_v44 = vpop.f32.mrf.mxu1 }
 0x178   :  { %v7738_v13 = vadd.f32 %v2557_v44, %v2444_v5  ;;  %v2448_v46 = vpop.f32.mrf.mxu0  ;;  %3125 = vmatmul.mubr.bf16.gmra.mxu0 %v7456_v60 }
 0x179   :  { %v2561_v62 = vpop.f32.mrf.mxu1  ;;  %3238 = vmatmul.mubr.bf16.gmra.mxu1 %v7458_v61  ;;  %3277 = vmatpush2.bf16.msra.mxu0 %v6849_v32  ;;  %v6858_v61 = vld [vmem:[#allocation4 + $0x520] ss:$28 sps:$4 sm:$0xff]  }
 0x17a   :  { %v7742_v49 = vadd.f32 %v2561_v62, %v2448_v46  ;;  %3280 = vmatprep.mubr.bf16.mxu0 %v7466_v10  ;;  %v2450_v27 = vpop.f32.mrf.mxu0  ;;  %3278 = vmatprep.subr.bf16.mxu0 %v6856_v37  ;;  %v6860_v46 = vld [vmem:[#allocation4 + $0x8a0] ss:$28 sps:$4 sm:$0xff]   ;;  %v6861_v10 = vld [vmem:[#allocation4 + $0x6a8] ss:$28 sps:$4 sm:$0xff]  }
 0x17b   :  { %v2563_v19 = vpop.f32.mrf.mxu1  ;;  %3393 = vmatprep.mubr.bf16.mxu1 %v7186_v53 }
 0x17c   :  { %9390 = vst [vmem:[#allocation44_spill] sm:$0xff] %v7742_v49  ;;  %v7746_v8 = vadd.f32 %v2563_v19, %v2450_v27  ;;  %v2452_v26 = vpop.f32.mrf.mxu0  ;;  %v6863_v49 = vld [vmem:[#allocation4 + $0xa28] ss:$28 sps:$4 sm:$0xff]  }
 0x17d   :  { %v2565_v5 = vpop.f32.mrf.mxu1  ;;  %3279 = vmatpush2.bf16.msra.mxu0 %v6854_v42  ;;  %v6862_v42 = vld [vmem:[#allocation4 + $0x4e8] ss:$28 sps:$4 sm:$0xff]  }
 0x17e   :  { %v7748_v44 = vadd.f32 %v2565_v5, %v2452_v26  ;;  %v2454_v62 = vpop.f32.mrf.mxu0  ;;  %6159 = vmatprep.subr.bf16.mxu0 %v6857_v34  ;;  %v6864_v27 = vld [vmem:[#allocation4 + $0x868] ss:$28 sps:$4 sm:$0xff]   ;;  %v6865_v26 = vld [vmem:[#allocation4 + $0x670] ss:$28 sps:$4 sm:$0xff]  }
 0x17f   :  { %v2567_v32 = vpop.f32.mrf.mxu1  ;;  %v6867_v5 = vld [vmem:[#allocation4 + $0x9f0] ss:$28 sps:$4 sm:$0xff]  }
 0x180   :  { %v7750_v47 = vadd.f32 %v2567_v32, %v2454_v62  ;;  %v2604_v37 = vpop.f32.mrf.mxu0  ;;  %3281 = vmatmul.mubr.bf16.vlgmr.msra.gmra.mxu0 %v7478_v22 }
 0x181   :  { %v7752_v60 = vpop.f32.mrf.mxu1  ;;  %3394 = vmatmul.mubr.bf16.vlgmr.msra.gmra.mxu1 %v7210_v16  ;;  %v7757_v53 = vadd.f32 %v2604_v37, %v7658_v21  ;;  %6160 = vmatpush3.bf16.msra.mxu0 %v6858_v61  ;;  %v6868_v37 = vld [vmem:[#allocation4 + $0x830] ss:$28 sps:$4 sm:$0xff]  }
 0x182   :  { %6224 = vmatpush3.bf16.msra.mxu1 %v6860_v46  ;;  %v2606_v19 = vpop.f32.mrf.mxu0  ;;  %3290 = vmatprep.mubr.bf16.mxu0 %v7486_v35 }
 0x183   :  { %v7759_v34 = vpop.f32.mrf.mxu1  ;;  %3401 = vmatprep.mubr.bf16.mxu1 %v7220_v23  ;;  %v7764_v62 = vadd.f32 %v2606_v19, %v7661_v38  ;;  %6161 = vmatprep.subr.bf16.mxu0 %v6861_v10  ;;  %v6866_v23 = vld [vmem:[#allocation4 + $0x4b0] ss:$28 sps:$4 sm:$0xff]   ;;  %v6869_v10 = vld [vmem:[#allocation4 + $0x638] ss:$28 sps:$4 sm:$0xff]  }
 0x184   :  { %6225 = vmatprep.subr.bf16.mxu1 %v6863_v49  ;;  %v2608_v16 = vpop.f32.mrf.mxu0  ;;  %v6871_v49 = vld [vmem:[#allocation4 + $0x9b8] ss:$28 sps:$4 sm:$0xff]  }
 0x185   :  { %9391 = vst [vmem:[#allocation45_spill] sm:$0xff] %v7764_v62  ;;  %v7766_v21 = vpop.f32.mrf.mxu1  ;;  %v7769_v61 = vadd.f32 %v2608_v16, %v7664_v17  ;;  %6162 = vmatpush3.bf16.msra.mxu0 %v6862_v42  ;;  %v6875_v16 = vld [vmem:[#allocation4 + $0x980] ss:$28 sps:$4 sm:$0xff]  }
 0x186   :  { %6226 = vmatpush3.bf16.msra.mxu1 %v6864_v27  ;;  %v2610_v46 = vpop.f32.mrf.mxu0  ;;  %6163 = vmatprep.subr.bf16.mxu0 %v6865_v26  ;;  %v6872_v26 = vld [vmem:[#allocation4 + $0x7f8] ss:$28 sps:$4 sm:$0xff]  }
 0x187   :  { %v7771_v32 = vpop.f32.mrf.mxu1  ;;  %6227 = vmatprep.subr.bf16.mxu1 %v6867_v5  ;;  %v7774_v38 = vadd.f32 %v2610_v46, %v7666_v57  ;;  %v6870_v57 = vld [vmem:[#allocation4 + $0x478] ss:$28 sps:$4 sm:$0xff]  }
 0x188   :  { %v2614_v19 = vpop.f32.mrf.mxu0  ;;  %3291 = vmatmul.mubr.bf16.gmra.mxu0 %v7498_v55 }
 0x189   :  { %v7776_v62 = vpop.f32.mrf.mxu1  ;;  %3402 = vmatmul.mubr.bf16.gmra.mxu1 %v7246_v36  ;;  %v7781_v17 = vadd.f32 %v2614_v19, %v7670_v45  ;;  %3300 = vmatprep.mubr.bf16.mxu0 %v7506_v0  ;;  %v6873_v36 = vld [vmem:[#allocation4 + $0x600] ss:$28 sps:$4 sm:$0xff]  }
 0x18a   :  { %3409 = vmatprep.mubr.bf16.mxu1 %v7256_v43  ;;  %v2616_v42 = vpop.f32.mrf.mxu0  ;;  %6164 = vmatpush3.bf16.msra.mxu0 %v6866_v23  ;;  %v6874_v23 = vld [vmem:[#allocation4 + $0x440] ss:$28 sps:$4 sm:$0xff]  }
 0x18b   :  { %9392 = vst [vmem:[#allocation46_spill] sm:$0xff] %v7781_v17  ;;  %v7785_v27 = vpop.f32.mrf.mxu1  ;;  %6228 = vmatpush3.bf16.msra.mxu1 %v6868_v37  ;;  %v7788_v5 = vadd.f32 %v2616_v42, %v7674_v48  ;;  %6165 = vmatprep.subr.bf16.mxu0 %v6869_v10  ;;  %v6876_v37 = vld [vmem:[#allocation4 + $0x7c0] ss:$28 sps:$4 sm:$0xff]   ;;  %v6877_v10 = vld [vmem:[#allocation4 + $0x5c8] ss:$28 sps:$4 sm:$0xff]  }
 0x18c   :  { %6229 = vmatprep.subr.bf16.mxu1 %v6871_v49  ;;  %v2618_v45 = vpop.f32.mrf.mxu0  ;;  %v6879_v49 = vld [vmem:[#allocation4 + $0x948] ss:$28 sps:$4 sm:$0xff]  }
 0x18d   :  { %9393 = vst [vmem:[#allocation47_spill] sm:$0xff] %v7788_v5  ;;  %v7790_v46 = vpop.f32.mrf.mxu1  ;;  %v7793_v19 = vadd.f32 %v2618_v45, %v7676_v29  ;;  %v6883_v45 = vld [vmem:[#allocation4 + $0x910] ss:$28 sps:$4 sm:$0xff]  }
 0x18e   :  { %v2620_v43 = vpop.f32.mrf.mxu0  ;;  %6166 = vmatpush3.bf16.msra.mxu0 %v6870_v57 }
 0x18f   :  { %v7795_v17 = vpop.f32.mrf.mxu1  ;;  %6230 = vmatpush3.bf16.msra.mxu1 %v6872_v26  ;;  %v7798_v48 = vadd.f32 %v2620_v43, %v7678_v39  ;;  %6167 = vmatprep.subr.bf16.mxu0 %v6873_v36  ;;  %v6878_v26 = vld [vmem:[#allocation4 + $0x408] ss:$28 sps:$4 sm:$0xff]  }
 0x190   :  { %6231 = vmatprep.subr.bf16.mxu1 %v6875_v16  ;;  %v2624_v42 = vpop.f32.mrf.mxu0  ;;  %3301 = vmatmul.mubr.bf16.gmra.mxu0 %v7518_v20  ;;  %v6880_v36 = vld [vmem:[#allocation4 + $0x788] ss:$28 sps:$4 sm:$0xff]  }
 0x191   :  { %9394 = vst [vmem:[#allocation48_spill] sm:$0xff] %v7798_v48  ;;  %v7800_v5 = vpop.f32.mrf.mxu1  ;;  %3410 = vmatmul.mubr.bf16.gmra.mxu1 %v7282_v58  ;;  %v7805_v29 = vadd.f32 %v2624_v42, %v7682_v24  ;;  %3310 = vmatprep.mubr.bf16.mxu0 %v7526_v33  ;;  %v6881_v58 = vld [vmem:[#allocation4 + $0x590] ss:$28 sps:$4 sm:$0xff]  }
 0x192   :  { %3417 = vmatprep.mubr.bf16.mxu1 %v7292_v1  ;;  %v2626_v39 = vpop.f32.mrf.mxu0  ;;  %6168 = vmatpush3.bf16.msra.mxu0 %v6874_v23  ;;  %v6882_v23 = vld [vmem:[#allocation4 + $0x3d0] ss:$28 sps:$4 sm:$0xff]  }
 0x193   :  { %9395 = vst [vmem:[#allocation49_spill] sm:$0xff] %v7805_v29  ;;  %v7809_v57 = vpop.f32.mrf.mxu1  ;;  %6232 = vmatpush3.bf16.msra.mxu1 %v6876_v37  ;;  %v7812_v16 = vadd.f32 %v2626_v39, %v7686_v3  ;;  %6169 = vmatprep.subr.bf16.mxu0 %v6877_v10  ;;  %v6884_v37 = vld [vmem:[#allocation4 + $0x750] ss:$28 sps:$4 sm:$0xff]   ;;  %v6885_v10 = vld [vmem:[#allocation4 + $0x558] ss:$28 sps:$4 sm:$0xff]  }
 0x194   :  { %6233 = vmatprep.subr.bf16.mxu1 %v6879_v49  ;;  %v2628_v24 = vpop.f32.mrf.mxu0  ;;  %v6887_v49 = vld [vmem:[#allocation4 + $0x8d8] ss:$28 sps:$4 sm:$0xff]  }
 0x195   :  { %9396 = vst [vmem:[#allocation50_spill] sm:$0xff] %v7812_v16  ;;  %v7814_v43 = vpop.f32.mrf.mxu1  ;;  %v7817_v42 = vadd.f32 %v2628_v24, %v7688_v59 }
 0x196   :  { %v2630_v1 = vpop.f32.mrf.mxu0  ;;  %6170 = vmatpush3.bf16.msra.mxu0 %v6878_v26  ;;  %v9400_v26 = vld [vmem:[#allocation23_spill] sm:$0xff] }
 0x197   :  { %9397 = vst [vmem:[#allocation51_spill] sm:$0xff] %v7817_v42  ;;  %v7819_v29 = vpop.f32.mrf.mxu1  ;;  %6234 = vmatpush3.bf16.msra.mxu1 %v6880_v36  ;;  %v7822_v3 = vadd.f32 %v2630_v1, %v7690_v18  ;;  %6171 = vmatprep.subr.bf16.mxu0 %v6881_v58  ;;  %v6886_v58 = vld [vmem:[#allocation4 + $0x398] ss:$28 sps:$4 sm:$0xff]  }
 0x198   :  { %6235 = vmatprep.subr.bf16.mxu1 %v6883_v45  ;;  %v2634_v39 = vpop.f32.mrf.mxu0  ;;  %3311 = vmatmul.mubr.bf16.gmra.mxu0 %v7538_v51  ;;  %v6888_v45 = vld [vmem:[#allocation4 + $0x718] ss:$28 sps:$4 sm:$0xff]  }
 0x199   :  { %9398 = vst [vmem:[#allocation52_spill] sm:$0xff] %v7822_v3  ;;  %v7824_v16 = vpop.f32.mrf.mxu1  ;;  %3418 = vmatmul.mubr.bf16.gmra.mxu1 %v7318_v14  ;;  %v7829_v59 = vadd.f32 %v2634_v39, %v7694_v9  ;;  %3320 = vmatprep.mubr.bf16.mxu0 %v7546_v7  ;;  %v9427_v3 = vld [vmem:[#allocation33_spill] sm:$0xff] }
 0x19a   :  { %3425 = vmatprep.mubr.bf16.mxu1 %v9400_v26  ;;  %v2636_v18 = vpop.f32.mrf.mxu0  ;;  %6172 = vmatpush3.bf16.msra.mxu0 %v6882_v23 }
 0x19b   :  { %9399 = vst [vmem:[#allocation53_spill] sm:$0xff] %v7829_v59  ;;  %v7833_v36 = vpop.f32.mrf.mxu1  ;;  %6236 = vmatpush3.bf16.msra.mxu1 %v6884_v37  ;;  %v7836_v24 = vadd.f32 %v2636_v18, %v7698_v6  ;;  %6173 = vmatprep.subr.bf16.mxu0 %v6885_v10  ;;  %v9404_v6 = vld [vmem:[#allocation36_spill] sm:$0xff] }
 0x19c   :  { %6237 = vmatprep.subr.bf16.mxu1 %v6887_v49  ;;  %v2638_v14 = vpop.f32.mrf.mxu0  ;;  %v9407_v49 = vld [vmem:[#allocation26_spill] sm:$0xff] }
 0x19d   :  { %9401 = vst [vmem:[#allocation23_spill] sm:$0xff] %v7836_v24  ;;  %v7838_v1 = vpop.f32.mrf.mxu1  ;;  %v7841_v9 = vadd.f32 %v2638_v14, %v7700_v15  ;;  %v9406_v15 = vld [vmem:[#allocation37_spill] sm:$0xff] }
 0x19e   :  { %v2640_v39 = vpop.f32.mrf.mxu0  ;;  %6174 = vmatpush3.bf16.msra.mxu0 %v6886_v58 }
 0x19f   :  { %9402 = vst [vmem:[#allocation54_spill] sm:$0xff] %v7841_v9  ;;  %v7843_v26 = vpop.f32.mrf.mxu1  ;;  %6238 = vmatpush3.bf16.msra.mxu1 %v6888_v45  ;;  %v7846_v23 = vadd.f32 %v2640_v39, %v7702_v25 }
 0x1a0   :  { %v2644_v37 = vpop.f32.mrf.mxu0  ;;  %3321 = vmatmul.mubr.bf16.gmra.mxu0 %v9404_v6 }
 0x1a1   :  { %9403 = vst [vmem:[#allocation55_spill] sm:$0xff] %v7846_v23  ;;  %v7848_v59 = vpop.f32.mrf.mxu1  ;;  %3426 = vmatmul.mubr.bf16.gmra.mxu1 %v7354_v40  ;;  %v7853_v10 = vadd.f32 %v2644_v37, %v7706_v52  ;;  %3330 = vmatprep.mubr.bf16.mxu0 %v9406_v15 }
 0x1a2   :  { %3433 = vmatprep.mubr.bf16.mxu1 %v9407_v49  ;;  %v2646_v18 = vpop.f32.mrf.mxu0 }
 0x1a3   :  { %9405 = vst [vmem:[#allocation36_spill] sm:$0xff] %v7853_v10  ;;  %v7857_v58 = vpop.f32.mrf.mxu1  ;;  %v7860_v25 = vadd.f32 %v2646_v18, %v7710_v11  ;;  %v9412_v10 = vld [vmem:[#allocation38_spill] sm:$0xff]  ;;  %v9414_v18 = vld [vmem:[#allocation39_spill] sm:$0xff] }
 0x1a4   :  { %v2648_v45 = vpop.f32.mrf.mxu0 }
 0x1a5   :  { %9408 = vst [vmem:[#allocation37_spill] sm:$0xff] %v7860_v25  ;;  %v7862_v14 = vpop.f32.mrf.mxu1  ;;  %v7865_v39 = vadd.f32 %v2648_v45, %v7712_v41 }
 0x1a6   :  { %v2650_v40 = vpop.f32.mrf.mxu0 }
 0x1a7   :  { %9409 = vst [vmem:[#allocation26_spill] sm:$0xff] %v7865_v39  ;;  %v7867_v23 = vpop.f32.mrf.mxu1  ;;  %v7870_v52 = vadd.f32 %v2650_v40, %v7714_v56 }
 0x1a8   :  { %9410 = vst [vmem:[#allocation56_spill] sm:$0xff] %v7867_v23  ;;  %v2654_v37 = vpop.f32.mrf.mxu0  ;;  %3331 = vmatmul.mubr.bf16.gmra.mxu0 %v9412_v10 }
 0x1a9   :  { %9411 = vst [vmem:[#allocation57_spill] sm:$0xff] %v7870_v52  ;;  %v7872_v49 = vpop.f32.mrf.mxu1  ;;  %3434 = vmatmul.mubr.bf16.gmra.mxu1 %v7390_v4  ;;  %v7877_v11 = vadd.f32 %v2654_v37, %v7718_v2  ;;  %3340 = vmatprep.mubr.bf16.mxu0 %v9414_v18 }
 0x1aa   :  { %3441 = vmatprep.mubr.bf16.mxu1 %v7400_v12  ;;  %v2656_v41 = vpop.f32.mrf.mxu0 }
 0x1ab   :  { %9413 = vst [vmem:[#allocation38_spill] sm:$0xff] %v7877_v11  ;;  %v7881_v45 = vpop.f32.mrf.mxu1  ;;  %v7884_v56 = vadd.f32 %v2656_v41, %v7722_v28  ;;  %v9418_v11 = vld [vmem:[#allocation40_spill] sm:$0xff]  ;;  %v9419_v28 = vld [vmem:[#allocation43_spill] sm:$0xff] }
 0x1ac   :  { %v2658_v40 = vpop.f32.mrf.mxu0 }
 0x1ad   :  { %9415 = vst [vmem:[#allocation39_spill] sm:$0xff] %v7884_v56  ;;  %v7886_v52 = vpop.f32.mrf.mxu1  ;;  %v7889_v39 = vadd.f32 %v2658_v40, %v7724_v54  ;;  %v9421_v56 = vld [vmem:[#allocation41_spill] sm:$0xff]  ;;  %v9422_v54 = vld [vmem:[#allocation31_spill] sm:$0xff] }
 0x1ae   :  { %v2660_v4 = vpop.f32.mrf.mxu0 }
 0x1af   :  { %9416 = vst [vmem:[#allocation58_spill] sm:$0xff] %v7889_v39  ;;  %v7891_v25 = vpop.f32.mrf.mxu1  ;;  %v7894_v2 = vadd.f32 %v2660_v4, %v7726_v50 }
 0x1b0   :  { %v2664_v37 = vpop.f32.mrf.mxu0  ;;  %3341 = vmatmul.mubr.bf16.gmra.mxu0 %v9418_v11 }
 0x1b1   :  { %9417 = vst [vmem:[#allocation59_spill] sm:$0xff] %v7894_v2  ;;  %v7896_v12 = vpop.f32.mrf.mxu1  ;;  %3442 = vmatmul.mubr.bf16.gmra.mxu1 %v7426_v31  ;;  %v7901_v41 = vadd.f32 %v2664_v37, %v9419_v28  ;;  %3350 = vmatprep.mubr.bf16.mxu0 %v9421_v56 }
 0x1b2   :  { %3449 = vmatprep.mubr.bf16.mxu1 %v9422_v54  ;;  %v2666_v40 = vpop.f32.mrf.mxu0 }
 0x1b3   :  { %9420 = vst [vmem:[#allocation40_spill] sm:$0xff] %v7901_v41  ;;  %v7905_v39 = vpop.f32.mrf.mxu1  ;;  %v7908_v50 = vadd.f32 %v2666_v40, %v7734_v63  ;;  %v9426_v41 = vld [vmem:[#allocation42_spill] sm:$0xff]  ;;  %v9428_v63 = vld [vmem:[#allocation44_spill] sm:$0xff] }
 0x1b4   :  { %v2668_v4 = vpop.f32.mrf.mxu0 }
 0x1b5   :  { %9423 = vst [vmem:[#allocation43_spill] sm:$0xff] %v7908_v50  ;;  %v7910_v2 = vpop.f32.mrf.mxu1  ;;  %v7913_v24 = vadd.f32 %v2668_v4, %v7736_v30  ;;  %v9430_v50 = vld [vmem:[#allocation15_spill] sm:$0xff] }
 0x1b6   :  { %v2670_v31 = vpop.f32.mrf.mxu0  ;;  %v9431_v30 = vld [vmem:[#allocation35_spill] sm:$0xff] }
 0x1b7   :  { %9424 = vst [vmem:[#allocation41_spill] sm:$0xff] %v7913_v24  ;;  %v7915_v9 = vpop.f32.mrf.mxu1  ;;  %v7918_v37 = vadd.f32 %v2670_v31, %v7738_v13 }
 0x1b8   :  { %v2674_v28 = vpop.f32.mrf.mxu0  ;;  %3351 = vmatmul.mubr.bf16.gmra.mxu0 %v9426_v41 }
 0x1b9   :  { %9425 = vst [vmem:[#allocation31_spill] sm:$0xff] %v7918_v37  ;;  %v7920_v54 = vpop.f32.mrf.mxu1  ;;  %3450 = vmatmul.mubr.bf16.gmra.mxu1 %v9427_v3  ;;  %v7925_v40 = vadd.f32 %v2674_v28, %v9428_v63  ;;  %3490 = vmatprep.mubr.bf16.mxu0 %v9430_v50 }
 0x1ba   :  { %3587 = vmatprep.mubr.bf16.mxu1 %v9431_v30  ;;  %v2676_v4 = vpop.f32.mrf.mxu0  ;;  %v9435_v30 = vld [vmem:[#allocation16_spill] sm:$0xff] }
 0x1bb   :  { %9429 = vst [vmem:[#allocation42_spill] sm:$0xff] %v7925_v40  ;;  %v7929_v24 = vpop.f32.mrf.mxu1  ;;  %v7932_v13 = vadd.f32 %v2676_v4, %v7746_v8  ;;  %v9436_v4 = vld [vmem:[#allocation17_spill] sm:$0xff] }
 0x1bc   :  { %v2678_v31 = vpop.f32.mrf.mxu0 }
 0x1bd   :  { %9432 = vst [vmem:[#allocation33_spill] sm:$0xff] %v7932_v13  ;;  %v7934_v37 = vpop.f32.mrf.mxu1  ;;  %v7937_v42 = vadd.f32 %v2678_v31, %v7748_v44 }
 0x1be   :  { %v2680_v3 = vpop.f32.mrf.mxu0 }
 0x1bf   :  { %9433 = vst [vmem:[#allocation44_spill] sm:$0xff] %v7937_v42  ;;  %v7939_v23 = vpop.f32.mrf.mxu1  ;;  %v7942_v28 = vadd.f32 %v2680_v3, %v7750_v47 }
 0x1c0   :  { %v2830_v50 = vpop.f32.mrf.mxu0  ;;  %3491 = vmatmul.mubr.bf16.vlgmr.msra.gmra.mxu0 %v9435_v30 }
 0x1c1   :  { %9434 = vst [vmem:[#allocation15_spill] sm:$0xff] %v7942_v28  ;;  %v2943_v63 = vpop.f32.mrf.mxu1  ;;  %3588 = vmatmul.mubr.bf16.vlgmr.msra.gmra.mxu1 %v7478_v22  ;;  %v2831_v8 = vadd.f32 %v2830_v50, %v7752_v60  ;;  %3498 = vmatprep.mubr.bf16.mxu0 %v9436_v4  ;;  %v9437_v4 = vld [vmem:[#allocation18_spill] sm:$0xff] }
 0x1c2   :  { %3595 = vmatprep.mubr.bf16.mxu1 %v7486_v35  ;;  %v2832_v44 = vpop.f32.mrf.mxu0 }
 0x1c3   :  { %v2945_v31 = vpop.f32.mrf.mxu1  ;;  %v7949_v42 = vadd.f32 %v2943_v63, %v2831_v8  ;;  %v2833_v13 = vadd.f32 %v2832_v44, %v7759_v34 }
 0x1c4   :  { %v2834_v47 = vpop.f32.mrf.mxu0 }
 0x1c5   :  { %v2947_v3 = vpop.f32.mrf.mxu1  ;;  %v7952_v28 = vadd.f32 %v2945_v31, %v2833_v13  ;;  %v2835_v30 = vadd.f32 %v2834_v47, %v7766_v21  ;;  %v9438_v13 = vld [vmem:[#allocation19_spill] sm:$0xff] }
 0x1c6   :  { %v2836_v40 = vpop.f32.mrf.mxu0 }
 0x1c7   :  { %v2949_v22 = vpop.f32.mrf.mxu1  ;;  %v7955_v48 = vadd.f32 %v2947_v3, %v2835_v30  ;;  %v2837_v60 = vadd.f32 %v2836_v40, %v7771_v32 }
 0x1c8   :  { %v2840_v50 = vpop.f32.mrf.mxu0  ;;  %3499 = vmatmul.mubr.bf16.gmra.mxu0 %v9437_v4  ;;  %v9442_v4 = vld [vmem:[#allocation21_spill] sm:$0xff] }
 0x1c9   :  { %v2953_v35 = vpop.f32.mrf.mxu1  ;;  %3596 = vmatmul.mubr.bf16.gmra.mxu1 %v7498_v55  ;;  %v7960_v63 = vadd.f32 %v2949_v22, %v2837_v60  ;;  %v2841_v34 = vadd.f32 %v2840_v50, %v7776_v62  ;;  %3506 = vmatprep.mubr.bf16.mxu0 %v9438_v13  ;;  %v9441_v50 = vld [vmem:[#allocation20_spill] sm:$0xff] }
 0x1ca   :  { %3603 = vmatprep.mubr.bf16.mxu1 %v7506_v0  ;;  %v2842_v21 = vpop.f32.mrf.mxu0 }
 0x1cb   :  { %v2955_v8 = vpop.f32.mrf.mxu1  ;;  %v7965_v44 = vadd.f32 %v2953_v35, %v2841_v34  ;;  %v2843_v32 = vadd.f32 %v2842_v21, %v7785_v27 }
 0x1cc   :  { %v2844_v40 = vpop.f32.mrf.mxu0 }
 0x1cd   :  { %9439 = vst [vmem:[#allocation35_spill] sm:$0xff] %v7965_v44  ;;  %v2957_v31 = vpop.f32.mrf.mxu1  ;;  %v7968_v47 = vadd.f32 %v2955_v8, %v2843_v32  ;;  %v2845_v55 = vadd.f32 %v2844_v40, %v7790_v46 }
 0x1ce   :  { %v2846_v3 = vpop.f32.mrf.mxu0 }
 0x1cf   :  { %9440 = vst [vmem:[#allocation16_spill] sm:$0xff] %v7968_v47  ;;  %v2959_v30 = vpop.f32.mrf.mxu1  ;;  %v7971_v22 = vadd.f32 %v2957_v31, %v2845_v55  ;;  %v2847_v62 = vadd.f32 %v2846_v3, %v7795_v17 }
 0x1d0   :  { %v2850_v60 = vpop.f32.mrf.mxu0  ;;  %3507 = vmatmul.mubr.bf16.gmra.mxu0 %v9441_v50 }
 0x1d1   :  { %v2963_v0 = vpop.f32.mrf.mxu1  ;;  %3604 = vmatmul.mubr.bf16.gmra.mxu1 %v7518_v20  ;;  %v7976_v35 = vadd.f32 %v2959_v30, %v2847_v62  ;;  %v2851_v27 = vadd.f32 %v2850_v60, %v7800_v5  ;;  %3514 = vmatprep.mubr.bf16.mxu0 %v9442_v4  ;;  %v9446_v30 = vld [vmem:[#allocation22_spill] sm:$0xff]  ;;  %v9448_v60 = vld [vmem:[#allocation24_spill] sm:$0xff] }
 0x1d2   :  { %3611 = vmatprep.mubr.bf16.mxu1 %v7526_v33  ;;  %v2852_v46 = vpop.f32.mrf.mxu0 }
 0x1d3   :  { %v2965_v34 = vpop.f32.mrf.mxu1  ;;  %v7981_v13 = vadd.f32 %v2963_v0, %v2851_v27  ;;  %v2853_v17 = vadd.f32 %v2852_v46, %v7809_v57 }
 0x1d4   :  { %v2854_v21 = vpop.f32.mrf.mxu0 }
 0x1d5   :  { %9443 = vst [vmem:[#allocation17_spill] sm:$0xff] %v7981_v13  ;;  %v2967_v8 = vpop.f32.mrf.mxu1  ;;  %v7984_v32 = vadd.f32 %v2965_v34, %v2853_v17  ;;  %v2855_v20 = vadd.f32 %v2854_v21, %v7814_v43 }
 0x1d6   :  { %v2856_v40 = vpop.f32.mrf.mxu0 }
 0x1d7   :  { %9444 = vst [vmem:[#allocation18_spill] sm:$0xff] %v7984_v32  ;;  %v2969_v31 = vpop.f32.mrf.mxu1  ;;  %v7987_v55 = vadd.f32 %v2967_v8, %v2855_v20  ;;  %v2857_v5 = vadd.f32 %v2856_v40, %v7819_v29  ;;  %v9452_v20 = vld [vmem:[#allocation25_spill] sm:$0xff] }
 0x1d8   :  { %v2860_v3 = vpop.f32.mrf.mxu0  ;;  %3515 = vmatmul.mubr.bf16.gmra.mxu0 %v9446_v30 }
 0x1d9   :  { %9445 = vst [vmem:[#allocation19_spill] sm:$0xff] %v7987_v55  ;;  %v2973_v33 = vpop.f32.mrf.mxu1  ;;  %3612 = vmatmul.mubr.bf16.gmra.mxu1 %v7538_v51  ;;  %v7992_v62 = vadd.f32 %v2969_v31, %v2857_v5  ;;  %v2861_v57 = vadd.f32 %v2860_v3, %v7824_v16  ;;  %3522 = vmatprep.mubr.bf16.mxu0 %v9448_v60  ;;  %v9454_v31 = vld [vmem:[#allocation27_spill] sm:$0xff] }
 0x1da   :  { %3619 = vmatprep.mubr.bf16.mxu1 %v7546_v7  ;;  %v2862_v43 = vpop.f32.mrf.mxu0 }
 0x1db   :  { %9447 = vst [vmem:[#allocation20_spill] sm:$0xff] %v7992_v62  ;;  %v2975_v0 = vpop.f32.mrf.mxu1  ;;  %v7997_v50 = vadd.f32 %v2973_v33, %v2861_v57  ;;  %v2863_v29 = vadd.f32 %v2862_v43, %v7833_v36 }
 0x1dc   :  { %v2864_v27 = vpop.f32.mrf.mxu0 }
 0x1dd   :  { %9449 = vst [vmem:[#allocation21_spill] sm:$0xff] %v7997_v50  ;;  %v2977_v4 = vpop.f32.mrf.mxu1  ;;  %v8000_v46 = vadd.f32 %v2975_v0, %v2863_v29  ;;  %v2865_v51 = vadd.f32 %v2864_v27, %v7838_v1  ;;  %v9460_v29 = vld [vmem:[#allocation28_spill] sm:$0xff]  ;;  %v9461_v27 = vld [vmem:[#allocation29_spill] sm:$0xff] }
 0x1de   :  { %v2866_v34 = vpop.f32.mrf.mxu0 }
 0x1df   :  { %9450 = vst [vmem:[#allocation22_spill] sm:$0xff] %v8000_v46  ;;  %v2979_v17 = vpop.f32.mrf.mxu1  ;;  %v8003_v21 = vadd.f32 %v2977_v4, %v2865_v51  ;;  %v2867_v16 = vadd.f32 %v2866_v34, %v7843_v26 }
 0x1e0   :  { %v2870_v8 = vpop.f32.mrf.mxu0  ;;  %3523 = vmatmul.mubr.bf16.gmra.mxu0 %v9452_v20 }
 0x1e1   :  { %9451 = vst [vmem:[#allocation24_spill] sm:$0xff] %v8003_v21  ;;  %v2983_v7 = vpop.f32.mrf.mxu1  ;;  %3620 = vmatmul.mubr.bf16.gmra.mxu1 %v9404_v6  ;;  %v8008_v40 = vadd.f32 %v2979_v17, %v2867_v16  ;;  %v2871_v36 = vadd.f32 %v2870_v8, %v7848_v59  ;;  %3530 = vmatprep.mubr.bf16.mxu0 %v9454_v31 }
 0x1e2   :  { %3627 = vmatprep.mubr.bf16.mxu1 %v9406_v15  ;;  %v2872_v1 = vpop.f32.mrf.mxu0 }
 0x1e3   :  { %9453 = vst [vmem:[#allocation25_spill] sm:$0xff] %v8008_v40  ;;  %v2985_v5 = vpop.f32.mrf.mxu1  ;;  %v8013_v3 = vadd.f32 %v2983_v7, %v2871_v36  ;;  %v2873_v26 = vadd.f32 %v2872_v1, %v7857_v58  ;;  %v9465_v1 = vld [vmem:[#allocation30_spill] sm:$0xff] }
 0x1e4   :  { %v2874_v33 = vpop.f32.mrf.mxu0 }
 0x1e5   :  { %9455 = vst [vmem:[#allocation27_spill] sm:$0xff] %v8013_v3  ;;  %v2987_v30 = vpop.f32.mrf.mxu1  ;;  %v8016_v57 = vadd.f32 %v2985_v5, %v2873_v26  ;;  %v2875_v6 = vadd.f32 %v2874_v33, %v7862_v14  ;;  %v9467_v26 = vld [vmem:[#allocation32_spill] sm:$0xff] }
 0x1e6   :  { %v8019_v60 = vpop.f32.mrf.mxu0 }
 0x1e7   :  { %9456 = vst [vmem:[#allocation60_spill] sm:$0xff] %v8016_v57  ;;  %9457 = vst [vmem:[#allocation61_spill] sm:$0xff] %v8019_v60  ;;  %v8021_v43 = vpop.f32.mrf.mxu1  ;;  %v8023_v59 = vadd.f32 %v2987_v30, %v2875_v6 }
 0x1e8   :  { %9458 = vst [vmem:[#allocation62_spill] sm:$0xff] %v8021_v43  ;;  %v2880_v0 = vpop.f32.mrf.mxu0  ;;  %3531 = vmatmul.mubr.bf16.gmra.mxu0 %v9460_v29 }
 0x1e9   :  { %9459 = vst [vmem:[#allocation63_spill] sm:$0xff] %v8023_v59  ;;  %v2993_v15 = vpop.f32.mrf.mxu1  ;;  %3628 = vmatmul.mubr.bf16.gmra.mxu1 %v9412_v10  ;;  %v2881_v58 = vadd.f32 %v2880_v0, %v7872_v49  ;;  %3538 = vmatprep.mubr.bf16.mxu0 %v9461_v27 }
 0x1ea   :  { %3635 = vmatprep.mubr.bf16.mxu1 %v9414_v18  ;;  %v2882_v4 = vpop.f32.mrf.mxu0 }
 0x1eb   :  { %v2995_v14 = vpop.f32.mrf.mxu1  ;;  %v8030_v51 = vadd.f32 %v2993_v15, %v2881_v58  ;;  %v2883_v34 = vadd.f32 %v2882_v4, %v7881_v45 }
 0x1ec   :  { %v2884_v17 = vpop.f32.mrf.mxu0 }
 0x1ed   :  { %9462 = vst [vmem:[#allocation28_spill] sm:$0xff] %v8030_v51  ;;  %v2997_v16 = vpop.f32.mrf.mxu1  ;;  %v8033_v8 = vadd.f32 %v2995_v14, %v2883_v34  ;;  %v2885_v7 = vadd.f32 %v2884_v17, %v7886_v52  ;;  %v9471_v14 = vld [vmem:[#allocation34_spill] sm:$0xff] }
 0x1ee   :  { %v2886_v20 = vpop.f32.mrf.mxu0 }
 0x1ef   :  { %9463 = vst [vmem:[#allocation29_spill] sm:$0xff] %v8033_v8  ;;  %v2999_v10 = vpop.f32.mrf.mxu1  ;;  %v8036_v36 = vadd.f32 %v2997_v16, %v2885_v7  ;;  %v2887_v49 = vadd.f32 %v2886_v20, %v7891_v25 }
 0x1f0   :  { %v2890_v31 = vpop.f32.mrf.mxu0  ;;  %3539 = vmatmul.mubr.bf16.gmra.mxu0 %v9465_v1 }
 0x1f1   :  { %9464 = vst [vmem:[#allocation64_spill] sm:$0xff] %v8036_v36  ;;  %v3003_v18 = vpop.f32.mrf.mxu1  ;;  %3636 = vmatmul.mubr.bf16.gmra.mxu1 %v9418_v11  ;;  %v8041_v5 = vadd.f32 %v2999_v10, %v2887_v49  ;;  %v2891_v45 = vadd.f32 %v2890_v31, %v7896_v12  ;;  %3546 = vmatprep.mubr.bf16.mxu0 %v9467_v26 }
 0x1f2   :  { %3643 = vmatprep.mubr.bf16.mxu1 %v9421_v56  ;;  %v2892_v52 = vpop.f32.mrf.mxu0 }
 0x1f3   :  { %9466 = vst [vmem:[#allocation30_spill] sm:$0xff] %v8041_v5  ;;  %v3005_v33 = vpop.f32.mrf.mxu1  ;;  %v8046_v30 = vadd.f32 %v3003_v18, %v2891_v45  ;;  %v2893_v25 = vadd.f32 %v2892_v52, %v7905_v39 }
 0x1f4   :  { %v2894_v6 = vpop.f32.mrf.mxu0 }
 0x1f5   :  { %9468 = vst [vmem:[#allocation32_spill] sm:$0xff] %v8046_v30  ;;  %v3007_v0 = vpop.f32.mrf.mxu1  ;;  %v8049_v15 = vadd.f32 %v3005_v33, %v2893_v25  ;;  %v2895_v11 = vadd.f32 %v2894_v6, %v7910_v2 }
 0x1f6   :  { %v2896_v29 = vpop.f32.mrf.mxu0 }
 0x1f7   :  { %9469 = vst [vmem:[#allocation65_spill] sm:$0xff] %v8049_v15  ;;  %v3009_v58 = vpop.f32.mrf.mxu1  ;;  %v8052_v27 = vadd.f32 %v3007_v0, %v2895_v11  ;;  %v2897_v12 = vadd.f32 %v2896_v29, %v7915_v9 }
 0x1f8   :  { %v2900_v4 = vpop.f32.mrf.mxu0  ;;  %3547 = vmatmul.mubr.bf16.gmra.mxu0 %v9471_v14 }
 0x1f9   :  { %9470 = vst [vmem:[#allocation66_spill] sm:$0xff] %v8052_v27  ;;  %v3013_v56 = vpop.f32.mrf.mxu1  ;;  %3644 = vmatmul.mubr.bf16.gmra.mxu1 %v9426_v41  ;;  %v8057_v34 = vadd.f32 %v3009_v58, %v2897_v12  ;;  %v2901_v39 = vadd.f32 %v2900_v4, %v7920_v54 }
 0x1fa   :  { %v2902_v17 = vpop.f32.mrf.mxu0 }
 0x1fb   :  { %9472 = vst [vmem:[#allocation34_spill] sm:$0xff] %v8057_v34  ;;  %v3015_v16 = vpop.f32.mrf.mxu1  ;;  %v8060_v7 = vadd.f32 %v3013_v56, %v2901_v39  ;;  %v2903_v2 = vadd.f32 %v2902_v17, %v7929_v24 }
 0x1fc   :  { %v2904_v20 = vpop.f32.mrf.mxu0 }
 0x1fd   :  { %9473 = vst [vmem:[#allocation67_spill] sm:$0xff] %v8060_v7  ;;  %v3017_v10 = vpop.f32.mrf.mxu1  ;;  %v8063_v49 = vadd.f32 %v3015_v16, %v2903_v2  ;;  %v2905_v9 = vadd.f32 %v2904_v20, %v7934_v37 }
 0x1fe   :  { %v2906_v31 = vpop.f32.mrf.mxu0 }
 0x1ff   :  { %9474 = vst [vmem:[#allocation68_spill] sm:$0xff] %v8063_v49  ;;  %v3019_v18 = vpop.f32.mrf.mxu1  ;;  %v8066_v1 = vadd.f32 %v3017_v10, %v2905_v9  ;;  %v2907_v41 = vadd.f32 %v2906_v31, %v7939_v23 }
 0x200   :  { %v3056_v45 = vpop.f32.mrf.mxu0 }
 0x201   :  { %9475 = vst [vmem:[#allocation69_spill] sm:$0xff] %v8066_v1  ;;  %v3169_v54 = vpop.f32.mrf.mxu1  ;;  %v8069_v26 = vadd.f32 %v3019_v18, %v2907_v41 }
 0x202   :  { %v8071_v52 = vadd.f32 %v3169_v54, %v3056_v45  ;;  %v3058_v33 = vpop.f32.mrf.mxu0 }
 0x203   :  { %9476 = vst [vmem:[#allocation70_spill] sm:$0xff] %v8069_v26  ;;  %v3171_v24 = vpop.f32.mrf.mxu1 }
 0x204   :  { %v8073_v25 = vadd.f32 %v3171_v24, %v3058_v33  ;;  %v3060_v6 = vpop.f32.mrf.mxu0 }
 0x205   :  { %v3173_v0 = vpop.f32.mrf.mxu1 }
 0x206   :  { %v8075_v11 = vadd.f32 %v3173_v0, %v3060_v6  ;;  %v3062_v37 = vpop.f32.mrf.mxu0 }
 0x207   :  { %v3175_v29 = vpop.f32.mrf.mxu1 }
 0x208   :  { %v8077_v58 = vadd.f32 %v3175_v29, %v3062_v37  ;;  %v3066_v12 = vpop.f32.mrf.mxu0 }
 0x209   :  { %v3179_v23 = vpop.f32.mrf.mxu1 }
 0x20a   :  { %v8079_v4 = vadd.f32 %v3179_v23, %v3066_v12  ;;  %v3068_v56 = vpop.f32.mrf.mxu0 }
 0x20b   :  { %v3181_v14 = vpop.f32.mrf.mxu1 }
 0x20c   :  { %v8081_v39 = vadd.f32 %v3181_v14, %v3068_v56  ;;  %v3070_v17 = vpop.f32.mrf.mxu0 }
 0x20d   :  { %v3183_v16 = vpop.f32.mrf.mxu1 }
 0x20e   :  { %v8083_v2 = vadd.f32 %v3183_v16, %v3070_v17  ;;  %v3072_v20 = vpop.f32.mrf.mxu0 }
 0x20f   :  { %v3185_v10 = vpop.f32.mrf.mxu1 }
 0x210   :  { %v8085_v9 = vadd.f32 %v3185_v10, %v3072_v20  ;;  %v3076_v31 = vpop.f32.mrf.mxu0 }
 0x211   :  { %v3189_v18 = vpop.f32.mrf.mxu1 }
 0x212   :  { %v8087_v41 = vadd.f32 %v3189_v18, %v3076_v31  ;;  %v3078_v45 = vpop.f32.mrf.mxu0 }
 0x213   :  { %v3191_v54 = vpop.f32.mrf.mxu1 }
 0x214   :  { %v8089_v33 = vadd.f32 %v3191_v54, %v3078_v45  ;;  %v3080_v24 = vpop.f32.mrf.mxu0 }
 0x215   :  { %v3193_v6 = vpop.f32.mrf.mxu1 }
 0x216   :  { %v8091_v0 = vadd.f32 %v3193_v6, %v3080_v24  ;;  %v3082_v37 = vpop.f32.mrf.mxu0 }
 0x217   :  { %v3195_v29 = vpop.f32.mrf.mxu1 }
 0x218   :  { %v8093_v12 = vadd.f32 %v3195_v29, %v3082_v37  ;;  %v3086_v23 = vpop.f32.mrf.mxu0 }
 0x219   :  { %v3199_v56 = vpop.f32.mrf.mxu1 }
 0x21a   :  { %v8095_v14 = vadd.f32 %v3199_v56, %v3086_v23  ;;  %v3088_v17 = vpop.f32.mrf.mxu0 }
 0x21b   :  { %v3201_v16 = vpop.f32.mrf.mxu1 }
 0x21c   :  { %v8097_v20 = vadd.f32 %v3201_v16, %v3088_v17  ;;  %v3090_v10 = vpop.f32.mrf.mxu0 }
 0x21d   :  { %v3203_v31 = vpop.f32.mrf.mxu1 }
 0x21e   :  { %v8099_v18 = vadd.f32 %v3203_v31, %v3090_v10  ;;  %v3092_v45 = vpop.f32.mrf.mxu0 }
 0x21f   :  { %v3205_v54 = vpop.f32.mrf.mxu1 }
 0x220   :  { %v8101_v24 = vadd.f32 %v3205_v54, %v3092_v45  ;;  %v3096_v6 = vpop.f32.mrf.mxu0 }
 0x221   :  { %v3209_v26 = vpop.f32.mrf.mxu1 }
 0x222   :  { %v8103_v37 = vadd.f32 %v3209_v26, %v3096_v6  ;;  %v3098_v29 = vpop.f32.mrf.mxu0 }
 0x223   :  { %v3211_v1 = vpop.f32.mrf.mxu1 }
 0x224   :  { %v8105_v23 = vadd.f32 %v3211_v1, %v3098_v29  ;;  %v3100_v56 = vpop.f32.mrf.mxu0 }
 0x225   :  { %v3213_v49 = vpop.f32.mrf.mxu1 }
 0x226   :  { %v8107_v17 = vadd.f32 %v3213_v49, %v3100_v56  ;;  %v3102_v16 = vpop.f32.mrf.mxu0 }
 0x227   :  { %v3215_v7 = vpop.f32.mrf.mxu1 }
 0x228   :  { %v8109_v10 = vadd.f32 %v3215_v7, %v3102_v16  ;;  %v3106_v31 = vpop.f32.mrf.mxu0 }
 0x229   :  { %v3219_v34 = vpop.f32.mrf.mxu1 }
 0x22a   :  { %v8111_v45 = vadd.f32 %v3219_v34, %v3106_v31  ;;  %v3108_v54 = vpop.f32.mrf.mxu0 }
 0x22b   :  { %v3221_v27 = vpop.f32.mrf.mxu1 }
 0x22c   :  { %v8113_v26 = vadd.f32 %v3221_v27, %v3108_v54  ;;  %v3110_v6 = vpop.f32.mrf.mxu0 }
 0x22d   :  { %v3223_v5 = vpop.f32.mrf.mxu1 }
 0x22e   :  { %v8115_v1 = vadd.f32 %v3223_v5, %v3110_v6  ;;  %v3112_v29 = vpop.f32.mrf.mxu0 }
 0x22f   :  { %v3225_v36 = vpop.f32.mrf.mxu1 }
 0x230   :  { %v8117_v49 = vadd.f32 %v3225_v36, %v3112_v29  ;;  %v3116_v56 = vpop.f32.mrf.mxu0 }
 0x231   :  { %v3229_v15 = vpop.f32.mrf.mxu1 }
 0x232   :  { %v8119_v7 = vadd.f32 %v3229_v15, %v3116_v56  ;;  %v3118_v16 = vpop.f32.mrf.mxu0 }
 0x233   :  { %v3231_v30 = vpop.f32.mrf.mxu1 }
 0x234   :  { %v8121_v34 = vadd.f32 %v3231_v30, %v3118_v16  ;;  %v3120_v31 = vpop.f32.mrf.mxu0 }
 0x235   :  { %v3233_v59 = vpop.f32.mrf.mxu1 }
 0x236   :  { %v8123_v27 = vadd.f32 %v3233_v59, %v3120_v31  ;;  %v3122_v54 = vpop.f32.mrf.mxu0 }
 0x237   :  { %v3235_v57 = vpop.f32.mrf.mxu1 }
 0x238   :  { %v8125_v5 = vadd.f32 %v3235_v57, %v3122_v54  ;;  %v3126_v6 = vpop.f32.mrf.mxu0 }
 0x239   :  { %v3239_v3 = vpop.f32.mrf.mxu1 }
 0x23a   :  { %v8127_v36 = vadd.f32 %v3239_v3, %v3126_v6  ;;  %v3128_v29 = vpop.f32.mrf.mxu0 }
 0x23b   :  { %v3241_v8 = vpop.f32.mrf.mxu1 }
 0x23c   :  { %v8129_v15 = vadd.f32 %v3241_v8, %v3128_v29  ;;  %v3130_v56 = vpop.f32.mrf.mxu0 }
 0x23d   :  { %v3243_v51 = vpop.f32.mrf.mxu1 }
 0x23e   :  { %v8131_v30 = vadd.f32 %v3243_v51, %v3130_v56  ;;  %v3132_v16 = vpop.f32.mrf.mxu0 }
 0x23f   :  { %v3245_v46 = vpop.f32.mrf.mxu1 }
 0x240   :  { %v8133_v59 = vadd.f32 %v3245_v46, %v3132_v16  ;;  %v3282_v31 = vpop.f32.mrf.mxu0 }
 0x241   :  { %v6111_v50 = vpop.f32.mrf.mxu1  ;;  %v8136_v57 = vadd.f32 %v3282_v31, %v8071_v52 }
 0x242   :  { %v3284_v54 = vpop.f32.mrf.mxu0 }
 0x243   :  { %v6112_v3 = vpop.f32.mrf.mxu1  ;;  %v8139_v6 = vadd.f32 %v3284_v54, %v8073_v25 }
 0x244   :  { %v8141_v8 = vadd.f32 %v6112_v3, %v6111_v50  ;;  %v3286_v29 = vpop.f32.mrf.mxu0 }
 0x245   :  { %v8143_v40 = vpop.f32.mrf.mxu1  ;;  %v8146_v51 = vadd.f32 %v3286_v29, %v8075_v11 }
 0x246   :  { %v3288_v46 = vpop.f32.mrf.mxu0 }
 0x247   :  { %9477 = vst [vmem:[#allocation71_spill] sm:$0xff] %v8146_v51  ;;  %v8148_v56 = vpop.f32.mrf.mxu1  ;;  %v8151_v16 = vadd.f32 %v3288_v46, %v8077_v58 }
 0x248   :  { %v3292_v52 = vpop.f32.mrf.mxu0 }
 0x249   :  { %9478 = vst [vmem:[#allocation72_spill] sm:$0xff] %v8151_v16  ;;  %v6117_v31 = vpop.f32.mrf.mxu1  ;;  %v8154_v21 = vadd.f32 %v3292_v52, %v8079_v4 }
 0x24a   :  { %v3294_v25 = vpop.f32.mrf.mxu0 }
 0x24b   :  { %v6118_v50 = vpop.f32.mrf.mxu1  ;;  %v8157_v54 = vadd.f32 %v3294_v25, %v8081_v39 }
 0x24c   :  { %v8159_v3 = vadd.f32 %v6118_v50, %v6117_v31  ;;  %v3296_v11 = vpop.f32.mrf.mxu0 }
 0x24d   :  { %v6120_v29 = vpop.f32.mrf.mxu1  ;;  %v8162_v51 = vadd.f32 %v3296_v11, %v8083_v2 }
 0x24e   :  { %v3298_v32 = vpop.f32.mrf.mxu0 }
 0x24f   :  { %9479 = vst [vmem:[#allocation73_spill] sm:$0xff] %v8162_v51  ;;  %v6121_v58 = vpop.f32.mrf.mxu1  ;;  %v8165_v46 = vadd.f32 %v3298_v32, %v8085_v9  ;;  %v9352_v32 = vmov 0  }
 0x250   :  { %v8167_v16 = vadd.f32 %v6121_v58, %v6120_v29  ;;  %v3302_v4 = vpop.f32.mrf.mxu0  ;;  %6365 = vset.pattern.permute.xlu0 %v9352_v32  ;;  %6366 = vset.pattern.permute.xlu1 %v9352_v32 }
 0x251   :  { %9480 = vst [vmem:[#allocation74_spill] sm:$0xff] %v8165_v46  ;;  %v6123_v52 = vpop.f32.mrf.mxu1  ;;  %v8170_v13 = vadd.f32 %v3302_v4, %v8087_v41 }
 0x252   :  { %v3304_v39 = vpop.f32.mrf.mxu0 }
 0x253   :  { %9481 = vst [vmem:[#allocation75_spill] sm:$0xff] %v8170_v13  ;;  %v6124_v31 = vpop.f32.mrf.mxu1  ;;  %v8173_v25 = vadd.f32 %v3304_v39, %v8089_v33 }
 0x254   :  { %v8175_v50 = vadd.f32 %v6124_v31, %v6123_v52  ;;  %v3306_v2 = vpop.f32.mrf.mxu0 }
 0x255   :  { %9482 = vst [vmem:[#allocation76_spill] sm:$0xff] %v8173_v25  ;;  %v6126_v11 = vpop.f32.mrf.mxu1  ;;  %v8178_v51 = vadd.f32 %v3306_v2, %v8091_v0 }
 0x256   :  { %v3308_v9 = vpop.f32.mrf.mxu0 }
 0x257   :  { %9483 = vst [vmem:[#allocation77_spill] sm:$0xff] %v8178_v51  ;;  %v6127_v41 = vpop.f32.mrf.mxu1  ;;  %v8183_v29 = vadd.f32 %v3308_v9, %v8093_v12 }
 0x258   :  { %v8185_v58 = vadd.f32 %v6127_v41, %v6126_v11  ;;  %v3312_v33 = vpop.f32.mrf.mxu0 }
 0x259   :  { %9484 = vst [vmem:[#allocation78_spill] sm:$0xff] %v8183_v29  ;;  %v6129_v4 = vpop.f32.mrf.mxu1  ;;  %v8188_v52 = vadd.f32 %v3312_v33, %v8095_v14 }
 0x25a   :  { %v3314_v39 = vpop.f32.mrf.mxu0 }
 0x25b   :  { %9485 = vst [vmem:[#allocation79_spill] sm:$0xff] %v8188_v52  ;;  %v6130_v0 = vpop.f32.mrf.mxu1  ;;  %v8191_v31 = vadd.f32 %v3314_v39, %v8097_v20 }
 0x25c   :  { %v8193_v2 = vadd.f32 %v6130_v0, %v6129_v4  ;;  %v3316_v32 = vpop.f32.mrf.mxu0 }
 0x25d   :  { %9486 = vst [vmem:[#allocation80_spill] sm:$0xff] %v8191_v31  ;;  %v6132_v25 = vpop.f32.mrf.mxu1  ;;  %v8196_v13 = vadd.f32 %v3316_v32, %v8099_v18 }
 0x25e   :  { %v3318_v12 = vpop.f32.mrf.mxu0 }
 0x25f   :  { %9487 = vst [vmem:[#allocation81_spill] sm:$0xff] %v8196_v13  ;;  %v6133_v11 = vpop.f32.mrf.mxu1  ;;  %v8199_v9 = vadd.f32 %v3318_v12, %v8101_v24 }
 0x260   :  { %v8201_v41 = vadd.f32 %v6133_v11, %v6132_v25  ;;  %v3322_v14 = vpop.f32.mrf.mxu0 }
 0x261   :  { %9488 = vst [vmem:[#allocation82_spill] sm:$0xff] %v8199_v9  ;;  %v6135_v33 = vpop.f32.mrf.mxu1  ;;  %v8204_v46 = vadd.f32 %v3322_v14, %v8103_v37 }
 0x262   :  { %v3324_v20 = vpop.f32.mrf.mxu0 }
 0x263   :  { %9489 = vst [vmem:[#allocation83_spill] sm:$0xff] %v8204_v46  ;;  %v6136_v4 = vpop.f32.mrf.mxu1  ;;  %v8207_v39 = vadd.f32 %v3324_v20, %v8105_v23 }
 0x264   :  { %v8209_v0 = vadd.f32 %v6136_v4, %v6135_v33  ;;  %v3326_v18 = vpop.f32.mrf.mxu0 }
 0x265   :  { %9490 = vst [vmem:[#allocation84_spill] sm:$0xff] %v8207_v39  ;;  %v6138_v32 = vpop.f32.mrf.mxu1  ;;  %v8212_v13 = vadd.f32 %v3326_v18, %v8107_v17 }
 0x266   :  { %v3328_v24 = vpop.f32.mrf.mxu0 }
 0x267   :  { %9491 = vst [vmem:[#allocation85_spill] sm:$0xff] %v8212_v13  ;;  %v6139_v25 = vpop.f32.mrf.mxu1  ;;  %v8215_v12 = vadd.f32 %v3328_v24, %v8109_v10 }
 0x268   :  { %v8217_v11 = vadd.f32 %v6139_v25, %v6138_v32  ;;  %v3332_v37 = vpop.f32.mrf.mxu0 }
 0x269   :  { %9492 = vst [vmem:[#allocation86_spill] sm:$0xff] %v8215_v12  ;;  %v6141_v14 = vpop.f32.mrf.mxu1  ;;  %v8220_v46 = vadd.f32 %v3332_v37, %v8111_v45 }
 0x26a   :  { %v3334_v23 = vpop.f32.mrf.mxu0 }
 0x26b   :  { %9493 = vst [vmem:[#allocation87_spill] sm:$0xff] %v8220_v46  ;;  %v6142_v33 = vpop.f32.mrf.mxu1  ;;  %v8223_v20 = vadd.f32 %v3334_v23, %v8113_v26 }
 0x26c   :  { %v8225_v4 = vadd.f32 %v6142_v33, %v6141_v14  ;;  %v3336_v17 = vpop.f32.mrf.mxu0 }
 0x26d   :  { %9494 = vst [vmem:[#allocation88_spill] sm:$0xff] %v8223_v20  ;;  %v6144_v18 = vpop.f32.mrf.mxu1  ;;  %v8228_v13 = vadd.f32 %v3336_v17, %v8115_v1 }
 0x26e   :  { %v3338_v10 = vpop.f32.mrf.mxu0 }
 0x26f   :  { %9495 = vst [vmem:[#allocation89_spill] sm:$0xff] %v8228_v13  ;;  %v6145_v32 = vpop.f32.mrf.mxu1  ;;  %v8231_v24 = vadd.f32 %v3338_v10, %v8117_v49 }
 0x270   :  { %v8233_v25 = vadd.f32 %v6145_v32, %v6144_v18  ;;  %v3342_v45 = vpop.f32.mrf.mxu0 }
 0x271   :  { %9496 = vst [vmem:[#allocation90_spill] sm:$0xff] %v8231_v24  ;;  %v6147_v37 = vpop.f32.mrf.mxu1  ;;  %v8236_v46 = vadd.f32 %v3342_v45, %v8119_v7 }
 0x272   :  { %v3344_v26 = vpop.f32.mrf.mxu0 }
 0x273   :  { %9497 = vst [vmem:[#allocation91_spill] sm:$0xff] %v8236_v46  ;;  %v6148_v14 = vpop.f32.mrf.mxu1  ;;  %v8239_v23 = vadd.f32 %v3344_v26, %v8121_v34 }
 0x274   :  { %v8241_v33 = vadd.f32 %v6148_v14, %v6147_v37  ;;  %v3346_v1 = vpop.f32.mrf.mxu0 }
 0x275   :  { %9498 = vst [vmem:[#allocation92_spill] sm:$0xff] %v8239_v23  ;;  %v6150_v17 = vpop.f32.mrf.mxu1  ;;  %v8244_v20 = vadd.f32 %v3346_v1, %v8123_v27 }
 0x276   :  { %v3348_v49 = vpop.f32.mrf.mxu0 }
 0x277   :  { %9499 = vst [vmem:[#allocation93_spill] sm:$0xff] %v8244_v20  ;;  %v6151_v18 = vpop.f32.mrf.mxu1  ;;  %v8247_v10 = vadd.f32 %v3348_v49, %v8125_v5 }
 0x278   :  { %v8249_v32 = vadd.f32 %v6151_v18, %v6150_v17  ;;  %v3352_v7 = vpop.f32.mrf.mxu0 }
 0x279   :  { %9500 = vst [vmem:[#allocation94_spill] sm:$0xff] %v8247_v10  ;;  %v6153_v45 = vpop.f32.mrf.mxu1  ;;  %v8252_v46 = vadd.f32 %v3352_v7, %v8127_v36  ;;  %v3653_v10 = vlaneseq }
 0x27a   :  { %v3354_v34 = vpop.f32.mrf.mxu0 }
 0x27b   :  { %9501 = vst [vmem:[#allocation95_spill] sm:$0xff] %v8252_v46  ;;  %v6154_v37 = vpop.f32.mrf.mxu1  ;;  %v8255_v26 = vadd.f32 %v3354_v34, %v8129_v15 }
 0x27c   :  { %v8257_v14 = vadd.f32 %v6154_v37, %v6153_v45  ;;  %v3356_v27 = vpop.f32.mrf.mxu0  ;;  %v8267_v45 = vshrl.u32 %v3653_v10, 7 }
 0x27d   :  { %9502 = vst [vmem:[#allocation96_spill] sm:$0xff] %v8255_v26  ;;  %v6156_v1 = vpop.f32.mrf.mxu1  ;;  %v8260_v20 = vadd.f32 %v3356_v27, %v8131_v30 }
 0x27e   :  { %v3358_v5 = vpop.f32.mrf.mxu0  ;;  %v3655_v23 = vadd.s32 8, %v8267_v45 }
 0x27f   :  { %9503 = vst [vmem:[#allocation97_spill] sm:$0xff] %v8260_v20  ;;  %v6157_v17 = vpop.f32.mrf.mxu1  ;;  %v8263_v49 = vadd.f32 %v3358_v5, %v8133_v59  ;;  %v6116_v59 = vadd.f32 %v8148_v56, %v8143_v40  ;;  %v3656_v5 = vstv %s9309_s0 }
 0x280   :  { %v8265_v18 = vadd.f32 %v6157_v17, %v6156_v1  ;;  %v6175_v36 = vpop.f32.mrf.mxu0  ;;  %vm8277_vm0 = vcmp.lt.s32.totalorder %v8267_v45, %v3656_v5  ;;  %vm8281_vm1 = vcmp.lt.s32.totalorder %v3655_v23, %v3656_v5 }
 0x281   :  { %9504 = vst [vmem:[#allocation98_spill] sm:$0xff] %v8263_v49  ;;  %v6239_v7 = vpop.f32.mrf.mxu1 }
 0x282   :  { %v6176_v46 = vpop.f32.mrf.mxu0 }
 0x283   :  { %v6240_v15 = vpop.f32.mrf.mxu1  ;;  %v6177_v34 = vadd.f32 %v6176_v46, %v6175_v36 }
 0x284   :  { %v6178_v37 = vpop.f32.mrf.mxu0  ;;  %v6241_v1 = vadd.f32 %v6240_v15, %v6239_v7 }
 0x285   :  { %v6242_v26 = vpop.f32.mrf.mxu1  ;;  %v3493_v30 = vadd.f32 %v6177_v34, %v8141_v8 }
 0x286   :  { %v6179_v27 = vpop.f32.mrf.mxu0 }
 0x287   :  { %v6243_v20 = vpop.f32.mrf.mxu1  ;;  %v6180_v17 = vadd.f32 %v6179_v27, %v6178_v37  ;;  %v3590_v36 = vadd.f32 %v6241_v1, %v3493_v30 }
 0x288   :  { %v6181_v46 = vpop.f32.mrf.mxu0  ;;  %v6244_v24 = vadd.f32 %v6243_v20, %v6242_v26 }
 0x289   :  { %v6245_v10 = vpop.f32.mrf.mxu1  ;;  %v3496_v49 = vadd.f32 %v6180_v17, %v6116_v59  ;;  %v8287_v30 = vsel %vm8277_vm0, %v3590_v36, -1e+30 }
 0x28a   :  { %v6182_v40 = vpop.f32.mrf.mxu0 }
 0x28b   :  { %v6246_v56 = vpop.f32.mrf.mxu1  ;;  %v3593_v7 = vadd.f32 %v6244_v24, %v3496_v49  ;;  %v6183_v15 = vadd.f32 %v6182_v40, %v6181_v46 }
 0x28c   :  { %v6184_v12 = vpop.f32.mrf.mxu0  ;;  %v6247_v23 = vadd.f32 %v6246_v56, %v6245_v10 }
 0x28d   :  { %v6248_v37 = vpop.f32.mrf.mxu1  ;;  %v8291_v20 = vsel %vm8281_vm1, %v3593_v7, -1e+30  ;;  %v3501_v26 = vadd.f32 %v6183_v15, %v8159_v3 }
 0x28e   :  { %v3680_v27 = vmax.f32 %v8287_v30, %v8291_v20  ;;  %v6185_v59 = vpop.f32.mrf.mxu0 }
 0x28f   :  { %v6249_v1 = vpop.f32.mrf.mxu1  ;;  %v6186_v24 = vadd.f32 %v6185_v59, %v6184_v12  ;;  %v3598_v40 = vadd.f32 %v6247_v23, %v3501_v26 }
 0x290   :  { %v6250_v49 = vadd.f32 %v6249_v1, %v6248_v37  ;;  %v3681_v5 = vrot.slane %v3680_v27, 4  ;;  %v6187_v17 = vpop.f32.mrf.mxu0 }
 0x291   :  { %v6251_v46 = vpop.f32.mrf.mxu1  ;;  %v3504_v36 = vadd.f32 %v6186_v24, %v8167_v16  ;;  %v8299_v15 = vsel %vm8277_vm0, %v3598_v40, -1e+30  ;;  %v8308_v40 = vld [vmem:[#allocation6] sm:$0x1] }
 0x292   :  { %v3682_v13 = vmax.f32 %v3680_v27, %v3681_v5  ;;  %v6188_v39 = vpop.f32.mrf.mxu0 }
 0x293   :  { %v6252_v7 = vpop.f32.mrf.mxu1  ;;  %v3601_v9 = vadd.f32 %v6250_v49, %v3504_v36  ;;  %v6189_v31 = vadd.f32 %v6188_v39, %v6187_v17 }
 0x294   :  { %v3683_v3 = vrot.slane %v3682_v13, 2  ;;  %v6190_v10 = vpop.f32.mrf.mxu0  ;;  %v6253_v26 = vadd.f32 %v6252_v7, %v6251_v46 }
 0x295   :  { %v6254_v56 = vpop.f32.mrf.mxu1  ;;  %v8303_v12 = vsel %vm8281_vm1, %v3601_v9, -1e+30  ;;  %v3509_v37 = vadd.f32 %v6189_v31, %v8175_v50  ;;  %v8312_v50 = vsub.s32 0, %v8267_v45 }
 0x296   :  { %v3684_v16 = vmax.f32 %v3682_v13, %v3683_v3  ;;  %v3687_v23 = vmax.f32 %v8299_v15, %v8303_v12  ;;  %v6191_v27 = vpop.f32.mrf.mxu0 }
 0x297   :  { %v6255_v39 = vpop.f32.mrf.mxu1  ;;  %v6192_v59 = vadd.f32 %v6191_v27, %v6190_v10  ;;  %v3606_v36 = vadd.f32 %v6253_v26, %v3509_v37 }
 0x298   :  { %v6256_v1 = vadd.f32 %v6255_v39, %v6254_v56  ;;  %v3685_v24 = vrot.slane %v3684_v16, 1  ;;  %v3688_v49 = vrot.slane %v3687_v23, 4  ;;  %v6193_v5 = vpop.f32.mrf.mxu0 }
 0x299   :  { %v6257_v17 = vpop.f32.mrf.mxu1  ;;  %v3512_v9 = vadd.f32 %v6192_v59, %v8185_v58  ;;  %v8319_v37 = vsel %vm8277_vm0, %v3606_v36, -1e+30 }
 0x29a   :  { %v3686_v52 = vmax.f32 %v3684_v16, %v3685_v24  ;;  %v3689_v13 = vmax.f32 %v3687_v23, %v3688_v49  ;;  %v6194_v31 = vpop.f32.mrf.mxu0 }
 0x29b   :  { %v6258_v46 = vpop.f32.mrf.mxu1  ;;  %v3609_v7 = vadd.f32 %v6256_v1, %v3512_v9  ;;  %v6195_v3 = vadd.f32 %v6194_v31, %v6193_v5 }
 0x29c   :  { %v8315_v10 = vmax.f32 %v3686_v52, %v8308_v40  ;;  %v3690_v56 = vrot.slane %v3689_v13, 2  ;;  %v6196_v27 = vpop.f32.mrf.mxu0  ;;  %v6259_v39 = vadd.f32 %v6258_v46, %v6257_v17 }
 0x29d   :  { %v6260_v29 = vpop.f32.mrf.mxu1  ;;  %v8323_v58 = vsel %vm8281_vm1, %v3609_v7, -1e+30  ;;  %v3517_v26 = vadd.f32 %v6195_v3, %v8193_v2 }
 0x29e   :  { %v3747_v16 = vrot.slane %v8315_v10, %v8312_v50  ;;  %v3691_v23 = vmax.f32 %v3689_v13, %v3690_v56  ;;  %v3694_v52 = vmax.f32 %v8319_v37, %v8323_v58  ;;  %v6197_v59 = vpop.f32.mrf.mxu0 }
 0x29f   :  { %v6261_v1 = vpop.f32.mrf.mxu1  ;;  %v6198_v24 = vadd.f32 %v6197_v59, %v6196_v27  ;;  %v3614_v9 = vadd.f32 %v6259_v39, %v3517_v26 }
 0x2a0   :  { %v6262_v49 = vadd.f32 %v6261_v1, %v6260_v29  ;;  %v3776_v5 = vsub.f32 %v8287_v30, %v3747_v16  ;;  %v3777_v17 = vsub.f32 %v8291_v20, %v3747_v16  ;;  %v3692_v36 = vrot.slane %v3691_v23, 1  ;;  %v6199_v31 = vpop.f32.mrf.mxu0 }
 0x2a1   :  { %v6263_v46 = vpop.f32.mrf.mxu1  ;;  %v3695_v2 = vrot.slane %v3694_v52, 4  ;;  %v3520_v7 = vadd.f32 %v6198_v24, %v8201_v41  ;;  %v8336_v30 = vsel %vm8277_vm0, %v3614_v9, -1e+30 }
 0x2a2   :  { %v3792_v3 = vmul.f32 1.442695, %v3776_v5  ;;  %v3794_v13 = vmul.f32 1.442695, %v3777_v17  ;;  %v3693_v56 = vmax.f32 %v3691_v23, %v3692_v36  ;;  %v6200_v51 = vpop.f32.mrf.mxu0 }
 0x2a3   :  { %v6264_v62 = vpop.f32.mrf.mxu1  ;;  %v3696_v55 = vmax.f32 %v3694_v52, %v3695_v2  ;;  %v3617_v43 = vadd.f32 %v6262_v49, %v3520_v7  ;;  %v6201_v27 = vadd.f32 %v6200_v51, %v6199_v31 }
 0x2a4   :  { %6937 = vpow2.f32 %v3792_v3  ;;  %v3737_v29 = vmax.f32 %v3693_v56, %v8308_v40  ;;  %v6202_v20 = vpop.f32.mrf.mxu0  ;;  %v6265_v39 = vadd.f32 %v6264_v62, %v6263_v46  ;;  %v3824_v62 = vsub.f32 %v8308_v40, %v8315_v10 }
 0x2a5   :  { %v6266_v26 = vpop.f32.mrf.mxu1  ;;  %6939 = vpow2.f32 %v3794_v13  ;;  %v3697_v41 = vrot.slane %v3696_v55, 2  ;;  %v8340_v16 = vsel %vm8281_vm1, %v3617_v43, -1e+30  ;;  %v3525_v23 = vadd.f32 %v6201_v27, %v8209_v0 }
 0x2a6   :  { %v3751_v51 = vrot.slane %v3737_v29, %v8312_v50  ;;  %v3701_v52 = vmax.f32 %v8336_v30, %v8340_v16  ;;  %v6203_v59 = vpop.f32.mrf.mxu0 }
 0x2a7   :  { %v6267_v1 = vpop.f32.mrf.mxu1  ;;  %v3698_v24 = vmax.f32 %v3696_v55, %v3697_v41  ;;  %v6204_v49 = vadd.f32 %v6203_v59, %v6202_v20  ;;  %v3622_v46 = vadd.f32 %v6265_v39, %v3525_v23  ;;  %v3825_v55 = vsub.f32 %v8308_v40, %v3737_v29 }
 0x2a8   :  { %v6268_v5 = vadd.f32 %v6267_v1, %v6266_v26  ;;  %v3778_v17 = vsub.f32 %v8299_v15, %v3751_v51  ;;  %v3779_v43 = vsub.f32 %v8303_v12, %v3751_v51  ;;  %v3702_v36 = vrot.slane %v3701_v52, 4  ;;  %v6205_v9 = vpop.f32.mrf.mxu0 }
 0x2a9   :  { %v6269_v0 = vpop.f32.mrf.mxu1  ;;  %v3699_v31 = vrot.slane %v3698_v24, 1  ;;  %v3528_v2 = vadd.f32 %v6204_v49, %v8217_v11  ;;  %v3832_v15 = vmul.f32 1.442695, %v3824_v62  ;;  %v8357_v11 = vsel %vm8277_vm0, %v3622_v46, -1e+30 }
 0x2aa   :  { %v3796_v7 = vmul.f32 1.442695, %v3778_v17  ;;  %v3798_v3 = vmul.f32 1.442695, %v3779_v43  ;;  %v3703_v13 = vmax.f32 %v3701_v52, %v3702_v36  ;;  %v6206_v56 = vpop.f32.mrf.mxu0  ;;  %v3834_v23 = vmul.f32 1.442695, %v3825_v55 }
 0x2ab   :  { %v6270_v27 = vpop.f32.mrf.mxu1  ;;  %v3700_v20 = vmax.f32 %v3698_v24, %v3699_v31  ;;  %v3625_v10 = vadd.f32 %v6268_v5, %v3528_v2  ;;  %v6207_v26 = vadd.f32 %v6206_v56, %v6205_v9 }
 0x2ac   :  { %6941 = vpow2.f32 %v3796_v7  ;;  %v3704_v12 = vrot.slane %v3703_v13, 2  ;;  %v6208_v41 = vpop.f32.mrf.mxu0  ;;  %v6271_v62 = vadd.f32 %v6270_v27, %v6269_v0 }
 0x2ad   :  { %v6272_v51 = vpop.f32.mrf.mxu1  ;;  %6943 = vpow2.f32 %v3798_v3  ;;  %v8353_v39 = vmax.f32 %v3700_v20, %v8308_v40  ;;  %v8361_v29 = vsel %vm8281_vm1, %v3625_v10, -1e+30  ;;  %v3533_v5 = vadd.f32 %v6207_v26, %v8225_v4 }
 0x2ae   :  { %v3705_v52 = vmax.f32 %v3703_v13, %v3704_v12  ;;  %v3708_v59 = vmax.f32 %v8357_v11, %v8361_v29  ;;  %v6209_v1 = vpop.f32.mrf.mxu0  ;;  %6945 = vpow2.f32 %v3832_v15 }
 0x2af   :  { %v6273_v24 = vpop.f32.mrf.mxu1  ;;  %v3755_v49 = vrot.slane %v8353_v39, %v8312_v50  ;;  %v6210_v17 = vadd.f32 %v6209_v1, %v6208_v41  ;;  %6947 = vpow2.f32 %v3834_v23  ;;  %v3630_v12 = vadd.f32 %v6271_v62, %v3533_v5 }
 0x2b0   :  { %v3706_v43 = vrot.slane %v3705_v52, 1  ;;  %v3709_v36 = vrot.slane %v3708_v59, 4  ;;  %v6211_v9 = vpop.f32.mrf.mxu0  ;;  %v6274_v31 = vadd.f32 %v6273_v24, %v6272_v51 }
 0x2b1   :  { %v6275_v46 = vpop.f32.mrf.mxu1  ;;  %v8368_v2 = vpop.eup %6937  ;;  %v3780_v7 = vsub.f32 %v8319_v37, %v3755_v49  ;;  %v3781_v3 = vsub.f32 %v8323_v58, %v3755_v49  ;;  %v3536_v4 = vadd.f32 %v6210_v17, %v8233_v25  ;;  %v3826_v25 = vsub.f32 %v8308_v40, %v8353_v39 }
 0x2b2   :  { %v8372_v55 = vpop.eup %6939  ;;  %v3707_v13 = vmax.f32 %v3705_v52, %v3706_v43  ;;  %v3710_v56 = vmax.f32 %v3708_v59, %v3709_v36  ;;  %v6212_v0 = vpop.f32.mrf.mxu0  ;;  %v8386_v62 = vsel %vm8277_vm0, %v3630_v12, -1e+30 }
 0x2b3   :  { %v6276_v27 = vpop.f32.mrf.mxu1  ;;  %v3848_v20 = vadd.f32 %v8372_v55, %v8368_v2  ;;  %v3800_v10 = vmul.f32 1.442695, %v3780_v7  ;;  %v3802_v26 = vmul.f32 1.442695, %v3781_v3  ;;  %v3633_v58 = vadd.f32 %v6274_v31, %v3536_v4 }
 0x2b4   :  { %v8378_v15 = vmax.f32 %v3707_v13, %v8308_v40  ;;  %v3711_v37 = vrot.slane %v3710_v56, 2  ;;  %v6213_v41 = vadd.f32 %v6212_v0, %v6211_v9  ;;  %v6214_v51 = vpop.f32.mrf.mxu0  ;;  %v6277_v52 = vadd.f32 %v6276_v27, %v6275_v46 }
 0x2b5   :  { %v6278_v23 = vpop.f32.mrf.mxu1  ;;  %6949 = vpow2.f32 %v3800_v10  ;;  %v3849_v59 = vrot.slane %v3848_v20, 4  ;;  %v8390_v17 = vsel %vm8281_vm1, %v3633_v58, -1e+30 }
 0x2b6   :  { %6951 = vpow2.f32 %v3802_v26  ;;  %v3759_v1 = vrot.slane %v8378_v15, %v8312_v50  ;;  %v3712_v24 = vmax.f32 %v3710_v56, %v3711_v37  ;;  %v6215_v49 = vpop.f32.mrf.mxu0  ;;  %v3541_v43 = vadd.f32 %v6213_v41, %v8241_v33 }
 0x2b7   :  { %v6279_v5 = vpop.f32.mrf.mxu1  ;;  %v6216_v39 = vadd.f32 %v6215_v49, %v6214_v51  ;;  %v3827_v31 = vsub.f32 %v8308_v40, %v8378_v15  ;;  %v3715_v56 = vmax.f32 %v8386_v62, %v8390_v17 }
 0x2b8   :  { %v3782_v36 = vsub.f32 %v8336_v30, %v3759_v1  ;;  %v3783_v9 = vsub.f32 %v8340_v16, %v3759_v1  ;;  %v3713_v46 = vrot.slane %v3712_v24, 1  ;;  %v6217_v7 = vpop.f32.mrf.mxu0  ;;  %v3638_v4 = vadd.f32 %v6277_v52, %v3541_v43 }
 0x2b9   :  { %v6281_v3 = vpop.f32.mrf.mxu1  ;;  %v8397_v13 = vpop.eup %6941  ;;  %v3544_v0 = vadd.f32 %v6216_v39, %v8249_v32  ;;  %v6280_v33 = vadd.f32 %v6279_v5, %v6278_v23  ;;  %v3850_v30 = vadd.f32 %v3849_v59, %v3848_v20  ;;  %v3716_v58 = vrot.slane %v3715_v56, 4 }
 0x2ba   :  { %v8402_v27 = vpop.eup %6943  ;;  %v3804_v10 = vmul.f32 1.442695, %v3782_v36  ;;  %v3806_v16 = vmul.f32 1.442695, %v3783_v9  ;;  %v3714_v26 = vmax.f32 %v3712_v24, %v3713_v46  ;;  %v6218_v12 = vpop.f32.mrf.mxu0  ;;  %v8408_v41 = vsel %vm8277_vm0, %v3638_v4, -1e+30 }
 0x2bb   :  { %v6282_v15 = vpop.f32.mrf.mxu1  ;;  %v3855_v37 = vadd.f32 %v8402_v27, %v8397_v13  ;;  %v3641_v51 = vadd.f32 %v6280_v33, %v3544_v0  ;;  %v6219_v23 = vadd.f32 %v6218_v12, %v6217_v7  ;;  %v3717_v24 = vmax.f32 %v3715_v56, %v3716_v58  ;;  %v8417_v5 = vpop.eup %6945 }
 0x2bc   :  { %6953 = vpow2.f32 %v3804_v10  ;;  %v8411_v32 = vmax.f32 %v3714_v26, %v8308_v40  ;;  %v6220_v20 = vpop.f32.mrf.mxu0  ;;  %v6283_v52 = vadd.f32 %v6282_v15, %v6281_v3  ;;  %v8426_v3 = vpop.eup %6947  ;;  %v3836_v56 = vmul.f32 1.442695, %v3826_v25 }
 0x2bd   :  { %v6284_v59 = vpop.f32.mrf.mxu1  ;;  %v3856_v1 = vrot.slane %v3855_v37, 4  ;;  %6955 = vpow2.f32 %v3806_v16  ;;  %v8415_v49 = vsel %vm8281_vm1, %v3641_v51, -1e+30  ;;  %v3549_v9 = vadd.f32 %v6219_v23, %v8257_v14 }
 0x2be   :  { %v3763_v43 = vrot.slane %v8411_v32, %v8312_v50  ;;  %v3828_v39 = vsub.f32 %v8308_v40, %v8411_v32  ;;  %v3722_v36 = vmax.f32 %v8408_v41, %v8415_v49  ;;  %v6221_v46 = vpop.f32.mrf.mxu0  ;;  %v3718_v4 = vrot.slane %v3717_v24, 2 }
 0x2bf   :  { %v6285_v7 = vpop.f32.mrf.mxu1  ;;  %v6222_v0 = vadd.f32 %v6221_v46, %v6220_v20  ;;  %v3857_v10 = vadd.f32 %v3856_v1, %v3855_v37  ;;  %v3646_v58 = vadd.f32 %v6283_v52, %v3549_v9  ;;  %v3851_v32 = vrot.slane %v3850_v30, 2 }
 0x2c0   :  { %v6286_v33 = vadd.f32 %v6285_v7, %v6284_v59  ;;  %v3784_v16 = vsub.f32 %v8357_v11, %v3763_v43  ;;  %v3785_v26 = vsub.f32 %v8361_v29, %v3763_v43  ;;  %v3723_v12 = vrot.slane %v3722_v36, 4 }
 0x2c1   :  { %v3719_v15 = vmax.f32 %v3717_v24, %v3718_v4  ;;  %v3552_v51 = vadd.f32 %v6222_v0, %v8265_v18  ;;  %v3838_v23 = vmul.f32 1.442695, %v3827_v31  ;;  %v8437_v11 = vsel %vm8277_vm0, %v3646_v58, -1e+30 }
 0x2c2   :  { %v8431_v14 = vpop.eup %6949  ;;  %v3808_v47 = vmul.f32 1.442695, %v3784_v16  ;;  %v3810_v44 = vmul.f32 1.442695, %v3785_v26  ;;  %v3724_v25 = vmax.f32 %v3722_v36, %v3723_v12  ;;  %v3852_v37 = vadd.f32 %v3851_v32, %v3850_v30 }
 0x2c3   :  { %v8433_v60 = vpop.eup %6951  ;;  %v3720_v20 = vrot.slane %v3719_v15, 1  ;;  %v3649_v29 = vadd.f32 %v6286_v33, %v3552_v51  ;;  %v3858_v59 = vrot.slane %v3857_v10, 2 }
 0x2c4   :  { %v3862_v52 = vadd.f32 %v8433_v60, %v8431_v14  ;;  %6957 = vpow2.f32 %v3808_v47  ;;  %v3725_v18 = vrot.slane %v3724_v25, 2  ;;  %v3853_v24 = vrot.slane %v3852_v37, 1 }
 0x2c5   :  { %6959 = vpow2.f32 %v3810_v44  ;;  %v3721_v31 = vmax.f32 %v3719_v15, %v3720_v20  ;;  %v8443_v1 = vsel %vm8281_vm1, %v3649_v29, -1e+30  ;;  %v3859_v9 = vadd.f32 %v3858_v59, %v3857_v10 }
 0x2c6   :  { %v3863_v43 = vrot.slane %v3862_v52, 4  ;;  %v3726_v36 = vmax.f32 %v3724_v25, %v3725_v18  ;;  %v3729_v8 = vmax.f32 %v8437_v11, %v8443_v1  ;;  %6961 = vpow2.f32 %v3836_v56 }
 0x2c7   :  { %v3741_v30 = vmax.f32 %v3721_v31, %v8308_v40  ;;  %v3854_v46 = vadd.f32 %v3853_v24, %v3852_v37  ;;  %v3860_v44 = vrot.slane %v3859_v9, 1  ;;  %6963 = vpow2.f32 %v3838_v23 }
 0x2c8   :  { %v3864_v47 = vadd.f32 %v3863_v43, %v3862_v52  ;;  %v3727_v7 = vrot.slane %v3726_v36, 1  ;;  %v3730_v4 = vrot.slane %v3729_v8, 4  ;;  %v3840_v10 = vmul.f32 1.442695, %v3828_v39 }
 0x2c9   :  { %v8448_v0 = vpop.eup %6953  ;;  %v3767_v34 = vrot.slane %v3741_v30, %v8312_v50  ;;  %v3829_v33 = vsub.f32 %v8308_v40, %v3741_v30  ;;  %v3904_v16 = vadd.f32 %v8417_v5, %v3854_v46  ;;  %v3861_v15 = vadd.f32 %v3860_v44, %v3859_v9 }
 0x2ca   :  { %v8453_v26 = vpop.eup %6955  ;;  %v3728_v56 = vmax.f32 %v3726_v36, %v3727_v7  ;;  %v3731_v12 = vmax.f32 %v3729_v8, %v3730_v4  ;;  %v3865_v23 = vrot.slane %v3864_v47, 2 }
 0x2cb   :  { %v3869_v58 = vadd.f32 %v8453_v26, %v8448_v0  ;;  %v3786_v51 = vsub.f32 %v8386_v62, %v3767_v34  ;;  %v3787_v32 = vsub.f32 %v8390_v17, %v3767_v34  ;;  %6965 = vrcp.f32 %v3904_v16 }
 0x2cc   :  { %v3742_v25 = vmax.f32 %v3728_v56, %v8308_v40  ;;  %v3732_v20 = vrot.slane %v3731_v12, 2  ;;  %v3905_v29 = vadd.f32 %v8426_v3, %v3861_v15  ;;  %v3866_v62 = vadd.f32 %v3865_v23, %v3864_v47 }
 0x2cd   :  { %v3870_v37 = vrot.slane %v3869_v58, 4  ;;  %v3812_v52 = vmul.f32 1.442695, %v3786_v51  ;;  %v3814_v39 = vmul.f32 1.442695, %v3787_v32 }
 0x2ce   :  { %v3771_v18 = vrot.slane %v3742_v25, %v8312_v50  ;;  %v3830_v59 = vsub.f32 %v8308_v40, %v3742_v25  ;;  %v3733_v31 = vmax.f32 %v3731_v12, %v3732_v20  ;;  %6967 = vrcp.f32 %v3905_v29 }
 0x2cf   :  { %v3871_v24 = vadd.f32 %v3870_v37, %v3869_v58  ;;  %6969 = vpow2.f32 %v3812_v52  ;;  %v3867_v30 = vrot.slane %v3866_v62, 1  ;;  %v3842_v58 = vmul.f32 1.442695, %v3829_v33 }
 0x2d0   :  { %6971 = vpow2.f32 %v3814_v39  ;;  %v3788_v17 = vsub.f32 %v8408_v41, %v3771_v18  ;;  %v3789_v43 = vsub.f32 %v8415_v49, %v3771_v18  ;;  %v3734_v9 = vrot.slane %v3733_v31, 1 }
 0x2d1   :  { %v8465_v36 = vpop.eup %6957  ;;  %v3872_v8 = vrot.slane %v3871_v24, 2  ;;  %6973 = vpow2.f32 %v3840_v10  ;;  %v3868_v47 = vadd.f32 %v3867_v30, %v3866_v62 }
 0x2d2   :  { %v8467_v46 = vpop.eup %6959  ;;  %v3816_v7 = vmul.f32 1.442695, %v3788_v17  ;;  %v3818_v4 = vmul.f32 1.442695, %v3789_v43  ;;  %v3735_v34 = vmax.f32 %v3733_v31, %v3734_v9  ;;  %v3844_v9 = vmul.f32 1.442695, %v3830_v59 }
 0x2d3   :  { %v3876_v44 = vadd.f32 %v8467_v46, %v8465_v36  ;;  %v3873_v16 = vadd.f32 %v3872_v8, %v3871_v24  ;;  %v6962_v56 = vpop.eup %6961 }
 0x2d4   :  { %6975 = vpow2.f32 %v3816_v7  ;;  %v8472_v49 = vmax.f32 %v3735_v34, %v8308_v40  ;;  %v3906_v12 = vadd.f32 %v6962_v56, %v3868_v47  ;;  %v8474_v15 = vpop.eup %6963 }
 0x2d5   :  { %v3877_v41 = vrot.slane %v3876_v44, 4  ;;  %6977 = vpow2.f32 %v3818_v4  ;;  %v3874_v10 = vrot.slane %v3873_v16, 1 }
 0x2d6   :  { %v3775_v32 = vrot.slane %v8472_v49, %v8312_v50  ;;  %v3831_v23 = vsub.f32 %v8308_v40, %v8472_v49  ;;  %6979 = vrcp.f32 %v3906_v12 }
 0x2d7   :  { %v3878_v51 = vadd.f32 %v3877_v41, %v3876_v44  ;;  %v3875_v25 = vadd.f32 %v3874_v10, %v3873_v16  ;;  %6981 = vpow2.f32 %v3842_v58  ;;  %v7117_v41 = vmov 1  }
 0x2d8   :  { %v6966_v20 = vpop.eup %6965  ;;  %v3790_v29 = vsub.f32 %v8437_v11, %v3775_v32  ;;  %v3791_v37 = vsub.f32 %v8443_v1, %v3775_v32 }
 0x2d9   :  { %v3879_v52 = vrot.slane %v3878_v51, 2  ;;  %v8483_v39 = vmul.f32 %v6966_v20, %v8417_v5  ;;  %v3923_v33 = vrot.slane %v6966_v20, %v8312_v50  ;;  %v3907_v18 = vadd.f32 %v8474_v15, %v3875_v25 }
 0x2da   :  { %v3820_v24 = vmul.f32 1.442695, %v3790_v29  ;;  %v3822_v62 = vmul.f32 1.442695, %v3791_v37  ;;  %v7118_v25 = vmov 2  }
 0x2db   :  { %v6968_v31 = vpop.eup %6967  ;;  %v3880_v40 = vadd.f32 %v3879_v52, %v3878_v51  ;;  %4186 = vperm.xlu0 %6365, %v8483_v39   ;;  %v8491_v11 = vmul.f32 %v8372_v55, %v3923_v33  ;;  %v3952_v1 = vmul.f32 %v8368_v2, %v3923_v33  ;;  %v3846_v52 = vmul.f32 1.442695, %v3831_v23 }
 0x2dc   :  { %v8487_v17 = vpop.eup %6969  ;;  %v8495_v5 = vmul.f32 %v6968_v31, %v8426_v3  ;;  %v3927_v43 = vrot.slane %v6968_v31, %v8312_v50  ;;  %6983 = vpow2.f32 %v3820_v24 }
 0x2dd   :  { %v8498_v8 = vpop.eup %6971  ;;  %v3881_v30 = vrot.slane %v3880_v40, 1  ;;  %6985 = vpow2.f32 %v3822_v62  ;;  %3983 = vperm.xlu1 %6366, %v8491_v11  }
 0x2de   :  { %v3883_v7 = vadd.f32 %v8498_v8, %v8487_v17  ;;  %v8504_v55 = vmul.f32 %v8402_v27, %v3927_v43  ;;  %v8507_v2 = vmul.f32 %v8397_v13, %v3927_v43  ;;  %v6974_v3 = vpop.eup %6973  ;;  %6987 = vrcp.f32 %v3907_v18 }
 0x2df   :  { %v3882_v4 = vadd.f32 %v3881_v30, %v3880_v40  ;;  %3978 = vperm.xlu0 %6365, %v3952_v1   ;;  %6989 = vpow2.f32 %v3844_v9  ;;  %v9509_v18 = vmov 0  }
 0x2e0   :  { %v3884_v44 = vrot.slane %v3883_v7, 4 }
 0x2e1   :  { %v8509_v59 = vpop.eup %6975  ;;  %v3908_v34 = vadd.f32 %v6974_v3, %v3882_v4  ;;  %6367 = vset.pattern.permute.xlu1 %v7117_v41 }
 0x2e2   :  { %v8511_v47 = vpop.eup %6977  ;;  %v3885_v16 = vadd.f32 %v3884_v44, %v3883_v7  ;;  %4057 = vperm.xlu1 %6367, %v3952_v1  }
 0x2e3   :  { %v3890_v27 = vadd.f32 %v8511_v47, %v8509_v59  ;;  %6991 = vrcp.f32 %v3908_v34  ;;  %v6980_v13 = vpop.eup %6979  ;;  %6368 = vset.pattern.permute.xlu0 %v7117_v41 }
 0x2e4   :  { %v3886_v49 = vrot.slane %v3885_v16, 2  ;;  %4061 = vperm.xlu0 %6368, %v8491_v11   ;;  %v8518_v58 = vmul.f32 %v6980_v13, %v6962_v56  ;;  %v3931_v10 = vrot.slane %v6980_v13, %v8312_v50  ;;  %v6982_v37 = vpop.eup %6981  ;;  %6993 = vpow2.f32 %v3846_v52 }
 0x2e5   :  { %v3891_v12 = vrot.slane %v3890_v27, 4 }
 0x2e6   :  { %v3887_v51 = vadd.f32 %v3886_v49, %v3885_v16  ;;  %6369 = vset.pattern.permute.xlu1 %v7118_v25  ;;  %v8523_v20 = vmul.f32 %v8431_v14, %v3931_v10  ;;  %v8526_v29 = vmul.f32 %v8433_v60, %v3931_v10 }
 0x2e7   :  { %v3892_v32 = vadd.f32 %v3891_v12, %v3890_v27  ;;  %4121 = vperm.xlu1 %6369, %v3952_v1  }
 0x2e8   :  { %v3888_v33 = vrot.slane %v3887_v51, 1  ;;  %6370 = vset.pattern.permute.xlu0 %v9509_v18 }
 0x2e9   :  { %v3893_v56 = vrot.slane %v3892_v32, 2  ;;  %v8529_v31 = vpop.eup %6983  ;;  %4195 = vperm.xlu0 %6370, %v8495_v5  }
 0x2ea   :  { %v3889_v24 = vadd.f32 %v3888_v33, %v3887_v51  ;;  %v8532_v62 = vpop.eup %6985 }
 0x2eb   :  { %v3894_v40 = vadd.f32 %v3893_v56, %v3892_v32  ;;  %v6988_v14 = vpop.eup %6987  ;;  %v3897_v60 = vadd.f32 %v8532_v62, %v8529_v31  ;;  %6374 = vset.pattern.permute.xlu1 %v7117_v41 }
 0x2ec   :  { %v3909_v23 = vadd.f32 %v6982_v37, %v3889_v24  ;;  %4069 = vperm.xlu1 %6374, %v8504_v55   ;;  %v3935_v1 = vrot.slane %v6988_v14, %v8312_v50  ;;  %v8540_v43 = vmul.f32 %v6988_v14, %v8474_v15  ;;  %v6990_v7 = vpop.eup %6989 }
 0x2ed   :  { %v3895_v9 = vrot.slane %v3894_v40, 1  ;;  %v3898_v30 = vrot.slane %v3897_v60, 4  ;;  %6371 = vset.pattern.permute.xlu0 %v7117_v41 }
 0x2ee   :  { %6995 = vrcp.f32 %v3909_v23  ;;  %4265 = vperm.xlu0 %6371, %v8495_v5   ;;  %v8545_v4 = vmul.f32 %v8448_v0, %v3935_v1  ;;  %v8548_v44 = vmul.f32 %v8453_v26, %v3935_v1 }
 0x2ef   :  { %v3896_v34 = vadd.f32 %v3895_v9, %v3894_v40  ;;  %v3899_v27 = vadd.f32 %v3898_v30, %v3897_v60  ;;  %v9510_v9 = vld [vmem:[#allocation45_spill] sm:$0xff] }
 0x2f0   :  { %v6992_v16 = vpop.eup %6991  ;;  %6375 = vset.pattern.permute.xlu1 %v7118_v25 }
 0x2f1   :  { %v8551_v15 = vmul.f32 %v6992_v16, %v6974_v3  ;;  %v3939_v13 = vrot.slane %v6992_v16, %v8312_v50  ;;  %v3910_v49 = vadd.f32 %v6990_v7, %v3896_v34  ;;  %v3900_v12 = vrot.slane %v3899_v27, 2  ;;  %4129 = vperm.xlu1 %6375, %v8507_v2   ;;  %v6994_v32 = vpop.eup %6993  ;;  %v6890_v34 = vld [vmem:[#allocation9 + $0x38] sm:$0xff]   ;;  %v6891_v16 = vld [vmem:[#allocation9 + $0x70] sm:$0xff]  }
 0x2f2   :  { %6372 = vset.pattern.permute.xlu0 %v9509_v18 }
 0x2f3   :  { %v8557_v0 = vmul.f32 %v8465_v36, %v3939_v13  ;;  %6997 = vrcp.f32 %v3910_v49  ;;  %v8560_v26 = vmul.f32 %v8467_v46, %v3939_v13  ;;  %3988 = vperm.xlu0 %6372, %v8507_v2   ;;  %v3901_v10 = vadd.f32 %v3900_v12, %v3899_v27 }
 0x2f5   :  { %6376 = vset.pattern.permute.xlu1 %v9509_v18  ;;  %v3902_v3 = vrot.slane %v3901_v10, 1 }
 0x2f6   :  { %4204 = vperm.xlu1 %6376, %v8518_v58  }
 0x2f7   :  { %3993 = vperm.xlu0 %6372, %v8504_v55   ;;  %v3903_v51 = vadd.f32 %v3902_v3, %v3901_v10 }
 0x2f9   :  { %v3911_v52 = vadd.f32 %v6994_v32, %v3903_v51 }
 0x2fa   :  { %6377 = vset.pattern.permute.xlu1 %v7117_v41 }
 0x2fb   :  { %v6996_v33 = vpop.eup %6995  ;;  %4273 = vperm.xlu1 %6377, %v8518_v58   ;;  %6373 = vset.pattern.permute.xlu0 %v7117_v41  ;;  %6999 = vrcp.f32 %v3911_v52 }
 0x2fc   :  { %v3943_v36 = vrot.slane %v6996_v33, %v8312_v50  ;;  %v8570_v46 = vmul.f32 %v6996_v33, %v6982_v37  ;;  %4065 = vperm.xlu0 %6373, %v8507_v2  }
 0x2fe   :  { %v8574_v56 = vmul.f32 %v8487_v17, %v3943_v36  ;;  %v8577_v24 = vmul.f32 %v8498_v8, %v3943_v36 }
 0x2ff   :  { %6378 = vset.pattern.permute.xlu1 %v9509_v18 }
 0x300   :  { %v6998_v40 = vpop.eup %6997  ;;  %3998 = vperm.xlu1 %6378, %v8523_v20   ;;  %4077 = vperm.xlu0 %6373, %v8526_v29  }
 0x301   :  { %v8582_v14 = vmul.f32 %v6998_v40, %v6990_v7  ;;  %v3947_v37 = vrot.slane %v6998_v40, %v8312_v50 }
 0x303   :  { %v8586_v60 = vmul.f32 %v8509_v59, %v3947_v37  ;;  %v8589_v17 = vmul.f32 %v8511_v47, %v3947_v37 }
 0x304   :  { %4003 = vperm.xlu1 %6378, %v8526_v29   ;;  %6382 = vset.pattern.permute.xlu0 %v9509_v18 }
 0x305   :  { %4008 = vperm.xlu0 %6382, %v8545_v4  }
 0x308   :  { %v7000_v8 = vpop.eup %6999  ;;  %6379 = vset.pattern.permute.xlu1 %v7117_v41 }
 0x309   :  { %4073 = vperm.xlu1 %6379, %v8523_v20   ;;  %6384 = vset.pattern.permute.xlu0 %v7117_v41  ;;  %v3951_v2 = vrot.slane %v7000_v8, %v8312_v50  ;;  %v8598_v59 = vmul.f32 %v7000_v8, %v6994_v32 }
 0x30a   :  { %4085 = vperm.xlu0 %6384, %v8548_v44  }
 0x30b   :  { %v8602_v47 = vmul.f32 %v8529_v31, %v3951_v2  ;;  %v8605_v23 = vmul.f32 %v8532_v62, %v3951_v2 }
 0x30d   :  { %6380 = vset.pattern.permute.xlu1 %v7118_v25 }
 0x30e   :  { %4141 = vperm.xlu1 %6380, %v8526_v29   ;;  %6386 = vset.pattern.permute.xlu0 %v9509_v18 }
 0x30f   :  { %4222 = vperm.xlu0 %6386, %v8551_v15  }
 0x312   :  { %6381 = vset.pattern.permute.xlu1 %v9509_v18 }
 0x313   :  { %4213 = vperm.xlu1 %6381, %v8540_v43   ;;  %4018 = vperm.xlu0 %6386, %v8557_v0  }
 0x317   :  { %4013 = vperm.xlu1 %6381, %v8548_v44   ;;  %4028 = vperm.xlu0 %6386, %v8574_v56  }
 0x31b   :  { %6383 = vset.pattern.permute.xlu1 %v7117_v41  ;;  %6391 = vset.pattern.permute.xlu0 %v7117_v41 }
 0x31c   :  { %4081 = vperm.xlu1 %6383, %v8545_v4   ;;  %4097 = vperm.xlu0 %6391, %v8574_v56  }
 0x320   :  { %6385 = vset.pattern.permute.xlu1 %v7118_v25  ;;  %6394 = vset.pattern.permute.xlu0 %v9509_v18 }
 0x321   :  { %4145 = vperm.xlu1 %6385, %v8545_v4   ;;  %4240 = vperm.xlu0 %6394, %v8582_v14  }
 0x325   :  { %4149 = vperm.xlu1 %6385, %v8548_v44   ;;  %4038 = vperm.xlu0 %6394, %v8586_v60  }
 0x329   :  { %6387 = vset.pattern.permute.xlu1 %v9509_v18  ;;  %6396 = vset.pattern.permute.xlu0 %v7117_v41 }
 0x32a   :  { %4023 = vperm.xlu1 %6387, %v8560_v26   ;;  %4105 = vperm.xlu0 %6396, %v8586_v60  }
 0x32e   :  { %6388 = vset.pattern.permute.xlu1 %v7117_v41  ;;  %6400 = vset.pattern.permute.xlu0 %v9509_v18 }
 0x32f   :  { %4089 = vperm.xlu1 %6388, %v8557_v0   ;;  %4048 = vperm.xlu0 %6400, %v8602_v47  }
 0x333   :  { %4093 = vperm.xlu1 %6388, %v8560_v26   ;;  %6402 = vset.pattern.permute.xlu0 %v7117_v41 }
 0x334   :  { %4281 = vperm.xlu0 %6402, %v8540_v43  }
 0x337   :  { %6389 = vset.pattern.permute.xlu1 %v7118_v25 }
 0x338   :  { %4153 = vperm.xlu1 %6389, %v8557_v0   ;;  %4289 = vperm.xlu0 %6402, %v8551_v15   ;;  %v6892_v0 = vld [vmem:[#allocation9 + $0x30] sm:$0xff]  }
 0x33c   :  { %6390 = vset.pattern.permute.xlu1 %v9509_v18  ;;  %4297 = vperm.xlu0 %6402, %v8570_v46  }
 0x33d   :  { %4231 = vperm.xlu1 %6390, %v8570_v46  }
 0x340   :  { %6404 = vset.pattern.permute.xlu0 %v7118_v25 }
 0x341   :  { %4033 = vperm.xlu1 %6390, %v8577_v24   ;;  %4133 = vperm.xlu0 %6404, %v8504_v55  }
 0x345   :  { %6392 = vset.pattern.permute.xlu1 %v7117_v41  ;;  %4137 = vperm.xlu0 %6404, %v8523_v20  }
 0x346   :  { %4101 = vperm.xlu1 %6392, %v8577_v24  }
 0x349   :  { %4125 = vperm.xlu0 %6404, %v8491_v11   ;;  %v6889_v11 = vld [vmem:[#allocation9 + $0x78] sm:$0xff]  }
 0x34a   :  { %6393 = vset.pattern.permute.xlu1 %v7118_v25  ;;  %6287 = vmatprep.subr.bf16.mxu0 %v6889_v11 }
 0x34b   :  { %4165 = vperm.xlu1 %6393, %v8577_v24   ;;  %6288 = vmatpush3.bf16.msra.mxu0 %v6890_v34 }
 0x34c   :  { %6289 = vmatprep.subr.bf16.mxu0 %v6891_v16  ;;  %v9511_v16 = vld [vmem:[#allocation46_spill] sm:$0xff] }
 0x34d   :  { %4157 = vperm.xlu0 %6404, %v8560_v26  }
 0x34f   :  { %6395 = vset.pattern.permute.xlu1 %v9509_v18  ;;  %6290 = vmatpush3.bf16.msra.mxu0 %v6892_v0  ;;  %v4828_v0 = vsub.s32 2, %v8267_v45 }
 0x350   :  { %4043 = vperm.xlu1 %6395, %v8589_v17  }
 0x351   :  { %4161 = vperm.xlu0 %6404, %v8574_v56  }
 0x354   :  { %6397 = vset.pattern.permute.xlu1 %v7117_v41 }
 0x355   :  { %4109 = vperm.xlu1 %6397, %v8589_v17   ;;  %4169 = vperm.xlu0 %6404, %v8586_v60  }
 0x356   :  { %v4187_v55 = vpop.permute.xlu0 %4186 }
 0x358   :  { %v3984_v20 = vpop.permute.xlu1 %3983 }
 0x359   :  { %v4390_v29 = vmul.f32 %v3984_v20, %v7769_v61  ;;  %v4391_v31 = vmul.f32 %v3984_v20, %v7774_v38  ;;  %6398 = vset.pattern.permute.xlu1 %v7118_v25  ;;  %4177 = vperm.xlu0 %6404, %v8602_v47  }
 0x35a   :  { %4173 = vperm.xlu1 %6398, %v8589_v17   ;;  %v3979_v62 = vpop.permute.xlu0 %3978 }
 0x35b   :  { %v4384_v1 = vmul.f32 %v3979_v62, %v7757_v53  ;;  %v4385_v30 = vmul.f32 %v3979_v62, %v9510_v9  ;;  %v6893_v62 = vld [vmem:[#allocation9 + $0x68] sm:$0xff]   ;;  %v6895_v9 = vld [vmem:[#allocation9 + $0x60] sm:$0xff]  }
 0x35c   :  { %6291 = vmatprep.subr.bf16.mxu0 %v6893_v62  ;;  %v4832_v62 = vsub.s32 3, %v8267_v45 }
 0x35d   :  { %v4480_v7 = vadd.f32 %v4390_v29, %v4384_v1  ;;  %v4487_v4 = vadd.f32 %v4391_v31, %v4385_v30  ;;  %v4058_v44 = vpop.permute.xlu1 %4057  ;;  %6407 = vset.pattern.permute.xlu0 %v7117_v41  ;;  %v6897_v30 = vld [vmem:[#allocation9 + $0xf8] sm:$0xff]  }
 0x35e   :  { %v4386_v61 = vmul.f32 %v4058_v44, %v7949_v42  ;;  %v4387_v38 = vmul.f32 %v4058_v44, %v7952_v28  ;;  %6399 = vset.pattern.permute.xlu1 %v9509_v18  ;;  %4313 = vperm.xlu0 %6407, %v8598_v59   ;;  %v8674_v42 = vld [vmem:[#allocation8] sm:$0x3f]  ;;  %v4824_v28 = vsub.s32 1, %v8267_v45 }
 0x35f   :  { %v4481_v27 = vrot.slane %v4480_v7, 4  ;;  %v4488_v13 = vrot.slane %v4487_v4, 4  ;;  %4249 = vperm.xlu1 %6399, %v8598_v59   ;;  %v4062_v53 = vpop.permute.xlu0 %4061  ;;  %6309 = vmatprep.subr.bf16.mxu1 %v6897_v30 }
 0x360   :  { %v4392_v49 = vmul.f32 %v4062_v53, %v7955_v48  ;;  %v4393_v12 = vmul.f32 %v4062_v53, %v7960_v63  ;;  %v8689_v63 = vrot.slane %v8674_v42, %v8312_v50  ;;  %v8695_v56 = vrot.slane %v8674_v42, %v4824_v28  ;;  %v9514_v53 = vld [vmem:[#allocation56_spill] sm:$0xff] }
 0x361   :  { %v4482_v26 = vadd.f32 %v4481_v27, %v4480_v7  ;;  %v4489_v10 = vadd.f32 %v4488_v13, %v4487_v4  ;;  %v6896_v4 = vld [vmem:[#allocation9 + $0x20] sm:$0xff]   ;;  %v9513_v27 = vld [vmem:[#allocation48_spill] sm:$0xff] }
 0x362   :  { %v4494_v18 = vadd.f32 %v4392_v49, %v4386_v61  ;;  %v8677_v3 = vadd.f32 %v4393_v12, %v4387_v38  ;;  %v4122_v51 = vpop.permute.xlu1 %4121  ;;  %6408 = vset.pattern.permute.xlu0 %v7118_v25  ;;  %v9515_v49 = vld [vmem:[#allocation61_spill] sm:$0xff] }
 0x363   :  { %v4483_v32 = vrot.slane %v4482_v26, 2  ;;  %v4490_v52 = vrot.slane %v4489_v10, 2  ;;  %v8680_v33 = vmul.f32 %v4122_v51, %v8136_v57  ;;  %v8683_v48 = vmul.f32 %v4122_v51, %v8139_v6  ;;  %4053 = vperm.xlu1 %6399, %v8605_v23   ;;  %4345 = vperm.xlu0 %6408, %v8540_v43  }
 0x364   :  { %v8692_v36 = vpop.permute.xlu0 %4195  ;;  %v4192_v57 = vrot.slane %v4187_v55, %v8312_v50  ;;  %v4495_v34 = vrot.slane %v4494_v18, 4  ;;  %v2877_v12 = vadd.f32 %v9515_v49, %v9514_v53  ;;  %v4502_v51 = vrot.slane %v8677_v3, 4 }
 0x365   :  { %v4484_v6 = vadd.f32 %v4483_v32, %v4482_v26  ;;  %v4491_v24 = vadd.f32 %v4490_v52, %v4489_v10  ;;  %v8759_v49 = vrot.slane %v8674_v42, %v4832_v62  ;;  %v6904_v62 = vld [vmem:[#allocation9 + $0x10] sm:$0xff]  }
 0x366   :  { %v4848_v43 = vmul.f32 %v8689_v63, %v4192_v57  ;;  %v4849_v2 = vmul.f32 %v8695_v56, %v4192_v57  ;;  %v4496_v10 = vadd.f32 %v4495_v34, %v4494_v18  ;;  %v6899_v57 = vld [vmem:[#allocation9 + $0x58] sm:$0xff]   ;;  %v4201_v18 = vrot.slane %v8692_v36, %v8312_v50 }
 0x367   :  { %v4485_v40 = vrot.slane %v4484_v6, 1  ;;  %v4492_v37 = vrot.slane %v4491_v24, 1  ;;  %6401 = vset.pattern.permute.xlu1 %v7117_v41  ;;  %v4070_v60 = vpop.permute.xlu1 %4069  ;;  %4377 = vperm.xlu0 %6408, %v8598_v59   ;;  %v8747_v30 = vadd.f32 %v4502_v51, %v8677_v3 }
 0x368   :  { %v4404_v17 = vmul.f32 %v4070_v60, %v7971_v22  ;;  %v4405_v8 = vmul.f32 %v4070_v60, %v7976_v35  ;;  %4257 = vperm.xlu1 %6401, %v8483_v39   ;;  %v6894_v22 = vld [vmem:[#allocation9 + $0x28] sm:$0xff]   ;;  %v6900_v60 = vld [vmem:[#allocation9 + $0x18] sm:$0xff]   ;;  %v4854_v3 = vmul.f32 %v8689_v63, %v4201_v18  ;;  %v4855_v51 = vmul.f32 %v8695_v56, %v4201_v18 }
 0x369   :  { %v4486_v55 = vadd.f32 %v4485_v40, %v4484_v6  ;;  %v4493_v11 = vadd.f32 %v4492_v37, %v4491_v24  ;;  %v8705_v20 = vpop.permute.xlu0 %4265  ;;  %6292 = vmatpush3.bf16.msra.mxu0 %v6894_v22  ;;  %v9516_v6 = vld [vmem:[#allocation35_spill] sm:$0xff]  ;;  %v9517_v40 = vld [vmem:[#allocation16_spill] sm:$0xff] }
 0x36a   :  { %6293 = vmatprep.subr.bf16.mxu0 %v6895_v9  ;;  %v4497_v9 = vrot.slane %v4496_v10, 2 }
 0x36b   :  { %v8707_v29 = vadd.f32 %v4848_v43, %v4486_v55  ;;  %v8709_v31 = vadd.f32 %v4849_v2, %v4493_v11  ;;  %v9518_v43 = vld [vmem:[#allocation62_spill] sm:$0xff]  ;;  %v8739_v55 = vrot.slane %v8674_v42, %v4828_v0 }
 0x36c   :  { %6403 = vset.pattern.permute.xlu1 %v7118_v25  ;;  %v4130_v35 = vpop.permute.xlu1 %4129  ;;  %v8736_v2 = vadd.f32 %v9518_v43, %v2877_v12  ;;  %v9524_v43 = vld [vmem:[#allocation52_spill] sm:$0xff]  ;;  %v8769_v18 = vadd.f32 %v4497_v9, %v4496_v10 }
 0x36d   :  { %v8713_v59 = vmul.f32 %v4130_v35, %v8154_v21  ;;  %v8716_v1 = vmul.f32 %v4130_v35, %v8157_v54  ;;  %4329 = vperm.xlu1 %6403, %v8495_v5   ;;  %v9512_v54 = vld [vmem:[#allocation47_spill] sm:$0xff]  ;;  %6294 = vmatpush3.bf16.msra.mxu0 %v6896_v4 }
 0x36e   :  { %v3989_v7 = vpop.permute.xlu0 %3988  ;;  %6295 = vmatprep.subr.bf16.mxu0 %v6899_v57 }
 0x36f   :  { %v4396_v61 = vmul.f32 %v3989_v7, %v9511_v16  ;;  %v4397_v38 = vmul.f32 %v3989_v7, %v9512_v54  ;;  %v9520_v54 = vld [vmem:[#allocation50_spill] sm:$0xff] }
 0x371   :  { %4337 = vperm.xlu1 %6403, %v8518_v58   ;;  %v8720_v44 = vpop.permute.xlu1 %4204  ;;  %6296 = vmatpush3.bf16.msra.mxu0 %v6900_v60 }
 0x372   :  { %v3994_v21 = vpop.permute.xlu0 %3993 }
 0x373   :  { %v4402_v5 = vmul.f32 %v3994_v21, %v7793_v19  ;;  %v4403_v13 = vmul.f32 %v3994_v21, %v9513_v27 }
 0x375   :  { %v4522_v28 = vadd.f32 %v4402_v5, %v4396_v61  ;;  %v4529_v58 = vadd.f32 %v4403_v13, %v4397_v38  ;;  %4321 = vperm.xlu1 %6403, %v8483_v39   ;;  %v9519_v61 = vld [vmem:[#allocation49_spill] sm:$0xff]  ;;  %v9521_v5 = vld [vmem:[#allocation19_spill] sm:$0xff]  ;;  %v9522_v13 = vld [vmem:[#allocation20_spill] sm:$0xff] }
 0x376   :  { %v8730_v26 = vpop.permute.xlu1 %4273 }
 0x377   :  { %v4523_v32 = vrot.slane %v4522_v28, 4  ;;  %v4530_v52 = vrot.slane %v4529_v58, 4  ;;  %v4066_v19 = vpop.permute.xlu0 %4065 }
 0x378   :  { %v4398_v24 = vmul.f32 %v4066_v19, %v9516_v6  ;;  %v4399_v37 = vmul.f32 %v4066_v19, %v9517_v40  ;;  %v6903_v6 = vld [vmem:[#allocation9 + $0x50] sm:$0xff]  }
 0x379   :  { %v4524_v39 = vadd.f32 %v4523_v32, %v4522_v28  ;;  %v4531_v11 = vadd.f32 %v4530_v52, %v4529_v58  ;;  %6405 = vset.pattern.permute.xlu1 %v7117_v41  ;;  %v6898_v28 = vld [vmem:[#allocation9 + $0xb8] sm:$0xff]   ;;  %v6901_v58 = vld [vmem:[#allocation9 + $0xf0] sm:$0xff]   ;;  %v4271_v32 = vrot.slane %v8705_v20, %v8312_v50  ;;  %v4504_v20 = vrot.slane %v8747_v30, 2  ;;  %6297 = vmatprep.subr.bf16.mxu0 %v6903_v6  ;;  %v6907_v6 = vld [vmem:[#allocation9 + $0x48] sm:$0xff]  }
 0x37a   :  { %v4536_v22 = vadd.f32 %v4404_v17, %v4398_v24  ;;  %v4543_v35 = vadd.f32 %v4405_v8, %v4399_v37  ;;  %4305 = vperm.xlu1 %6405, %v8582_v14   ;;  %v9523_v37 = vld [vmem:[#allocation51_spill] sm:$0xff]  ;;  %6310 = vmatpush3.bf16.msra.mxu1 %v6898_v28 }
 0x37b   :  { %v4525_v7 = vrot.slane %v4524_v39, 2  ;;  %v4532_v4 = vrot.slane %v4531_v11, 2  ;;  %v3999_v34 = vpop.permute.xlu1 %3998  ;;  %v4078_v21 = vpop.permute.xlu0 %4077  ;;  %6311 = vmatprep.subr.bf16.mxu1 %v6901_v58  ;;  %6298 = vmatpush3.bf16.msra.mxu0 %v6904_v62  ;;  %v9526_v58 = vld [vmem:[#allocation18_spill] sm:$0xff] }
 0x37c   :  { %v4537_v41 = vrot.slane %v4536_v22, 4  ;;  %v4544_v16 = vrot.slane %v4543_v35, 4  ;;  %v4408_v36 = vmul.f32 %v3999_v34, %v9519_v61  ;;  %v4409_v38 = vmul.f32 %v3999_v34, %v9520_v54  ;;  %6299 = vmatprep.subr.bf16.mxu0 %v6907_v6 }
 0x37d   :  { %v4526_v17 = vadd.f32 %v4525_v7, %v4524_v39  ;;  %v4533_v8 = vadd.f32 %v4532_v4, %v4531_v11  ;;  %v8752_v27 = vmul.f32 %v4078_v21, %v9521_v5  ;;  %v8755_v53 = vmul.f32 %v4078_v21, %v9522_v13 }
 0x37e   :  { %v4538_v12 = vadd.f32 %v4537_v41, %v4536_v22  ;;  %v4545_v0 = vadd.f32 %v4544_v16, %v4543_v35  ;;  %4113 = vperm.xlu1 %6405, %v8602_v47   ;;  %v6902_v47 = vld [vmem:[#allocation9 + $0xb0] sm:$0xff]   ;;  %v6905_v41 = vld [vmem:[#allocation9 + $0xe8] sm:$0xff]   ;;  %v4856_v16 = vmul.f32 %v8739_v55, %v4271_v32  ;;  %v4857_v61 = vmul.f32 %v8759_v49, %v4271_v32 }
 0x37f   :  { %v4527_v52 = vrot.slane %v4526_v17, 1  ;;  %v4534_v19 = vrot.slane %v4533_v8, 1  ;;  %v4004_v57 = vpop.permute.xlu1 %4003  ;;  %6312 = vmatpush3.bf16.msra.mxu1 %v6902_v47 }
 0x380   :  { %v4539_v24 = vrot.slane %v4538_v12, 2  ;;  %v4546_v40 = vrot.slane %v4545_v0, 2  ;;  %v4414_v60 = vmul.f32 %v4004_v57, %v9523_v37  ;;  %v4415_v39 = vmul.f32 %v4004_v57, %v9524_v43  ;;  %v8767_v11 = vpop.permute.xlu0 %4008  ;;  %6313 = vmatprep.subr.bf16.mxu1 %v6905_v41 }
 0x381   :  { %v4528_v22 = vadd.f32 %v4527_v52, %v4526_v17  ;;  %v4535_v35 = vadd.f32 %v4534_v19, %v4533_v8 }
 0x382   :  { %v4540_v7 = vadd.f32 %v4539_v24, %v4538_v12  ;;  %v4547_v4 = vadd.f32 %v4546_v40, %v4545_v0  ;;  %v4564_v34 = vadd.f32 %v4414_v60, %v4408_v36  ;;  %v4571_v21 = vadd.f32 %v4415_v39, %v4409_v38  ;;  %4117 = vperm.xlu1 %6405, %v8605_v23   ;;  %v6906_v36 = vld [vmem:[#allocation9 + $0xa8] sm:$0xff]   ;;  %v9525_v0 = vld [vmem:[#allocation17_spill] sm:$0xff] }
 0x383   :  { %v4902_v54 = vadd.f32 %v4854_v3, %v4528_v22  ;;  %v8775_v5 = vadd.f32 %v4855_v51, %v4535_v35  ;;  %v4944_v38 = vpack.c.bf16 %v8707_v29, %v8707_v29  ;;  %v6908_v24 = vld [vmem:[#allocation9 + $0x8] sm:$0xff]   ;;  %v4210_v40 = vrot.slane %v8720_v44, %v8312_v50  ;;  %6314 = vmatpush3.bf16.msra.mxu1 %v6906_v36  ;;  %v6912_v36 = vld [vmem:[#allocation9] sm:$0xff]  }
 0x384   :  { %v4541_v10 = vrot.slane %v4540_v7, 1  ;;  %v4548_v9 = vrot.slane %v4547_v4, 1  ;;  %v4565_v17 = vrot.slane %v4564_v34, 4  ;;  %v4572_v8 = vrot.slane %v4571_v21, 4  ;;  %v4074_v13 = vpop.permute.xlu1 %4073  ;;  %6300 = vmatpush3.bf16.msra.mxu0 %v6908_v24  ;;  %v9529_v24 = vld [vmem:[#allocation78_spill] sm:$0xff] }
 0x385   :  { %v4950_v12 = vpack.c.bf16 %v4902_v54, %v4902_v54  ;;  %v4410_v28 = vmul.f32 %v4074_v13, %v9525_v0  ;;  %v4411_v32 = vmul.f32 %v4074_v13, %v9526_v58  ;;  %v8781_v3 = vpop.permute.xlu0 %4085  ;;  %v4840_v13 = vsub.s32 5, %v8267_v45 }
 0x386   :  { %v4542_v51 = vadd.f32 %v4541_v10, %v4540_v7  ;;  %v4549_v52 = vadd.f32 %v4548_v9, %v4547_v4  ;;  %v4566_v19 = vadd.f32 %v4565_v17, %v4564_v34  ;;  %v4573_v57 = vadd.f32 %v4572_v8, %v4571_v21  ;;  %6406 = vset.pattern.permute.xlu1 %v7118_v25  ;;  %v6909_v10 = vld [vmem:[#allocation9 + $0xe0] sm:$0xff]  }
 0x387   :  { %v5149_v29 = vunpack.c.l.b16 %v4950_v12  ;;  %v4578_v37 = vadd.f32 %v8752_v27, %v4410_v28  ;;  %v4585_v60 = vadd.f32 %v8755_v53, %v4411_v32  ;;  %4181 = vperm.xlu1 %6406, %v8605_v23   ;;  %v5143_v25 = vunpack.c.l.b16 %v4944_v38  ;;  %v9528_v28 = vld [vmem:[#allocation77_spill] sm:$0xff]  ;;  %6315 = vmatprep.subr.bf16.mxu1 %v6909_v10  ;;  %v9531_v10 = vld [vmem:[#allocation54_spill] sm:$0xff] }
 0x388   :  { %v8789_v43 = vadd.f32 %v4856_v16, %v4542_v51  ;;  %v8791_v39 = vadd.f32 %v4857_v61, %v4549_v52  ;;  %v4567_v47 = vrot.slane %v4566_v19, 2  ;;  %v4574_v62 = vrot.slane %v4573_v57, 2  ;;  %v9527_v61 = vld [vmem:[#allocation24_spill] sm:$0xff] }
 0x389   :  { %v5191_v22 = vrot.slane %v5149_v29, 7  ;;  %v4579_v35 = vrot.slane %v4578_v37, 4  ;;  %v4586_v7 = vrot.slane %v4585_v60, 4  ;;  %v4142_v44 = vpop.permute.xlu1 %4141  ;;  %v8794_v27 = vadd.f32 %v4504_v20, %v8747_v30  ;;  %v6910_v30 = vld [vmem:[#allocation9 + $0x40] sm:$0xff]  }
 0x38a   :  { %v4568_v53 = vadd.f32 %v4567_v47, %v4566_v19  ;;  %v4575_v4 = vadd.f32 %v4574_v62, %v4573_v57  ;;  %v8796_v23 = vpop.permute.xlu0 %4222  ;;  %v4836_v34 = vsub.s32 4, %v8267_v45  ;;  %v8804_v54 = vmul.f32 %v8781_v3, %v9527_v61  ;;  %v6911_v20 = vld [vmem:[#allocation9 + $0xa0] sm:$0xff]   ;;  %6301 = vmatprep.subr.bf16.mxu0 %v6910_v30 }
 0x38b   :  { %v8800_v21 = vsel %vm5192_vm2, %v5191_v22, %v5143_v25  ;;  %v4580_v41 = vadd.f32 %v4579_v35, %v4578_v37  ;;  %v4587_v16 = vadd.f32 %v4586_v7, %v4585_v60  ;;  %4353 = vperm.xlu1 %6406, %v8551_v15   ;;  %v4860_v9 = vmul.f32 %v8689_v63, %v4210_v40 }
 0x38c   :  { %v4569_v17 = vrot.slane %v4568_v53, 1  ;;  %v4576_v8 = vrot.slane %v4575_v4, 1  ;;  %v4279_v38 = vrot.slane %v8730_v26, %v8312_v50  ;;  %v8812_v58 = vmul.f32 %v4142_v44, %v9528_v28  ;;  %6316 = vmatpush3.bf16.msra.mxu1 %v6911_v20  ;;  %6302 = vmatpush3.bf16.msra.mxu0 %v6912_v36 }
 0x38d   :  { %v4581_v12 = vrot.slane %v4580_v41, 2  ;;  %v4588_v0 = vrot.slane %v4587_v16, 2  ;;  %v4861_v15 = vmul.f32 %v8695_v56, %v4210_v40  ;;  %v4499_v45 = vrot.slane %v8769_v18, 1 }
 0x38e   :  { %v4570_v32 = vadd.f32 %v4569_v17, %v4568_v53  ;;  %v4577_v51 = vadd.f32 %v4576_v8, %v4575_v4  ;;  %v4214_v52 = vpop.permute.xlu1 %4213  ;;  %v8815_v19 = vpop.permute.xlu0 %4018  ;;  %v4951_v26 = vpack.c.bf16 %v8775_v5, %v8775_v5  ;;  %v8821_v29 = vmul.f32 %v4142_v44, %v9529_v24  ;;  %v9530_v53 = vld [vmem:[#allocation53_spill] sm:$0xff]  ;;  %v9533_v8 = vld [vmem:[#allocation55_spill] sm:$0xff] }
 0x38f   :  { %v4582_v57 = vadd.f32 %v4581_v12, %v4580_v41  ;;  %v4589_v6 = vadd.f32 %v4588_v0, %v4587_v16  ;;  %4361 = vperm.xlu1 %6406, %v8570_v46   ;;  %v4945_v40 = vpack.c.bf16 %v8709_v31, %v8709_v31  ;;  %v4506_v47 = vrot.slane %v8794_v27, 1 }
 0x390   :  { %v4908_v37 = vadd.f32 %v4860_v9, %v4570_v32  ;;  %v4909_v60 = vadd.f32 %v4861_v15, %v4577_v51  ;;  %v4862_v62 = vmul.f32 %v8739_v55, %v4279_v38  ;;  %v8829_v5 = vrot.slane %v8674_v42, %v4836_v34  ;;  %v9532_v9 = vld [vmem:[#allocation23_spill] sm:$0xff] }
 0x391   :  { %v4583_v25 = vrot.slane %v4582_v57, 1  ;;  %v4590_v22 = vrot.slane %v4589_v6, 1  ;;  %v4863_v35 = vmul.f32 %v8759_v49, %v4279_v38  ;;  %v4420_v46 = vmul.f32 %v8767_v11, %v9530_v53 }
 0x392   :  { %v4956_v7 = vpack.c.bf16 %v4908_v37, %v4908_v37  ;;  %v4957_v44 = vpack.c.bf16 %v4909_v60, %v4909_v60  ;;  %v4014_v4 = vpop.permute.xlu1 %4013  ;;  %v8834_v31 = vpop.permute.xlu0 %4028  ;;  %v5150_v41 = vunpack.c.l.b16 %v4951_v26  ;;  %v4421_v17 = vmul.f32 %v8767_v11, %v9532_v9  ;;  %v9538_v9 = vld [vmem:[#allocation79_spill] sm:$0xff] }
 0x393   :  { %v4584_v16 = vadd.f32 %v4583_v25, %v4582_v57  ;;  %v4591_v61 = vadd.f32 %v4590_v22, %v4589_v6  ;;  %v4426_v30 = vmul.f32 %v4014_v4, %v9531_v10  ;;  %4369 = vperm.xlu1 %6406, %v8582_v14   ;;  %v4427_v36 = vmul.f32 %v4014_v4, %v9533_v8  ;;  %v9534_v57 = vld [vmem:[#allocation25_spill] sm:$0xff]  ;;  %v9536_v22 = vld [vmem:[#allocation22_spill] sm:$0xff] }
 0x394   :  { %v5155_v20 = vunpack.c.l.b16 %v4956_v7  ;;  %v5156_v34 = vunpack.c.l.b16 %v4957_v44  ;;  %v4952_v38 = vpack.c.bf16 %v8789_v43, %v8789_v43  ;;  %v4953_v15 = vpack.c.bf16 %v8791_v39, %v8791_v39  ;;  %v9535_v39 = vld [vmem:[#allocation21_spill] sm:$0xff] }
 0x395   :  { %v8843_v12 = vadd.f32 %v4862_v62, %v4584_v16  ;;  %v8845_v0 = vadd.f32 %v4863_v35, %v4591_v61  ;;  %v4606_v28 = vadd.f32 %v4426_v30, %v4420_v46  ;;  %v4613_v14 = vadd.f32 %v4427_v36, %v4421_v17  ;;  %v9539_v17 = vld [vmem:[#allocation80_spill] sm:$0xff] }
 0x396   :  { %v5194_v32 = vrot.slane %v5155_v20, 6  ;;  %v8850_v51 = vrot.slane %v8674_v42, %v4840_v13  ;;  %v5212_v26 = vrot.slane %v5150_v41, 7  ;;  %v5214_v11 = vrot.slane %v5156_v34, 6 }
 0x397   :  { %v4429_v6 = vmul.f32 %v8781_v3, %v9534_v57  ;;  %v4607_v24 = vrot.slane %v4606_v28, 4  ;;  %v4082_v43 = vpop.permute.xlu1 %4081  ;;  %v8854_v37 = vpop.permute.xlu0 %4097  ;;  %v4614_v62 = vrot.slane %v4613_v14, 4  ;;  %v5144_v42 = vunpack.c.l.b16 %v4945_v40 }
 0x398   :  { %v8858_v60 = vsel %vm5195_vm3, %v5194_v32, %v8800_v21  ;;  %v4422_v25 = vmul.f32 %v4082_v43, %v9535_v39  ;;  %v4423_v35 = vmul.f32 %v4082_v43, %v9536_v22  ;;  %v8862_v13 = vunpack.c.l.b16 %v4952_v38  ;;  %v9540_v38 = vld [vmem:[#allocation36_spill] sm:$0xff]  ;;  %v6913_v32 = vld [vmem:[#allocation9 + $0xd8] sm:$0xff]  }
 0x399   :  { %v4608_v7 = vadd.f32 %v4607_v24, %v4606_v28  ;;  %v8865_v44 = vadd.f32 %v4499_v45, %v8769_v18  ;;  %v8867_v3 = vunpack.c.l.b16 %v4953_v15  ;;  %v4615_v53 = vadd.f32 %v4614_v62, %v4613_v14  ;;  %6317 = vmatprep.subr.bf16.mxu1 %v6913_v32  ;;  %v6919_v22 = vld [vmem:[#allocation9 + $0xd0] sm:$0xff]  }
 0x39a   :  { %v4620_v46 = vadd.f32 %v8804_v54, %v4422_v25  ;;  %v4627_v4 = vadd.f32 %v4429_v6, %v4423_v35  ;;  %v4228_v21 = vrot.slane %v8796_v23, %v8312_v50  ;;  %v4219_v41 = vrot.slane %v4214_v52, %v8312_v50 }
 0x39b   :  { %9537 = vst [vmem:[#allocation45_spill] sm:$0xff] %v8867_v3  ;;  %v4609_v16 = vrot.slane %v4608_v7, 2  ;;  %v5213_v40 = vsel %vm5192_vm2, %v5212_v26, %v5144_v42  ;;  %v4616_v61 = vrot.slane %v4615_v53, 2  ;;  %v8877_v18 = vadd.f32 %v4506_v47, %v8794_v27  ;;  %v6914_v27 = vld [vmem:[#allocation9 + $0x98] sm:$0xff]  }
 0x39c   :  { %v4621_v10 = vrot.slane %v4620_v46, 4  ;;  %v4146_v30 = vpop.permute.xlu1 %4145  ;;  %v8874_v20 = vpop.permute.xlu0 %4240  ;;  %v8880_v45 = vsel %vm5195_vm3, %v5214_v11, %v5213_v40  ;;  %v4628_v34 = vrot.slane %v4627_v4, 4  ;;  %v4432_v28 = vmul.f32 %v8815_v19, %v9540_v38  ;;  %v6915_v47 = vld [vmem:[#allocation9 + $0x178] sm:$0xff]   ;;  %6318 = vmatpush3.bf16.msra.mxu1 %v6914_v27 }
 0x39d   :  { %v4610_v54 = vadd.f32 %v4609_v16, %v4608_v7  ;;  %v4424_v23 = vmul.f32 %v4146_v30, %v9538_v9  ;;  %v4425_v52 = vmul.f32 %v4146_v30, %v9539_v17  ;;  %v4617_v15 = vadd.f32 %v4616_v61, %v4615_v53  ;;  %6331 = vmatprep.subr.bf16.mxu0 %v6915_v47  ;;  %v9541_v7 = vld [vmem:[#allocation81_spill] sm:$0xff]  ;;  %v6925_v9 = vld [vmem:[#allocation9 + $0xc8] sm:$0xff]  }
 0x39e   :  { %v8889_v14 = vmul.f32 %v8689_v63, %v4228_v21  ;;  %v8892_v26 = vmul.f32 %v8695_v56, %v4228_v21  ;;  %v4866_v11 = vmul.f32 %v8689_v63, %v4219_v41  ;;  %v4958_v6 = vpack.c.bf16 %v8843_v12, %v8843_v12  ;;  %v9542_v21 = vld [vmem:[#allocation82_spill] sm:$0xff]  ;;  %v6920_v12 = vld [vmem:[#allocation9 + $0x90] sm:$0xff]   ;;  %6319 = vmatprep.subr.bf16.mxu1 %v6919_v22 }
 0x39f   :  { %v4611_v57 = vrot.slane %v4610_v54, 1  ;;  %v4959_v24 = vpack.c.bf16 %v8845_v0, %v8845_v0  ;;  %v4618_v43 = vrot.slane %v4617_v15, 1  ;;  %v4622_v62 = vadd.f32 %v4621_v10, %v4620_v46  ;;  %v9543_v0 = vld [vmem:[#allocation37_spill] sm:$0xff]  ;;  %v9544_v10 = vld [vmem:[#allocation38_spill] sm:$0xff] }
 0x3a0   :  { %v4150_v39 = vpop.permute.xlu1 %4149  ;;  %v8899_v25 = vpop.permute.xlu0 %4038  ;;  %v4629_v42 = vadd.f32 %v4628_v34, %v4627_v4  ;;  %v4867_v40 = vmul.f32 %v8695_v56, %v4219_v41  ;;  %v4433_v61 = vmul.f32 %v8815_v19, %v9543_v0  ;;  %v8908_v30 = vmul.f32 %v8834_v31, %v9544_v10  ;;  %v9545_v4 = vld [vmem:[#allocation39_spill] sm:$0xff]  ;;  %6320 = vmatpush3.bf16.msra.mxu1 %v6920_v12 }
 0x3a1   :  { %v4612_v35 = vadd.f32 %v4611_v57, %v4610_v54  ;;  %v4430_v53 = vmul.f32 %v4150_v39, %v9541_v7  ;;  %v4431_v16 = vmul.f32 %v4150_v39, %v9542_v21  ;;  %v4619_v46 = vadd.f32 %v4618_v43, %v4617_v15  ;;  %6321 = vmatprep.subr.bf16.mxu1 %v6925_v9  ;;  %v6926_v7 = vld [vmem:[#allocation9 + $0x88] sm:$0xff]   ;;  %v9551_v21 = vld [vmem:[#allocation29_spill] sm:$0xff] }
 0x3a2   :  { %v8912_v34 = vmul.f32 %v8834_v31, %v9545_v4  ;;  %v8914_v32 = vunpack.c.l.b16 %v4958_v6  ;;  %v8916_v41 = vunpack.c.l.b16 %v4959_v24  ;;  %v4623_v19 = vrot.slane %v4622_v62, 2  ;;  %v9550_v6 = vld [vmem:[#allocation57_spill] sm:$0xff] }
 0x3a3   :  { %v4914_v54 = vadd.f32 %v4866_v11, %v4612_v35  ;;  %v4634_v17 = vadd.f32 %v4430_v53, %v4424_v23  ;;  %v4641_v38 = vadd.f32 %v4431_v16, %v4425_v52  ;;  %v4915_v27 = vadd.f32 %v4867_v40, %v4619_v46  ;;  %v9548_v35 = vld [vmem:[#allocation28_spill] sm:$0xff]  ;;  %v9549_v23 = vld [vmem:[#allocation26_spill] sm:$0xff] }
 0x3a4   :  { %9546 = vst [vmem:[#allocation46_spill] sm:$0xff] %v8914_v32  ;;  %9547 = vst [vmem:[#allocation47_spill] sm:$0xff] %v8916_v41  ;;  %v4630_v47 = vrot.slane %v4629_v42, 2  ;;  %v8922_v31 = vmul.f32 %v8854_v37, %v9548_v35  ;;  %v8928_v16 = vmul.f32 %v8854_v37, %v9551_v21  ;;  %v6931_v46 = vld [vmem:[#allocation9 + $0xc0] sm:$0xff]   ;;  %v4246_v10 = vrot.slane %v8874_v20, %v8312_v50  ;;  %v9554_v21 = vld [vmem:[#allocation40_spill] sm:$0xff] }
 0x3a5   :  { %v4962_v15 = vpack.c.bf16 %v4914_v54, %v4914_v54  ;;  %v4635_v57 = vrot.slane %v4634_v17, 4  ;;  %v4642_v43 = vrot.slane %v4641_v38, 4  ;;  %v4024_v39 = vpop.permute.xlu1 %4023  ;;  %v8918_v22 = vpop.permute.xlu0 %4105  ;;  %v4963_v11 = vpack.c.bf16 %v4915_v27, %v4915_v27  ;;  %6322 = vmatpush3.bf16.msra.mxu1 %v6926_v7  ;;  %v9560_v32 = vld [vmem:[#allocation65_spill] sm:$0xff] }
 0x3a6   :  { %v4438_v52 = vmul.f32 %v4024_v39, %v9549_v23  ;;  %v4439_v24 = vmul.f32 %v4024_v39, %v9550_v6  ;;  %v4624_v39 = vadd.f32 %v4623_v19, %v4622_v62  ;;  %v4631_v9 = vadd.f32 %v4630_v47, %v4629_v42  ;;  %6323 = vmatprep.subr.bf16.mxu1 %v6931_v46  ;;  %v9557_v23 = vld [vmem:[#allocation32_spill] sm:$0xff] }
 0x3a7   :  { %v5161_v53 = vunpack.c.l.b16 %v4962_v15  ;;  %v4636_v40 = vadd.f32 %v4635_v57, %v4634_v17  ;;  %v4643_v0 = vadd.f32 %v4642_v43, %v4641_v38  ;;  %v5162_v12 = vunpack.c.l.b16 %v4963_v11  ;;  %v6932_v15 = vld [vmem:[#allocation9 + $0x80] sm:$0xff]   ;;  %v9553_v11 = vld [vmem:[#allocation60_spill] sm:$0xff] }
 0x3a8   :  { %v4648_v54 = vadd.f32 %v4438_v52, %v4432_v28  ;;  %v4655_v4 = vadd.f32 %v4439_v24, %v4433_v61  ;;  %v9552_v43 = vld [vmem:[#allocation27_spill] sm:$0xff]  ;;  %v8942_v42 = vmul.f32 %v8689_v63, %v4246_v10  ;;  %v8946_v24 = vmul.f32 %v8695_v56, %v4246_v10 }
 0x3a9   :  { %v5197_v35 = vrot.slane %v5161_v53, 5  ;;  %v5216_v37 = vrot.slane %v5162_v12, 5  ;;  %v4637_v28 = vrot.slane %v4636_v40, 2  ;;  %v4644_v61 = vrot.slane %v4643_v0, 2  ;;  %6324 = vmatpush3.bf16.msra.mxu1 %v6932_v15  ;;  %v9555_v12 = vld [vmem:[#allocation43_spill] sm:$0xff] }
 0x3aa   :  { %v4649_v6 = vrot.slane %v4648_v54, 4  ;;  %v4656_v17 = vrot.slane %v4655_v4, 4  ;;  %v4090_v38 = vpop.permute.xlu1 %4089  ;;  %v8934_v57 = vpop.permute.xlu0 %4048  ;;  %v4625_v7 = vrot.slane %v4624_v39, 1  ;;  %v4632_v53 = vrot.slane %v4631_v9, 1 }
 0x3ab   :  { %v8938_v20 = vsel %vm5198_vm4, %v5197_v35, %v8858_v60  ;;  %v4434_v62 = vmul.f32 %v4090_v38, %v9552_v43  ;;  %v4435_v52 = vmul.f32 %v4090_v38, %v9553_v11  ;;  %v8950_v60 = vsel %vm5198_vm4, %v5216_v37, %v8880_v45  ;;  %v9556_v38 = vld [vmem:[#allocation63_spill] sm:$0xff] }
 0x3ac   :  { %v4650_v19 = vadd.f32 %v4649_v6, %v4648_v54  ;;  %v4657_v47 = vadd.f32 %v4656_v17, %v4655_v4  ;;  %v8954_v46 = vmul.f32 %v8899_v25, %v9554_v21  ;;  %v8958_v54 = vmul.f32 %v8899_v25, %v9555_v12 }
 0x3ad   :  { %v4638_v10 = vadd.f32 %v4637_v28, %v4636_v40  ;;  %v4645_v17 = vadd.f32 %v4644_v61, %v4643_v0  ;;  %v8964_v21 = vmul.f32 %v8918_v22, %v9557_v23  ;;  %v4626_v27 = vadd.f32 %v4625_v7, %v4624_v39 }
 0x3ae   :  { %v4651_v4 = vrot.slane %v4650_v19, 2  ;;  %v4658_v35 = vrot.slane %v4657_v47, 2  ;;  %v4094_v6 = vpop.permute.xlu1 %4093  ;;  %v4633_v8 = vadd.f32 %v4632_v53, %v4631_v9  ;;  %v9558_v9 = vld [vmem:[#allocation83_spill] sm:$0xff]  ;;  %v9559_v53 = vld [vmem:[#allocation84_spill] sm:$0xff] }
 0x3af   :  { %v4440_v43 = vmul.f32 %v4094_v6, %v9556_v38  ;;  %v4441_v11 = vmul.f32 %v4094_v6, %v8736_v2  ;;  %v4282_v45 = vpop.permute.xlu0 %4281  ;;  %v4646_v23 = vrot.slane %v4645_v17, 1 }
 0x3b0   :  { %v4652_v37 = vadd.f32 %v4651_v4, %v4650_v19  ;;  %v4659_v15 = vadd.f32 %v4658_v35, %v4657_v47  ;;  %v4287_v36 = vrot.slane %v4282_v45, %v8312_v50  ;;  %v4639_v4 = vrot.slane %v4638_v10, 1 }
 0x3b1   :  { %v4662_v25 = vadd.f32 %v4440_v43, %v4434_v62  ;;  %v4669_v12 = vadd.f32 %v4441_v11, %v4435_v52 }
 0x3b2   :  { %v4653_v41 = vrot.slane %v4652_v37, 1  ;;  %v4660_v40 = vrot.slane %v4659_v15, 1  ;;  %v4868_v0 = vmul.f32 %v8739_v55, %v4287_v36  ;;  %v4869_v28 = vmul.f32 %v8759_v49, %v4287_v36 }
 0x3b3   :  { %v4663_v2 = vrot.slane %v4662_v25, 4  ;;  %v4670_v61 = vrot.slane %v4669_v12, 4  ;;  %v4154_v19 = vpop.permute.xlu1 %4153  ;;  %v4290_v47 = vpop.permute.xlu0 %4289 }
 0x3b4   :  { %v4654_v35 = vadd.f32 %v4653_v41, %v4652_v37  ;;  %v4661_v6 = vadd.f32 %v4660_v40, %v4659_v15  ;;  %v4916_v38 = vadd.f32 %v4868_v0, %v4626_v27  ;;  %v4917_v62 = vadd.f32 %v4869_v28, %v4633_v8  ;;  %v9561_v40 = vld [vmem:[#allocation42_spill] sm:$0xff] }
 0x3b5   :  { %v4664_v52 = vadd.f32 %v4663_v2, %v4662_v25  ;;  %v4671_v39 = vadd.f32 %v4670_v61, %v4669_v12  ;;  %v8970_v7 = vmul.f32 %v4154_v19, %v9558_v9  ;;  %v8973_v43 = vmul.f32 %v4154_v19, %v9559_v53 }
 0x3b6   :  { %v4920_v36 = vadd.f32 %v8889_v14, %v4654_v35  ;;  %v4921_v11 = vadd.f32 %v8892_v26, %v4661_v6  ;;  %v4964_v45 = vpack.c.bf16 %v4916_v38, %v4916_v38  ;;  %v4965_v3 = vpack.c.bf16 %v4917_v62, %v4917_v62  ;;  %v9562_v14 = vld [vmem:[#allocation33_spill] sm:$0xff] }
 0x3b7   :  { %v8979_v41 = vmul.f32 %v8918_v22, %v9560_v32  ;;  %v4665_v27 = vrot.slane %v4664_v52, 2  ;;  %v4672_v8 = vrot.slane %v4671_v39, 2  ;;  %v4295_v37 = vrot.slane %v4290_v47, %v8312_v50  ;;  %v4298_v15 = vpop.permute.xlu0 %4297 }
 0x3b8   :  { %v4968_v25 = vpack.c.bf16 %v4920_v36, %v4920_v36  ;;  %v4969_v12 = vpack.c.bf16 %v4921_v11, %v4921_v11  ;;  %v8984_v0 = vmul.f32 %v8934_v57, %v9561_v40  ;;  %v8988_v26 = vmul.f32 %v8934_v57, %v9562_v14  ;;  %v4232_v28 = vpop.permute.xlu1 %4231  ;;  %v9565_v40 = vld [vmem:[#allocation59_spill] sm:$0xff] }
 0x3b9   :  { %v4666_v2 = vadd.f32 %v4665_v27, %v4664_v52  ;;  %v4673_v61 = vadd.f32 %v4672_v8, %v4671_v39  ;;  %v8990_v32 = vunpack.c.l.b16 %v4964_v45  ;;  %v8992_v22 = vunpack.c.l.b16 %v4965_v3 }
 0x3ba   :  { %v5167_v19 = vunpack.c.l.b16 %v4968_v25  ;;  %v5168_v47 = vunpack.c.l.b16 %v4969_v12  ;;  %v8994_v35 = vadd.f32 %v4639_v4, %v4638_v10  ;;  %v8996_v6 = vadd.f32 %v4646_v23, %v4645_v17 }
 0x3bb   :  { %9563 = vst [vmem:[#allocation48_spill] sm:$0xff] %v8992_v22  ;;  %v4667_v38 = vrot.slane %v4666_v2, 1  ;;  %v4674_v62 = vrot.slane %v4673_v61, 1  ;;  %v4874_v9 = vmul.f32 %v8739_v55, %v4295_v37  ;;  %v4303_v57 = vrot.slane %v4298_v15, %v8312_v50  ;;  %v9574_v22 = vld [vmem:[#allocation30_spill] sm:$0xff] }
 0x3bc   :  { %v5200_v53 = vrot.slane %v5167_v19, 4  ;;  %v5218_v36 = vrot.slane %v5168_v47, 4  ;;  %v4875_v52 = vmul.f32 %v8759_v49, %v4295_v37  ;;  %v4237_v39 = vrot.slane %v4232_v28, %v8312_v50  ;;  %v4034_v3 = vpop.permute.xlu1 %4033  ;;  %v4134_v11 = vpop.permute.xlu0 %4133  ;;  %v9564_v37 = vld [vmem:[#allocation58_spill] sm:$0xff]  ;;  %v9566_v28 = vld [vmem:[#allocation73_spill] sm:$0xff] }
 0x3bd   :  { %v4668_v17 = vadd.f32 %v4667_v38, %v4666_v2  ;;  %v4675_v4 = vadd.f32 %v4674_v62, %v4673_v61  ;;  %v9009_v27 = vmul.f32 %v8739_v55, %v4303_v57  ;;  %v9012_v8 = vmul.f32 %v8759_v49, %v4303_v57  ;;  %v9567_v61 = vld [vmem:[#allocation74_spill] sm:$0xff] }
 0x3be   :  { %v9006_v23 = vsel %vm5201_vm5, %v5200_v53, %v8938_v20  ;;  %v4450_v15 = vmul.f32 %v4034_v3, %v9564_v37  ;;  %v4451_v14 = vmul.f32 %v4034_v3, %v9565_v40  ;;  %v4406_v19 = vmul.f32 %v4134_v11, %v9566_v28  ;;  %v9569_v37 = vld [vmem:[#allocation75_spill] sm:$0xff] }
 0x3bf   :  { %v4922_v25 = vadd.f32 %v4874_v9, %v4668_v17  ;;  %v4923_v12 = vadd.f32 %v4875_v52, %v4675_v4  ;;  %v9018_v2 = vmul.f32 %v8689_v63, %v4237_v39  ;;  %v4407_v47 = vmul.f32 %v4134_v11, %v9567_v61 }
 0x3c0   :  { %v4690_v20 = vadd.f32 %v4450_v15, %v8908_v30  ;;  %v4138_v38 = vpop.permute.xlu0 %4137  ;;  %v9024_v62 = vsel %vm5201_vm5, %v5218_v36, %v8950_v60  ;;  %v4697_v9 = vadd.f32 %v4451_v14, %v8912_v34  ;;  %v4550_v52 = vadd.f32 %v4406_v19, %v8713_v59  ;;  %v9570_v30 = vld [vmem:[#allocation76_spill] sm:$0xff] }
 0x3c1   :  { %9568 = vst [vmem:[#allocation56_spill] sm:$0xff] %v9024_v62  ;;  %v4970_v57 = vpack.c.bf16 %v4922_v25, %v4922_v25  ;;  %v4971_v53 = vpack.c.bf16 %v4923_v12, %v4923_v12  ;;  %v4102_v3 = vpop.permute.xlu1 %4101  ;;  %v4557_v4 = vadd.f32 %v4407_v47, %v8716_v1  ;;  %v4412_v40 = vmul.f32 %v4138_v38, %v9569_v37 }
 0x3c2   :  { %v4691_v17 = vrot.slane %v4690_v20, 4  ;;  %v4413_v15 = vmul.f32 %v4138_v38, %v9570_v30  ;;  %v4879_v28 = vmul.f32 %v8695_v56, %v4237_v39  ;;  %v4698_v60 = vrot.slane %v4697_v9, 4 }
 0x3c3   :  { %v9031_v11 = vunpack.c.l.b16 %v4970_v57  ;;  %v4551_v36 = vrot.slane %v4550_v52, 4  ;;  %v4558_v12 = vrot.slane %v4557_v4, 4  ;;  %v4592_v34 = vadd.f32 %v8812_v58, %v4412_v40 }
 0x3c4   :  { %v4692_v25 = vadd.f32 %v4691_v17, %v4690_v20  ;;  %v4599_v59 = vadd.f32 %v8821_v29, %v4413_v15  ;;  %v4126_v14 = vpop.permute.xlu0 %4125  ;;  %v9036_v19 = vunpack.c.l.b16 %v4971_v53  ;;  %v4699_v61 = vadd.f32 %v4698_v60, %v4697_v9  ;;  %v9573_v20 = vld [vmem:[#allocation64_spill] sm:$0xff] }
 0x3c5   :  { %9571 = vst [vmem:[#allocation61_spill] sm:$0xff] %v9031_v11  ;;  %v4552_v47 = vadd.f32 %v4551_v36, %v4550_v52  ;;  %v4559_v57 = vadd.f32 %v4558_v12, %v4557_v4  ;;  %v4593_v37 = vrot.slane %v4592_v34, 4  ;;  %v4452_v17 = vmul.f32 %v4102_v3, %v9573_v20 }
 0x3c6   :  { %9572 = vst [vmem:[#allocation35_spill] sm:$0xff] %v9036_v19  ;;  %v4693_v38 = vrot.slane %v4692_v25, 2  ;;  %v4600_v30 = vrot.slane %v4599_v59, 4  ;;  %v4166_v39 = vpop.permute.xlu1 %4165  ;;  %v4700_v10 = vrot.slane %v4699_v61, 2  ;;  %v4453_v58 = vmul.f32 %v4102_v3, %v9574_v22  ;;  %v9578_v19 = vld [vmem:[#allocation89_spill] sm:$0xff] }
 0x3c7   :  { %v4553_v45 = vrot.slane %v4552_v47, 2  ;;  %v4560_v29 = vrot.slane %v4559_v57, 2  ;;  %v4594_v15 = vadd.f32 %v4593_v37, %v4592_v34  ;;  %v4704_v52 = vadd.f32 %v4452_v17, %v8922_v31  ;;  %v9576_v31 = vld [vmem:[#allocation72_spill] sm:$0xff] }
 0x3c8   :  { %v4694_v40 = vadd.f32 %v4693_v38, %v4692_v25  ;;  %v4601_v53 = vadd.f32 %v4600_v30, %v4599_v59  ;;  %v4158_v62 = vpop.permute.xlu0 %4157  ;;  %v4701_v9 = vadd.f32 %v4700_v10, %v4699_v61  ;;  %v4711_v4 = vadd.f32 %v4453_v58, %v8928_v16  ;;  %v9575_v25 = vld [vmem:[#allocation71_spill] sm:$0xff] }
 0x3c9   :  { %v9044_v36 = vadd.f32 %v4553_v45, %v4552_v47  ;;  %v4595_v12 = vrot.slane %v4594_v15, 2  ;;  %v4705_v22 = vrot.slane %v4704_v52, 4  ;;  %v4394_v34 = vmul.f32 %v4126_v14, %v9575_v25 }
 0x3ca   :  { %v4695_v60 = vrot.slane %v4694_v40, 1  ;;  %v4602_v11 = vrot.slane %v4601_v53, 2  ;;  %v4702_v20 = vrot.slane %v4701_v9, 1  ;;  %v4712_v3 = vrot.slane %v4711_v4, 4 }
 0x3cb   :  { %v4044_v59 = vpop.permute.xlu1 %4043  ;;  %v9047_v37 = vadd.f32 %v4560_v29, %v4559_v57  ;;  %v9049_v10 = vadd.f32 %v4595_v12, %v4594_v15  ;;  %v4395_v61 = vmul.f32 %v4126_v14, %v9576_v31  ;;  %v4706_v45 = vadd.f32 %v4705_v22, %v4704_v52  ;;  %v9579_v31 = vld [vmem:[#allocation85_spill] sm:$0xff]  ;;  %v9580_v52 = vld [vmem:[#allocation86_spill] sm:$0xff] }
 0x3cc   :  { %v4696_v38 = vadd.f32 %v4695_v60, %v4694_v40  ;;  %v4162_v16 = vpop.permute.xlu0 %4161  ;;  %v4703_v30 = vadd.f32 %v4702_v20, %v4701_v9  ;;  %v4713_v47 = vadd.f32 %v4712_v3, %v4711_v4  ;;  %v4508_v17 = vadd.f32 %v4394_v34, %v8680_v33 }
 0x3cd   :  { %v9054_v1 = vadd.f32 %v4602_v11, %v4601_v53  ;;  %v4515_v25 = vadd.f32 %v4395_v61, %v8683_v48  ;;  %v4454_v40 = vmul.f32 %v4166_v39, %v9578_v19  ;;  %v4707_v29 = vrot.slane %v4706_v45, 2 }
 0x3ce   :  { %v4926_v58 = vadd.f32 %v9018_v2, %v4696_v38  ;;  %v4927_v57 = vadd.f32 %v4879_v28, %v4703_v30  ;;  %v4714_v15 = vrot.slane %v4713_v47, 2  ;;  %v4509_v60 = vrot.slane %v4508_v17, 4  ;;  %v9581_v30 = vld [vmem:[#allocation90_spill] sm:$0xff] }
 0x3cf   :  { %9577 = vst [vmem:[#allocation16_spill] sm:$0xff] %v9054_v1  ;;  %v4516_v14 = vrot.slane %v4515_v25, 4  ;;  %v4442_v9 = vmul.f32 %v4158_v62, %v9579_v31  ;;  %v4443_v4 = vmul.f32 %v4158_v62, %v9580_v52  ;;  %v4708_v11 = vadd.f32 %v4707_v29, %v4706_v45 }
 0x3d0   :  { %v4974_v12 = vpack.c.bf16 %v4926_v58, %v4926_v58  ;;  %v4110_v20 = vpop.permute.xlu1 %4109  ;;  %v9060_v33 = vpop.permute.xlu0 %4169  ;;  %v4975_v2 = vpack.c.bf16 %v4927_v57, %v4927_v57  ;;  %v4715_v53 = vadd.f32 %v4714_v15, %v4713_v47  ;;  %v4510_v22 = vadd.f32 %v4509_v60, %v4508_v17  ;;  %v9582_v17 = vld [vmem:[#allocation41_spill] sm:$0xff] }
 0x3d1   :  { %v4517_v3 = vadd.f32 %v4516_v14, %v4515_v25  ;;  %v4676_v28 = vadd.f32 %v4442_v9, %v8970_v7  ;;  %v4683_v19 = vadd.f32 %v4443_v4, %v8973_v43  ;;  %v4709_v34 = vrot.slane %v4708_v11, 1  ;;  %v9583_v9 = vld [vmem:[#allocation31_spill] sm:$0xff] }
 0x3d2   :  { %v5173_v48 = vunpack.c.l.b16 %v4974_v12  ;;  %v4716_v38 = vrot.slane %v4715_v53, 1  ;;  %v4511_v61 = vrot.slane %v4510_v22, 2  ;;  %v4455_v58 = vmul.f32 %v4166_v39, %v9581_v30 }
 0x3d3   :  { %v9065_v31 = vunpack.c.l.b16 %v4975_v2  ;;  %v4677_v52 = vrot.slane %v4676_v28, 4  ;;  %v4684_v1 = vrot.slane %v4683_v19, 4  ;;  %v4710_v57 = vadd.f32 %v4709_v34, %v4708_v11 }
 0x3d4   :  { %v5203_v62 = vrot.slane %v5173_v48, 3  ;;  %v4717_v45 = vadd.f32 %v4716_v38, %v4715_v53  ;;  %v4518_v47 = vrot.slane %v4517_v3, 2  ;;  %v4462_v29 = vmul.f32 %v4044_v59, %v9582_v17  ;;  %v4178_v25 = vpop.permute.xlu0 %4177  ;;  %v9584_v48 = vld [vmem:[#allocation87_spill] sm:$0xff]  ;;  %v9585_v38 = vld [vmem:[#allocation88_spill] sm:$0xff] }
 0x3d5   :  { %v4174_v15 = vpop.permute.xlu1 %4173  ;;  %v9072_v43 = vadd.f32 %v4511_v61, %v4510_v22  ;;  %v4678_v60 = vadd.f32 %v4677_v52, %v4676_v28  ;;  %v4685_v39 = vadd.f32 %v4684_v1, %v4683_v19  ;;  %v4928_v12 = vadd.f32 %v9009_v27, %v4710_v57 }
 0x3d6   :  { %v9070_v7 = vsel %vm5204_vm6, %v5203_v62, %v9006_v23  ;;  %v4929_v14 = vadd.f32 %v9012_v8, %v4717_v45  ;;  %v4463_v4 = vmul.f32 %v4044_v59, %v9583_v9  ;;  %v4732_v2 = vadd.f32 %v4462_v29, %v8954_v46  ;;  %v9586_v29 = vld [vmem:[#allocation66_spill] sm:$0xff] }
 0x3d7   :  { %v4679_v11 = vrot.slane %v4678_v60, 2  ;;  %v4686_v53 = vrot.slane %v4685_v39, 2  ;;  %v4448_v34 = vmul.f32 %v4162_v16, %v9584_v48  ;;  %v4449_v30 = vmul.f32 %v4162_v16, %v9585_v38  ;;  %v9589_v48 = vld [vmem:[#allocation91_spill] sm:$0xff]  ;;  %v9590_v38 = vld [vmem:[#allocation92_spill] sm:$0xff] }
 0x3d8   :  { %v4976_v23 = vpack.c.bf16 %v4928_v12, %v4928_v12  ;;  %v4977_v62 = vpack.c.bf16 %v4929_v14, %v4929_v14  ;;  %v4733_v22 = vrot.slane %v4732_v2, 4  ;;  %v4739_v28 = vadd.f32 %v4463_v4, %v8958_v54  ;;  %v9587_v14 = vld [vmem:[#allocation34_spill] sm:$0xff] }
 0x3d9   :  { %v9081_v1 = vadd.f32 %v4518_v47, %v4517_v3  ;;  %v9083_v27 = vadd.f32 %v4679_v11, %v4678_v60  ;;  %v4718_v8 = vadd.f32 %v4454_v40, %v4448_v34  ;;  %v4725_v19 = vadd.f32 %v4455_v58, %v4449_v30  ;;  %v4314_v45 = vpop.permute.xlu0 %4313 }
 0x3da   :  { %v4250_v59 = vpop.permute.xlu1 %4249  ;;  %v9085_v61 = vunpack.c.l.b16 %v4976_v23  ;;  %v9087_v46 = vadd.f32 %v4686_v53, %v4685_v39  ;;  %v4734_v52 = vadd.f32 %v4733_v22, %v4732_v2  ;;  %v4740_v57 = vrot.slane %v4739_v28, 4  ;;  %v9591_v22 = vld [vmem:[#allocation95_spill] sm:$0xff] }
 0x3db   :  { %v4719_v16 = vrot.slane %v4718_v8, 4  ;;  %v4726_v17 = vrot.slane %v4725_v19, 4  ;;  %v4464_v12 = vmul.f32 %v4110_v20, %v9586_v29  ;;  %v4465_v54 = vmul.f32 %v4110_v20, %v9587_v14 }
 0x3dc   :  { %v9091_v3 = vunpack.c.l.b16 %v4977_v62  ;;  %v4735_v40 = vrot.slane %v4734_v52, 2  ;;  %v4741_v58 = vadd.f32 %v4740_v57, %v4739_v28  ;;  %v4460_v34 = vmul.f32 %v9060_v33, %v9589_v48  ;;  %v9592_v57 = vld [vmem:[#allocation93_spill] sm:$0xff] }
 0x3dd   :  { %v4720_v60 = vadd.f32 %v4719_v16, %v4718_v8  ;;  %v4727_v9 = vadd.f32 %v4726_v17, %v4725_v19  ;;  %v4746_v39 = vadd.f32 %v4464_v12, %v8964_v21  ;;  %v4753_v4 = vadd.f32 %v4465_v54, %v8979_v41  ;;  %v9593_v12 = vld [vmem:[#allocation96_spill] sm:$0xff] }
 0x3de   :  { %9588 = vst [vmem:[#allocation62_spill] sm:$0xff] %v9091_v3  ;;  %v4054_v2 = vpop.permute.xlu1 %4053  ;;  %v4736_v11 = vadd.f32 %v4735_v40, %v4734_v52  ;;  %v4742_v53 = vrot.slane %v4741_v58, 2  ;;  %v4461_v20 = vmul.f32 %v9060_v33, %v9590_v38  ;;  %v9101_v28 = vmul.f32 %v4178_v25, %v9591_v22  ;;  %v4346_v16 = vpop.permute.xlu0 %4345  ;;  %v9594_v40 = vld [vmem:[#allocation94_spill] sm:$0xff] }
 0x3df   :  { %v4721_v30 = vrot.slane %v4720_v60, 2  ;;  %v4747_v23 = vrot.slane %v4746_v39, 4  ;;  %v4754_v62 = vrot.slane %v4753_v4, 4  ;;  %v4728_v21 = vrot.slane %v4727_v9, 2 }
 0x3e0   :  { %v4737_v8 = vrot.slane %v4736_v11, 1  ;;  %v4743_v19 = vadd.f32 %v4742_v53, %v4741_v58  ;;  %v4466_v41 = vmul.f32 %v4174_v15, %v9592_v57  ;;  %v9107_v14 = vmul.f32 %v4178_v25, %v9593_v12 }
 0x3e1   :  { %v9104_v52 = vadd.f32 %v4721_v30, %v4720_v60  ;;  %v4748_v17 = vadd.f32 %v4747_v23, %v4746_v39  ;;  %v4755_v29 = vadd.f32 %v4754_v62, %v4753_v4  ;;  %v4467_v48 = vmul.f32 %v4174_v15, %v9594_v40 }
 0x3e2   :  { %v4738_v33 = vadd.f32 %v4737_v8, %v4736_v11  ;;  %v4744_v54 = vrot.slane %v4743_v19, 1  ;;  %v4760_v38 = vadd.f32 %v4466_v41, %v4460_v34  ;;  %v4319_v58 = vrot.slane %v4314_v45, %v8312_v50 }
 0x3e3   :  { %v4258_v22 = vpop.permute.xlu1 %4257  ;;  %v4749_v47 = vrot.slane %v4748_v17, 2  ;;  %v4756_v3 = vrot.slane %v4755_v29, 2  ;;  %v4255_v53 = vrot.slane %v4250_v59, %v8312_v50  ;;  %v4767_v4 = vadd.f32 %v4467_v48, %v4461_v20  ;;  %v4378_v59 = vpop.permute.xlu0 %4377 }
 0x3e4   :  { %v4745_v57 = vadd.f32 %v4744_v54, %v4743_v19  ;;  %v4932_v60 = vadd.f32 %v8942_v42, %v4738_v33  ;;  %v4761_v39 = vrot.slane %v4760_v38, 4  ;;  %v9113_v30 = vadd.f32 %v4728_v21, %v4727_v9 }
 0x3e5   :  { %v9115_v25 = vadd.f32 %v4749_v47, %v4748_v17  ;;  %v9117_v11 = vadd.f32 %v4756_v3, %v4755_v29  ;;  %v9120_v15 = vmul.f32 %v8739_v55, %v4319_v58  ;;  %v4768_v62 = vrot.slane %v4767_v4, 4  ;;  %v9595_v47 = vld [vmem:[#allocation44_spill] sm:$0xff]  ;;  %v9596_v3 = vld [vmem:[#allocation15_spill] sm:$0xff] }
 0x3e6   :  { %v4980_v34 = vpack.c.bf16 %v4932_v60, %v4932_v60  ;;  %v4762_v23 = vadd.f32 %v4761_v39, %v4760_v38  ;;  %v9123_v45 = vmul.f32 %v8759_v49, %v4319_v58  ;;  %v9126_v42 = vadd.f32 %v8946_v24, %v4745_v57 }
 0x3e7   :  { %v9129_v9 = vmul.f32 %v8689_v63, %v4255_v53  ;;  %v4474_v20 = vmul.f32 %v4054_v2, %v9595_v47  ;;  %v4475_v8 = vmul.f32 %v4054_v2, %v9596_v3  ;;  %v4769_v17 = vadd.f32 %v4768_v62, %v4767_v4 }
 0x3e8   :  { %v4330_v19 = vpop.permute.xlu1 %4329  ;;  %v9133_v21 = vunpack.c.l.b16 %v4980_v34  ;;  %v4763_v41 = vrot.slane %v4762_v23, 2  ;;  %v4351_v29 = vrot.slane %v4346_v16, %v8312_v50  ;;  %v9139_v24 = vrot.slane %v4378_v59, %v8312_v50 }
 0x3e9   :  { %v4774_v12 = vadd.f32 %v4474_v20, %v8984_v0  ;;  %v4781_v33 = vadd.f32 %v4475_v8, %v8988_v26  ;;  %v4263_v63 = vrot.slane %v4258_v22, %v8312_v50  ;;  %v4770_v40 = vrot.slane %v4769_v17, 2 }
 0x3ea   :  { %v5206_v54 = vrot.slane %v9133_v21, 2  ;;  %v9144_v2 = vmul.f32 %v8695_v56, %v4255_v53  ;;  %v4870_v48 = vmul.f32 %v8829_v5, %v4351_v29  ;;  %v9147_v38 = vadd.f32 %v4763_v41, %v4762_v23 }
 0x3eb   :  { %v4775_v16 = vrot.slane %v4774_v12, 4  ;;  %v4782_v58 = vrot.slane %v4781_v33, 4  ;;  %v4871_v0 = vmul.f32 %v8850_v51, %v4351_v29  ;;  %v9150_v57 = vadd.f32 %v4770_v40, %v4769_v17 }
 0x3ec   :  { %v4338_v26 = vpop.permute.xlu1 %4337  ;;  %v4918_v60 = vadd.f32 %v4870_v48, %v8994_v35  ;;  %v9155_v22 = vmul.f32 %v8829_v5, %v9139_v24  ;;  %v4850_v56 = vmul.f32 %v8739_v55, %v4263_v63  ;;  %v4851_v34 = vmul.f32 %v8759_v49, %v4263_v63 }
 0x3ed   :  { %v4776_v53 = vadd.f32 %v4775_v16, %v4774_v12  ;;  %v4783_v39 = vadd.f32 %v4782_v58, %v4781_v33  ;;  %v4919_v4 = vadd.f32 %v4871_v0, %v8996_v6  ;;  %v4335_v59 = vrot.slane %v4330_v19, %v8312_v50 }
 0x3ee   :  { %v4966_v23 = vpack.c.bf16 %v4918_v60, %v4918_v60  ;;  %v4898_v62 = vadd.f32 %v4850_v56, %v8865_v44  ;;  %v4555_v47 = vrot.slane %v9044_v36, 1  ;;  %v4899_v8 = vadd.f32 %v4851_v34, %v8877_v18 }
 0x3ef   :  { %v4777_v35 = vrot.slane %v4776_v53, 2  ;;  %v4784_v20 = vrot.slane %v4783_v39, 2  ;;  %v4967_v3 = vpack.c.bf16 %v4919_v4, %v4919_v4  ;;  %v4562_v12 = vrot.slane %v9047_v37, 1 }
 0x3f0   :  { %v4322_v41 = vpop.permute.xlu1 %4321  ;;  %v9164_v17 = vunpack.c.l.b16 %v4966_v23  ;;  %v4946_v29 = vpack.c.bf16 %v4898_v62, %v4898_v62  ;;  %v4556_v6 = vadd.f32 %v4555_v47, %v9044_v36  ;;  %v4947_v19 = vpack.c.bf16 %v4899_v8, %v4899_v8 }
 0x3f1   :  { %v4778_v33 = vadd.f32 %v4777_v35, %v4776_v53  ;;  %v4785_v63 = vadd.f32 %v4784_v20, %v4783_v39  ;;  %v9168_v44 = vunpack.c.l.b16 %v4967_v3  ;;  %v4563_v16 = vadd.f32 %v4562_v12, %v9047_v37  ;;  %v9598_v37 = vld [vmem:[#allocation46_spill] sm:$0xff]  ;;  %v9600_v3 = vld [vmem:[#allocation45_spill] sm:$0xff] }
 0x3f2   :  { %v5258_v40 = vrot.slane %v9164_v17, 5  ;;  %v5145_v48 = vunpack.c.l.b16 %v4946_v29  ;;  %v4858_v18 = vmul.f32 %v8829_v5, %v4335_v59  ;;  %v5146_v56 = vunpack.c.l.b16 %v4947_v19  ;;  %v9603_v19 = vld [vmem:[#allocation47_spill] sm:$0xff] }
 0x3f3   :  { %v4779_v58 = vrot.slane %v4778_v33, 1  ;;  %v4786_v0 = vrot.slane %v4785_v63, 1  ;;  %v5272_v60 = vrot.slane %v9168_v44, 5  ;;  %v9597_v36 = vrot.slane %v8862_v13, 7 }
 0x3f4   :  { %v4859_v39 = vmul.f32 %v8850_v51, %v4335_v59  ;;  %v4906_v4 = vadd.f32 %v4858_v18, %v4556_v6  ;;  %v4343_v34 = vrot.slane %v4338_v26, %v8312_v50  ;;  %v9599_v35 = vrot.slane %v9598_v37, 6  ;;  %v9605_v18 = vld [vmem:[#allocation16_spill] sm:$0xff] }
 0x3f5   :  { %v5227_v53 = vsel %vm5192_vm2, %v9597_v36, %v5145_v48  ;;  %v4306_v23 = vpop.permute.xlu1 %4305  ;;  %v4780_v62 = vadd.f32 %v4779_v58, %v4778_v33  ;;  %v4787_v47 = vadd.f32 %v4786_v0, %v4785_v63  ;;  %v9601_v8 = vrot.slane %v9600_v3, 7 }
 0x3f6   :  { %v5229_v20 = vsel %vm5195_vm3, %v9599_v35, %v5227_v53  ;;  %v9602_v13 = vrot.slane %v8990_v32, 5  ;;  %v9604_v59 = vrot.slane %v9603_v19, 6  ;;  %v4907_v26 = vadd.f32 %v4859_v39, %v4563_v16 }
 0x3f7   :  { %v5241_v29 = vsel %vm5192_vm2, %v9601_v8, %v5146_v56  ;;  %v4954_v33 = vpack.c.bf16 %v4906_v4, %v4906_v4  ;;  %v4938_v63 = vadd.f32 %v9129_v9, %v4780_v62  ;;  %v4597_v48 = vrot.slane %v9049_v10, 1 }
 0x3f8   :  { %v5231_v12 = vsel %vm5198_vm4, %v9602_v13, %v5229_v20  ;;  %v9191_v6 = vsel %vm5195_vm3, %v9604_v59, %v5241_v29  ;;  %v4604_v58 = vrot.slane %v9605_v18, 1  ;;  %v4864_v0 = vmul.f32 %v8829_v5, %v4343_v34 }
 0x3f9   :  { %v4955_v56 = vpack.c.bf16 %v4907_v26, %v4907_v26  ;;  %v5153_v36 = vunpack.c.l.b16 %v4954_v33  ;;  %v4865_v32 = vmul.f32 %v8850_v51, %v4343_v34  ;;  %v4327_v53 = vrot.slane %v4322_v41, %v8312_v50  ;;  %v4114_v37 = vpop.permute.xlu1 %4113 }
 0x3fa   :  { %v4986_v35 = vpack.c.bf16 %v4938_v63, %v4938_v63  ;;  %v4598_v20 = vadd.f32 %v4597_v48, %v9049_v10  ;;  %v4605_v16 = vadd.f32 %v4604_v58, %v9605_v18  ;;  %v4513_v9 = vrot.slane %v9072_v43, 1 }
 0x3fb   :  { %v5154_v39 = vunpack.c.l.b16 %v4955_v56  ;;  %v5254_v4 = vrot.slane %v5153_v36, 7  ;;  %v4520_v62 = vrot.slane %v9081_v1, 1  ;;  %v4852_v3 = vmul.f32 %v8829_v5, %v4327_v53 }
 0x3fc   :  { %v5185_v8 = vunpack.c.l.b16 %v4986_v35  ;;  %v4912_v29 = vadd.f32 %v4864_v0, %v4598_v20  ;;  %v4913_v13 = vadd.f32 %v4865_v32, %v4605_v16  ;;  %v4514_v34 = vadd.f32 %v4513_v9, %v9072_v43  ;;  %v9606_v16 = vld [vmem:[#allocation61_spill] sm:$0xff] }
 0x3fd   :  { %v5268_v41 = vrot.slane %v5154_v39, 7  ;;  %v4521_v19 = vadd.f32 %v4520_v62, %v9081_v1  ;;  %v4853_v10 = vmul.f32 %v8850_v51, %v4327_v53  ;;  %v4311_v59 = vrot.slane %v4306_v23, %v8312_v50  ;;  %v4118_v26 = vpop.permute.xlu1 %4117 }
 0x3fe   :  { %v5209_v33 = vrot.slane %v5185_v8, 1  ;;  %v4960_v63 = vpack.c.bf16 %v4912_v29, %v4912_v29  ;;  %v4961_v48 = vpack.c.bf16 %v4913_v13, %v4913_v13  ;;  %v4900_v18 = vadd.f32 %v4852_v3, %v4514_v34 }
 0x3ff   :  { %v4901_v58 = vadd.f32 %v4853_v10, %v4521_v19  ;;  %v4751_v0 = vrot.slane %v9115_v25, 1  ;;  %v4758_v56 = vrot.slane %v9117_v11, 1  ;;  %v4886_v43 = vmul.f32 %v8739_v55, %v4311_v59  ;;  %v9609_v10 = vld [vmem:[#allocation67_spill] sm:$0xff] }
 0x400   :  { %v5159_v36 = vunpack.c.l.b16 %v4960_v63  ;;  %v5160_v32 = vunpack.c.l.b16 %v4961_v48  ;;  %v4948_v1 = vpack.c.bf16 %v4900_v18, %v4900_v18  ;;  %v4887_v53 = vmul.f32 %v8759_v49, %v4311_v59 }
 0x401   :  { %v4949_v35 = vpack.c.bf16 %v4901_v58, %v4901_v58  ;;  %v4752_v23 = vadd.f32 %v4751_v0, %v9115_v25  ;;  %v4759_v20 = vadd.f32 %v4758_v56, %v9117_v11  ;;  %v9607_v9 = vrot.slane %v9606_v16, 4  ;;  %v9610_v11 = vld [vmem:[#allocation68_spill] sm:$0xff] }
 0x402   :  { %v5256_v62 = vrot.slane %v5159_v36, 6  ;;  %v5270_v3 = vrot.slane %v5160_v32, 6  ;;  %v5147_v8 = vunpack.c.l.b16 %v4948_v1  ;;  %v9608_v29 = vrot.slane %v9085_v61, 3  ;;  %v4182_v13 = vpop.permute.xlu1 %4181 }
 0x403   :  { %v5233_v39 = vsel %vm5201_vm5, %v9607_v9, %v5231_v12  ;;  %v5148_v34 = vunpack.c.l.b16 %v4949_v35  ;;  %v4934_v19 = vadd.f32 %v4886_v43, %v4752_v23  ;;  %v4935_v49 = vadd.f32 %v4887_v53, %v4759_v20 }
 0x404   :  { %v5235_v55 = vsel %vm5204_vm6, %v9608_v29, %v5233_v39  ;;  %v4470_v59 = vmul.f32 %v4114_v37, %v9609_v10  ;;  %v5255_v25 = vsel %vm5192_vm2, %v5254_v4, %v5147_v8  ;;  %v4471_v63 = vmul.f32 %v4114_v37, %v9610_v11  ;;  %v9613_v39 = vld [vmem:[#allocation70_spill] sm:$0xff] }
 0x405   :  { %v4939_v48 = vadd.f32 %v9144_v2, %v4787_v47  ;;  %v4981_v12 = vpack.c.bf16 %v9126_v42, %v9126_v42  ;;  %v5257_v18 = vsel %vm5195_vm3, %v5256_v62, %v5255_v25  ;;  %v5269_v61 = vsel %vm5192_vm2, %v5268_v41, %v5148_v34  ;;  %v9611_v2 = vld [vmem:[#allocation69_spill] sm:$0xff]  ;;  %v9612_v41 = vld [vmem:[#allocation56_spill] sm:$0xff] }
 0x406   :  { %v4982_v58 = vpack.c.bf16 %v4934_v19, %v4934_v19  ;;  %v4983_v0 = vpack.c.bf16 %v4935_v49, %v4935_v49  ;;  %v5271_v56 = vsel %vm5195_vm3, %v5270_v3, %v5269_v61  ;;  %v5220_v32 = vrot.slane %v9065_v31, 3  ;;  %v4354_v20 = vpop.permute.xlu1 %4353  ;;  %v9615_v19 = vld [vmem:[#allocation98_spill] sm:$0xff] }
 0x407   :  { %v4987_v43 = vpack.c.bf16 %v4939_v48, %v4939_v48  ;;  %v5180_v36 = vunpack.c.l.b16 %v4981_v12  ;;  %v5208_v42 = vsel %vm5207_vm7, %v5206_v54, %v9070_v7  ;;  %v4476_v47 = vmul.f32 %v4118_v26, %v9611_v2  ;;  %v9614_v54 = vld [vmem:[#allocation97_spill] sm:$0xff] }
 0x408   :  { %v5181_v4 = vunpack.c.l.b16 %v4982_v58  ;;  %v9230_v1 = vunpack.c.l.b16 %v4983_v0  ;;  %v5221_v53 = vsel %vm5204_vm6, %v5220_v32, %v9612_v41  ;;  %v5211_v23 = vsel %vm5210_vm8, %v5209_v33, %v5208_v42  ;;  %v6917_v0 = vld [vmem:[#allocation9 + $0x170] sm:$0xff]  }
 0x409   :  { %v5186_v37 = vunpack.c.l.b16 %v4987_v43  ;;  %v5222_v35 = vrot.slane %v5180_v36, 2  ;;  %v5282_v9 = vpack.c.b16 %v5211_v23, %v5211_v23  ;;  %v4477_v62 = vmul.f32 %v4118_v26, %v9613_v39 }
 0x40a   :  { %v5236_v16 = vrot.slane %v5181_v4, 2  ;;  %v5250_v31 = vrot.slane %v9230_v1, 2  ;;  %v4788_v7 = vadd.f32 %v4476_v47, %v4470_v59  ;;  %v4478_v8 = vmul.f32 %v4182_v13, %v9614_v54  ;;  %v6916_v59 = vld [vmem:[#allocation9 + $0x138] sm:$0xff]   ;;  %v4362_v42 = vpop.permute.xlu1 %4361 }
 0x40b   :  { %v5223_v21 = vsel %vm5207_vm7, %v5222_v35, %v5221_v53  ;;  %v5224_v3 = vrot.slane %v5186_v37, 1  ;;  %v4795_v34 = vadd.f32 %v4477_v62, %v4471_v63  ;;  %v4479_v49 = vmul.f32 %v4182_v13, %v9615_v19  ;;  %v6918_v53 = vld [vmem:[#allocation9 + $0x130] sm:$0xff]  }
 0x40c   :  { %v9245_v29 = vsel %vm5207_vm7, %v5236_v16, %v5235_v55  ;;  %v4359_v33 = vrot.slane %v4354_v20, %v8312_v50  ;;  %v4789_v25 = vrot.slane %v4788_v7, 4  ;;  %v4802_v11 = vadd.f32 %v4478_v8, %v9101_v28 }
 0x40d   :  { %v5225_v10 = vsel %vm5210_vm8, %v5224_v3, %v5223_v21  ;;  %v4681_v26 = vrot.slane %v9083_v27, 1  ;;  %v4796_v12 = vrot.slane %v4795_v34, 4  ;;  %v4809_v61 = vadd.f32 %v4479_v49, %v9107_v14 }
 0x40e   :  { %v5283_v48 = vpack.c.b16 %v5225_v10, %v5225_v10  ;;  %v4688_v55 = vrot.slane %v9087_v46, 1  ;;  %v4790_v58 = vadd.f32 %v4789_v25, %v4788_v7  ;;  %v4803_v63 = vrot.slane %v4802_v11, 4  ;;  %v6923_v25 = vld [vmem:[#allocation9 + $0x160] sm:$0xff]  }
 0x40f   :  { %v4682_v13 = vadd.f32 %v4681_v26, %v9083_v27  ;;  %v4876_v43 = vmul.f32 %v8829_v5, %v4359_v33  ;;  %v4797_v36 = vadd.f32 %v4796_v12, %v4795_v34  ;;  %v4810_v32 = vrot.slane %v4809_v61, 4 }
 0x410   :  { %5614 = vmatprep.mubr.bf16.mxu0 %v5283_v48  ;;  %v4689_v28 = vadd.f32 %v4688_v55, %v9087_v46  ;;  %v4877_v4 = vmul.f32 %v8850_v51, %v4359_v33  ;;  %v4791_v2 = vrot.slane %v4790_v58, 2  ;;  %v4804_v14 = vadd.f32 %v4803_v63, %v4802_v11  ;;  %v4370_v11 = vpop.permute.xlu1 %4369 }
 0x411   :  { %5615 = vmatmul.mubr.bf16.vlgmr.msra.gmra.mxu0 %v5282_v9  ;;  %v4924_v47 = vadd.f32 %v4876_v43, %v4682_v13  ;;  %v5259_v37 = vsel %vm5198_vm4, %v5258_v40, %v5257_v18  ;;  %v4798_v41 = vrot.slane %v4797_v36, 2  ;;  %v4811_v27 = vadd.f32 %v4810_v32, %v4809_v61  ;;  %v6921_v9 = vld [vmem:[#allocation9 + $0x168] sm:$0xff]  }
 0x412   :  { %6332 = vmatpush3.bf16.msra.mxu0 %v6916_v59  ;;  %v4925_v35 = vadd.f32 %v4877_v4, %v4689_v28  ;;  %v5273_v46 = vsel %vm5198_vm4, %v5272_v60, %v5271_v56  ;;  %v4792_v23 = vadd.f32 %v4791_v2, %v4790_v58  ;;  %v4805_v20 = vrot.slane %v4804_v14, 2  ;;  %v6922_v56 = vld [vmem:[#allocation9 + $0x128] sm:$0xff]   ;;  %v6927_v4 = vld [vmem:[#allocation9 + $0x158] sm:$0xff]  }
 0x413   :  { %6333 = vmatprep.subr.bf16.mxu0 %v6917_v0  ;;  %v4972_v16 = vpack.c.bf16 %v4924_v47, %v4924_v47  ;;  %v4367_v39 = vrot.slane %v4362_v42, %v8312_v50  ;;  %v4799_v62 = vadd.f32 %v4798_v41, %v4797_v36  ;;  %v4812_v17 = vrot.slane %v4811_v27, 2 }
 0x414   :  { %v4973_v21 = vpack.c.bf16 %v4925_v35, %v4925_v35  ;;  %v4723_v40 = vrot.slane %v9104_v52, 1  ;;  %v4793_v18 = vrot.slane %v4792_v23, 1  ;;  %v4806_v3 = vadd.f32 %v4805_v20, %v4804_v14  ;;  %v6928_v35 = vld [vmem:[#allocation9 + $0x118] sm:$0xff]  }
 0x415   :  { %v5171_v7 = vunpack.c.l.b16 %v4972_v16  ;;  %v4730_v54 = vrot.slane %v9113_v30, 1  ;;  %v4800_v44 = vrot.slane %v4799_v62, 1  ;;  %v4813_v8 = vadd.f32 %v4812_v17, %v4811_v27  ;;  %v6929_v17 = vld [vmem:[#allocation9 + $0x150] sm:$0xff]  }
 0x416   :  { %6334 = vmatpush3.bf16.msra.mxu0 %v6918_v53  ;;  %v5172_v60 = vunpack.c.l.b16 %v4973_v21  ;;  %v4724_v34 = vadd.f32 %v4723_v40, %v9104_v52  ;;  %v4794_v19 = vadd.f32 %v4793_v18, %v4792_v23  ;;  %v4807_v49 = vrot.slane %v4806_v3, 1  ;;  %v9616_v23 = vld [vmem:[#allocation48_spill] sm:$0xff]  ;;  %v9618_v18 = vld [vmem:[#allocation35_spill] sm:$0xff] }
 0x417   :  { %v5260_v33 = vrot.slane %v5171_v7, 4  ;;  %6335 = vmatprep.subr.bf16.mxu0 %v6921_v9  ;;  %v4731_v10 = vadd.f32 %v4730_v54, %v9113_v30  ;;  %v4801_v26 = vadd.f32 %v4800_v44, %v4799_v62  ;;  %v4814_v48 = vrot.slane %v4813_v8, 1  ;;  %v6924_v30 = vld [vmem:[#allocation9 + $0x120] sm:$0xff]  }
 0x418   :  { %v5274_v12 = vrot.slane %v5172_v60, 4  ;;  %v4882_v59 = vmul.f32 %v8829_v5, %v4367_v39  ;;  %v4940_v61 = vadd.f32 %v9120_v15, %v4794_v19  ;;  %v4808_v55 = vadd.f32 %v4807_v49, %v4806_v3  ;;  %v9620_v44 = vld [vmem:[#allocation62_spill] sm:$0xff] }
 0x419   :  { %v5261_v58 = vsel %vm5201_vm5, %v5260_v33, %v5259_v37  ;;  %v4883_v52 = vmul.f32 %v8850_v51, %v4367_v39  ;;  %v4815_v63 = vadd.f32 %v4814_v48, %v4813_v8  ;;  %v4375_v43 = vrot.slane %v4370_v11, %v8312_v50 }
 0x41a   :  { %v5275_v0 = vsel %vm5201_vm5, %v5274_v12, %v5273_v46  ;;  %6336 = vmatpush3.bf16.msra.mxu0 %v6922_v56  ;;  %v4930_v13 = vadd.f32 %v4882_v59, %v4724_v34  ;;  %v4988_v36 = vpack.c.bf16 %v4940_v61, %v4940_v61  ;;  %v4942_v32 = vadd.f32 %v9155_v22, %v4808_v55  ;;  %v6930_v56 = vld [vmem:[#allocation9 + $0x110] sm:$0xff]   ;;  %v6934_v55 = vld [vmem:[#allocation9 + $0x108] sm:$0xff]  }
 0x41b   :  { %v4931_v28 = vadd.f32 %v4883_v52, %v4731_v10  ;;  %6337 = vmatprep.subr.bf16.mxu0 %v6923_v25  ;;  %v4765_v15 = vrot.slane %v9147_v38, 1  ;;  %v4772_v2 = vrot.slane %v9150_v57, 1  ;;  %v4888_v14 = vmul.f32 %v8829_v5, %v4375_v43  ;;  %v6933_v10 = vld [vmem:[#allocation9 + $0x148] sm:$0xff]  }
 0x41c   :  { %v4978_v42 = vpack.c.bf16 %v4930_v13, %v4930_v13  ;;  %v4889_v47 = vmul.f32 %v8850_v51, %v4375_v43  ;;  %v5187_v37 = vunpack.c.l.b16 %v4988_v36  ;;  %v4990_v41 = vpack.c.bf16 %v4942_v32, %v4942_v32  ;;  %v6935_v13 = vld [vmem:[#allocation9 + $0x140] sm:$0xff]  }
 0x41d   :  { %v4979_v27 = vpack.c.bf16 %v4931_v28, %v4931_v28  ;;  %v4766_v50 = vadd.f32 %v4765_v15, %v9147_v38  ;;  %v4773_v22 = vadd.f32 %v4772_v2, %v9150_v57  ;;  %v4941_v46 = vadd.f32 %v9123_v45, %v4801_v26  ;;  %v6936_v43 = vld [vmem:[#allocation9 + $0x100] sm:$0xff]  }
 0x41e   :  { %v5177_v53 = vunpack.c.l.b16 %v4978_v42  ;;  %6338 = vmatpush3.bf16.msra.mxu0 %v6924_v30  ;;  %v9617_v20 = vrot.slane %v9616_v23, 5  ;;  %v5238_v5 = vrot.slane %v5187_v37, 1  ;;  %v5189_v9 = vunpack.c.l.b16 %v4990_v41 }
 0x41f   :  { %v5178_v39 = vunpack.c.l.b16 %v4979_v27  ;;  %v4936_v62 = vadd.f32 %v4888_v14, %v4766_v50  ;;  %6339 = vmatprep.subr.bf16.mxu0 %v6927_v4  ;;  %v4937_v38 = vadd.f32 %v4889_v47, %v4773_v22  ;;  %v4989_v40 = vpack.c.bf16 %v4941_v46, %v4941_v46  ;;  %v6046_v27 = vld [vmem:[#allocation11] ss:$0 sm:$0xff] }
 0x420   :  { %v5245_v16 = vsel %vm5198_vm4, %v9617_v20, %v9191_v6  ;;  %v5262_v21 = vrot.slane %v5177_v53, 3  ;;  %v9619_v3 = vrot.slane %v9618_v18, 4  ;;  %v4895_v45 = vmul.f32 %v8850_v51, %v9139_v24 }
 0x421   :  { %v5276_v7 = vrot.slane %v5178_v39, 3  ;;  %v4984_v54 = vpack.c.bf16 %v4936_v62, %v4936_v62  ;;  %v5248_v6 = vrot.slane %v9620_v44, 3  ;;  %v4985_v60 = vpack.c.bf16 %v4937_v38, %v4937_v38 }
 0x422   :  { %v5247_v57 = vsel %vm5201_vm5, %v9619_v3, %v5245_v16  ;;  %v5263_v8 = vsel %vm5204_vm6, %v5262_v21, %v5261_v58  ;;  %6340 = vmatpush3.bf16.msra.mxu0 %v6928_v35  ;;  %v5188_v34 = vunpack.c.l.b16 %v4989_v40  ;;  %v5239_v19 = vsel %vm5210_vm8, %v5238_v5, %v9245_v29 }
 0x423   :  { %v5266_v49 = vrot.slane %v5189_v9, 1  ;;  %v5183_v33 = vunpack.c.l.b16 %v4984_v54  ;;  %6341 = vmatprep.subr.bf16.mxu0 %v6929_v17  ;;  %v5249_v25 = vsel %vm5204_vm6, %v5248_v6, %v5247_v57  ;;  %v4943_v51 = vadd.f32 %v4895_v45, %v4815_v63 }
 0x424   :  { %v5184_v24 = vunpack.c.l.b16 %v4985_v60  ;;  %v5251_v11 = vsel %vm5207_vm7, %v5250_v31, %v5249_v25  ;;  %v5252_v26 = vrot.slane %v5188_v34, 1  ;;  %v5277_v48 = vsel %vm5204_vm6, %v5276_v7, %v5275_v0 }
 0x425   :  { %v5264_v12 = vrot.slane %v5183_v33, 2  ;;  %v4991_v59 = vpack.c.bf16 %v4943_v51, %v4943_v51  ;;  %v5284_v58 = vpack.c.b16 %v5239_v19, %v5239_v19 }
 0x426   :  { %v5278_v61 = vrot.slane %v5184_v24, 2  ;;  %6342 = vmatpush3.bf16.msra.mxu0 %v6930_v56  ;;  %v5253_v29 = vsel %vm5210_vm8, %v5252_v26, %v5251_v11 }
 0x427   :  { %v5265_v52 = vsel %vm5207_vm7, %v5264_v12, %v5263_v8  ;;  %6343 = vmatprep.subr.bf16.mxu0 %v6933_v10  ;;  %v5285_v63 = vpack.c.b16 %v5253_v29, %v5253_v29  ;;  %v5190_v30 = vunpack.c.l.b16 %v4991_v59 }
 0x428   :  { %v5279_v1 = vsel %vm5207_vm7, %v5278_v61, %v5277_v48  ;;  %v5267_v31 = vsel %vm5210_vm8, %v5266_v49, %v5265_v52 }
 0x429   :  { %5654 = vmatprep.mubr.bf16.mxu1 %v5285_v63  ;;  %v5280_v0 = vrot.slane %v5190_v30, 1  ;;  %v5286_v28 = vpack.c.b16 %v5267_v31, %v5267_v31 }
 0x42a   :  { %6344 = vmatpush3.bf16.msra.mxu0 %v6934_v55  ;;  %5655 = vmatmul.mubr.bf16.vlgmr.msra.gmra.mxu1 %v5284_v58 }
 0x42b   :  { %6345 = vmatprep.subr.bf16.mxu0 %v6935_v13  ;;  %v5281_v36 = vsel %vm5210_vm8, %v5280_v0, %v5279_v1 }
 0x42c   :  { %v5287_v32 = vpack.c.b16 %v5281_v36, %v5281_v36 }
 0x42e   :  { %6346 = vmatpush3.bf16.msra.mxu0 %v6936_v43  ;;  %5694 = vmatprep.mubr.bf16.mxu0 %v5287_v32 }
 0x431   :  { %5695 = vmatmul.mubr.bf16.vlgmr.msra.gmra.mxu0 %v5286_v28 }
 0x4d1   :  { %v6303_v15 = vpop.f32.mrf.mxu0 }
 0x4d3   :  { %v6304_v4 = vpop.f32.mrf.mxu0 }
 0x4d4   :  { %v6305_v37 = vadd.f32 %v6304_v4, %v6303_v15 }
 0x4d5   :  { %v6306_v42 = vpop.f32.mrf.mxu0 }
 0x4d6   :  { %v5617_v35 = vadd.f32 %v6305_v37, %v6046_v27 }
 0x4d7   :  { %v6307_v2 = vpop.f32.mrf.mxu0 }
 0x4ea   :  { %v6325_v14 = vpop.f32.mrf.mxu1 }
 0x4ec   :  { %v6326_v47 = vpop.f32.mrf.mxu1 }
 0x4ed   :  { %v6327_v50 = vadd.f32 %v6326_v47, %v6325_v14 }
 0x4ee   :  { %v6328_v41 = vpop.f32.mrf.mxu1 }
 0x4ef   :  { %v5657_v23 = vadd.f32 %v6327_v50, %v5617_v35 }
 0x4f0   :  { %v6329_v53 = vpop.f32.mrf.mxu1 }
 0x4f1   :  { %v6347_v22 = vpop.f32.mrf.mxu0 }
 0x4f3   :  { %v6348_v46 = vpop.f32.mrf.mxu0 }
 0x4f4   :  { %v6349_v20 = vadd.f32 %v6348_v46, %v6347_v22 }
 0x4f5   :  { %v6350_v16 = vpop.f32.mrf.mxu0 }
 0x4f6   :  { %v5697_v5 = vadd.f32 %v6349_v20, %v5657_v23 }
 0x4f7   :  { %v6351_v9 = vpop.f32.mrf.mxu0 }
 0x4f8   :  { %5702 = vst [vmem:[%s9316_s7] sm:$0xff] %v5697_v5 }
 0x4f9   :  { %5707 = vsyncpa [#allocation5], 1 }
 0x4fa   :  { %5708 = vsyncpa [#allocation7], 1 }
 0x4fb   :  { %5709 = vsyncpa [#allocation10], 1 }

</bundles_post_ra>
